<compile_context>
chip_gen: v7x
topology: tpu7x:2x2x1
jax: 0.10.0
libtpu: 0.0.40
codegen_flags: <defaults>
</compile_context>

<pallas_src>
import math

import jax
import jax.numpy as jnp
from jax.experimental import pallas as pl
from jax.experimental.pallas import tpu as pltpu


def _geb_kernel(x_ref, vec_ref, w1t_ref, w2t_ref, u0at_ref, u0bt_ref,
                b0_ref, u2t_ref, b2_ref, xo_ref, vo_ref):
    tn, h = x_ref.shape                       # (tile_n, H)
    c = w2t_ref.shape[1]                      # out_channels

    # bf16 operands for the MXU (no-ops when the caller already supplies bf16).
    x_bf = x_ref[...].astype(jnp.bfloat16)
    # Stack the 3 spatial components into one (3*tile_n, H) operand so each
    # projection is a single MXU stream with the weight held resident.
    vec_bf = vec_ref[...].reshape(3 * tn, h).astype(jnp.bfloat16)

    # vec1 = || vec @ W1.T || over the 3 components (f32 accumulate).
    proj = jnp.dot(vec_bf, w1t_ref[...], preferred_element_type=jnp.float32)
    p0 = proj[:tn]
    p1 = proj[tn:2 * tn]
    p2 = proj[2 * tn:]
    vec1 = jnp.sqrt(p0 * p0 + p1 * p1 + p2 * p2)                 # (tn, H) f32

    # update_net[0]: Linear(2H -> H) on [x | vec1], computed as two matmuls on
    # the concatenation halves (avoids a lane concat for H < 128), then SiLU.
    pre = (jnp.dot(x_bf, u0at_ref[...], preferred_element_type=jnp.float32)
           + jnp.dot(vec1.astype(jnp.bfloat16), u0bt_ref[...],
                     preferred_element_type=jnp.float32)
           + b0_ref[...])
    hid = pre * jax.nn.sigmoid(pre)                               # SiLU, f32
    hid_bf = hid.astype(jnp.bfloat16)

    # update_net[2]: one fused Linear(H -> 2C); slice the x/v gates in-register.
    gate = (jnp.dot(hid_bf, u2t_ref[...], preferred_element_type=jnp.float32)
            + b2_ref[...])                                        # (tn, 2C)
    xg = gate[:, :c]
    vg = gate[:, c:]

    # x output: act(x_split)
    xo_ref[...] = (xg * jax.nn.sigmoid(xg)).astype(xo_ref.dtype)

    # vec2 = vec @ W2.T (stacked).  v output = v_split * vec2, emitted
    # component-major so every store is a full (tn, C) slab.
    vec2 = jnp.dot(vec_bf, w2t_ref[...], preferred_element_type=jnp.float32)
    vo_ref[0] = (vg * vec2[:tn]).astype(vo_ref.dtype)
    vo_ref[1] = (vg * vec2[tn:2 * tn]).astype(vo_ref.dtype)
    vo_ref[2] = (vg * vec2[2 * tn:]).astype(vo_ref.dtype)


def gated_equivariant_block_cm(x, vec_cm, packed, *, tile_n=1024,
                               out_dtype=jnp.float32):
    """Fast (layout-native) path.

    x      : (N, H)    — bf16 preferred (f32 also accepted).
    vec_cm : (3, N, H) — component-major, bf16 preferred.
    Returns (x_out (N, C), v_out_cm (3, N, C)) in `out_dtype`.
    """
    N, H = x.shape
    assert vec_cm.shape == (3, N, H)
    w1t, w2t, u0at, u0bt, b0r, u2t, b2r = packed
    C = w2t.shape[1]

    # Large tiles amortize per-step pipeline overhead; cap so the ("parallel",)
    # grid keeps >= 2 steps for the two v7x TensorCores.  Ragged N only pads
    # the tail tile (sliced off afterwards).
    tile_n = max(8, min(int(tile_n), pl.cdiv(pl.cdiv(N, 2), 8) * 8))
    n_pad = pl.cdiv(N, tile_n) * tile_n
    if n_pad != N:
        x = jnp.pad(x, ((0, n_pad - N), (0, 0)))
        vec_cm = jnp.pad(vec_cm, ((0, 0), (0, n_pad - N), (0, 0)))

    grid = (n_pad // tile_n,)
    const = lambda i: (0, 0)

    x_full, v_full = pl.pallas_call(
        _geb_kernel,
        out_shape=(jax.ShapeDtypeStruct((n_pad, C), out_dtype),
                   jax.ShapeDtypeStruct((3, n_pad, C), out_dtype)),
        grid_spec=pltpu.PrefetchScalarGridSpec(
            num_scalar_prefetch=0,
            grid=grid,
            in_specs=[
                pl.BlockSpec((tile_n, H), lambda i: (i, 0)),        # x
                pl.BlockSpec((3, tile_n, H), lambda i: (0, i, 0)),  # vec (cm)
                pl.BlockSpec((H, H), const),                        # W1.T
                pl.BlockSpec((H, C), const),                        # W2.T
                pl.BlockSpec((H, H), const),                        # U0[:, :H].T
                pl.BlockSpec((H, H), const),                        # U0[:, H:].T
                pl.BlockSpec((1, H), const),                        # b0
                pl.BlockSpec((H, 2 * C), const),                    # U2.T (fused)
                pl.BlockSpec((1, 2 * C), const),                    # b2 (fused)
            ],
            out_specs=[
                pl.BlockSpec((tile_n, C), lambda i: (i, 0)),        # x_out
                pl.BlockSpec((3, tile_n, C), lambda i: (0, i, 0)),  # v_out (cm)
            ],
        ),
        compiler_params=pltpu.CompilerParams(
            dimension_semantics=("parallel",)),
    )(x, vec_cm, w1t, w2t, u0at, u0bt, b0r, u2t, b2r)

    return x_full[:N], v_full[:, :N]


def gated_equivariant_block(x, vec, packed, **kw):
    """PyTorch-layout convenience wrapper: vec (N, 3, H) -> v_out (N, 3, C).

    Prefer `gated_equivariant_block_cm` when chaining blocks — the transposes
    here cost an extra HBM pass over the largest tensors.
    """
    x_out, v_cm = gated_equivariant_block_cm(
        x, jnp.transpose(vec, (1, 0, 2)), packed, **kw)
    return x_out, jnp.transpose(v_cm, (1, 0, 2))


# ----------------------------------------------------------------------------
# Parameter construction / packing / pure-JAX reference
# ----------------------------------------------------------------------------

def _xavier_uniform(key, shape):
    fan_out, fan_in = shape
    limit = math.sqrt(6.0 / (fan_in + fan_out))
    return jax.random.uniform(key, shape, jnp.float32, -limit, limit)


def _make_params(key, hidden, out_channels):
    k1, k2, k3, k4, k5, k6 = jax.random.split(key, 6)
    W1 = _xavier_uniform(k1, (hidden, hidden))               # vec1_proj.weight
    W2 = _xavier_uniform(k2, (out_channels, hidden))         # vec2_proj.weight
    U0 = _xavier_uniform(k3, (hidden, 2 * hidden))           # update_net[0].weight
    b0 = 0.1 * jax.random.normal(k4, (hidden,), jnp.float32)
    U2 = _xavier_uniform(k5, (2 * out_channels, hidden))     # update_net[2].weight
    b2 = 0.1 * jax.random.normal(k6, (2 * out_channels,), jnp.float32)
    return W1, W2, U0, b0, U2, b2


def _pack_params(W1, W2, U0, b0, U2, b2, dtype=jnp.bfloat16):
    H = W1.shape[0]
    C = W2.shape[0]
    return (
        W1.T.astype(dtype),                 # (H, H)
        W2.T.astype(dtype),                 # (H, C)
        U0[:, :H].T.astype(dtype),          # (H, H)   "x" half of Linear(2H->H)
        U0[:, H:].T.astype(dtype),          # (H, H)   "vec1" half
        b0.reshape(1, H).astype(jnp.float32),
        U2.T.astype(dtype),                 # (H, 2C)  fused gate weight
        b2.reshape(1, 2 * C).astype(jnp.float32),
    )


def _reference(x, vec, W1, W2, U0, b0, U2, b2, C):
    # Pure-JAX replica of GatedEquivariantBlock.forward; vec: (N, 3, H)
    v1 = jnp.einsum("ndh,kh->ndk", vec, W1)                  # (N, 3, H)
    vec1 = jnp.sqrt(jnp.sum(v1 * v1, axis=-2))               # (N, H)
    vec2 = jnp.einsum("ndh,oh->ndo", vec, W2)                # (N, 3, C)
    cat = jnp.concatenate([x, vec1], axis=-1)                # (N, 2H)
    hid = jax.nn.silu(cat @ U0.T + b0)                       # (N, H)
    out2 = hid @ U2.T + b2                                   # (N, 2C)
    xs, vs = out2[:, :C], out2[:, C:]
    return jax.nn.silu(xs), vs[:, None, :] * vec2


def _assert_close(got, want, name, tol=2e-2):
    err = float(jnp.max(jnp.abs(got - want)))
    scale = float(jnp.max(jnp.abs(want))) + 1e-6
    assert err <= tol * scale, f"{name}: max abs err {err:.4e}, scale {scale:.4e}"


if __name__ == "__main__":
    N, H, C = 512, 32, 16
    key = jax.random.PRNGKey(0)
    kx, kv, kp = jax.random.split(key, 3)

    # Inputs are supplied in bf16 and component-major vec layout — this is the
    # layout LEFTNet hands between stacked blocks, so the kernel path has no
    # extra HBM transpose/cast passes.
    x = jax.random.normal(kx, (N, H), jnp.float32).astype(jnp.bfloat16)
    vec_cm = jax.random.normal(kv, (3, N, H), jnp.float32).astype(jnp.bfloat16)

    W1, W2, U0, b0, U2, b2 = _make_params(kp, H, C)
    packed = _pack_params(W1, W2, U0, b0, U2, b2)

    # --- fast component-major path -----------------------------------------
    x_out, v_out_cm = gated_equivariant_block_cm(x, vec_cm, packed)
    x_out, v_out_cm = jax.block_until_ready((x_out, v_out_cm))
    assert x_out.shape == (N, C) and v_out_cm.shape == (3, N, C)

    # Reference computed on the same bf16-rounded inputs/weights, in f32.
    up = lambda w: w.astype(jnp.bfloat16).astype(jnp.float32)
    xf = x.astype(jnp.float32)
    vecf = jnp.transpose(vec_cm, (1, 0, 2)).astype(jnp.float32)   # (N, 3, H)
    x_ref, v_ref = _reference(xf, vecf, up(W1), up(W2), up(U0), b0, up(U2), b2, C)

    _assert_close(x_out.astype(jnp.float32), x_ref, "x_out")
    _assert_close(jnp.transpose(v_out_cm, (1, 0, 2)).astype(jnp.float32),
                  v_ref, "v_out")

    # --- PyTorch-layout convenience wrapper ---------------------------------
    x_out2, v_out2 = gated_equivariant_block(
        x, jnp.transpose(vec_cm, (1, 0, 2)), packed)
    x_out2, v_out2 = jax.block_until_ready((x_out2, v_out2))
    assert x_out2.shape == (N, C) and v_out2.shape == (N, 3, C)
    _assert_close(x_out2.astype(jnp.float32), x_ref, "x_out (torch layout)")
    _assert_close(v_out2.astype(jnp.float32), v_ref, "v_out (torch layout)")

    print("KERNEL_OK")
</pallas_src>

<mosaic_0001>
module attributes {stable_mosaic.version = 11 : i64} {
  func.func @_geb_kernel(%arg0: i32, %arg1: memref<256x32xbf16, #tpu.memory_space<vmem>>, %arg2: memref<3x256x32xbf16, #tpu.memory_space<vmem>>, %arg3: memref<32x32xbf16, #tpu.memory_space<vmem>>, %arg4: memref<32x16xbf16, #tpu.memory_space<vmem>>, %arg5: memref<32x32xbf16, #tpu.memory_space<vmem>>, %arg6: memref<32x32xbf16, #tpu.memory_space<vmem>>, %arg7: memref<1x32xf32, #tpu.memory_space<vmem>>, %arg8: memref<32x32xbf16, #tpu.memory_space<vmem>>, %arg9: memref<1x32xf32, #tpu.memory_space<vmem>>, %arg10: memref<256x16xf32, #tpu.memory_space<vmem>>, %arg11: memref<3x256x16xf32, #tpu.memory_space<vmem>>) attributes {dimension_semantics = [#tpu.dimension_semantics<parallel>], iteration_bounds = array<i64: 2>, scalar_prefetch = 0 : i64, scratch_operands = 0 : i64, tpu.core_type = #tpu.core_type<tc>, window_params = [{transform_indices = @transform_0, window_bounds = array<i64: 256, 32>}, {transform_indices = @transform_1, window_bounds = array<i64: 3, 256, 32>}, {pipeline_mode = #tpu.pipeline_mode<synchronous>, transform_indices = @transform_2, window_bounds = array<i64: 32, 32>}, {pipeline_mode = #tpu.pipeline_mode<synchronous>, transform_indices = @transform_3, window_bounds = array<i64: 32, 16>}, {pipeline_mode = #tpu.pipeline_mode<synchronous>, transform_indices = @transform_4, window_bounds = array<i64: 32, 32>}, {pipeline_mode = #tpu.pipeline_mode<synchronous>, transform_indices = @transform_5, window_bounds = array<i64: 32, 32>}, {pipeline_mode = #tpu.pipeline_mode<synchronous>, transform_indices = @transform_6, window_bounds = array<i64: 1, 32>}, {pipeline_mode = #tpu.pipeline_mode<synchronous>, transform_indices = @transform_7, window_bounds = array<i64: 32, 32>}, {pipeline_mode = #tpu.pipeline_mode<synchronous>, transform_indices = @transform_8, window_bounds = array<i64: 1, 32>}, {transform_indices = @transform_9, window_bounds = array<i64: 256, 16>}, {transform_indices = @transform_10, window_bounds = array<i64: 3, 256, 16>}]} {
    %c0 = arith.constant 0 : index
    %c0_0 = arith.constant 0 : index
    %0 = vector.load %arg1[%c0, %c0_0] : memref<256x32xbf16, #tpu.memory_space<vmem>>, vector<256x32xbf16>
    %c0_1 = arith.constant 0 : index
    %c0_2 = arith.constant 0 : index
    %c0_3 = arith.constant 0 : index
    %1 = vector.load %arg2[%c0_1, %c0_2, %c0_3] : memref<3x256x32xbf16, #tpu.memory_space<vmem>>, vector<3x256x32xbf16>
    %2 = vector.shape_cast %1 : vector<3x256x32xbf16> to vector<768x32xbf16>
    %c0_4 = arith.constant 0 : index
    %c0_5 = arith.constant 0 : index
    %3 = vector.load %arg3[%c0_4, %c0_5] : memref<32x32xbf16, #tpu.memory_space<vmem>>, vector<32x32xbf16>
    %cst = arith.constant dense<0.000000e+00> : vector<768x32xf32>
    %4 = tpu.matmul %2, %3, %cst {dimension_numbers = #tpu.dot_dimension_numbers<[1], [0], [0], [1], [0, 0, 1, 1], [], []>} : vector<768x32xbf16>, vector<32x32xbf16>, vector<768x32xf32> -> vector<768x32xf32>
    %5 = vector.extract_strided_slice %4 {offsets = [0, 0], sizes = [256, 32], strides = [1, 1]} : vector<768x32xf32> to vector<256x32xf32>
    %6 = vector.extract_strided_slice %4 {offsets = [256, 0], sizes = [256, 32], strides = [1, 1]} : vector<768x32xf32> to vector<256x32xf32>
    %7 = vector.extract_strided_slice %4 {offsets = [512, 0], sizes = [256, 32], strides = [1, 1]} : vector<768x32xf32> to vector<256x32xf32>
    %8 = arith.mulf %5, %5 : vector<256x32xf32>
    %9 = arith.mulf %6, %6 : vector<256x32xf32>
    %10 = arith.addf %8, %9 : vector<256x32xf32>
    %11 = arith.mulf %7, %7 : vector<256x32xf32>
    %12 = arith.addf %10, %11 : vector<256x32xf32>
    %13 = math.sqrt %12 : vector<256x32xf32>
    %c0_6 = arith.constant 0 : index
    %c0_7 = arith.constant 0 : index
    %14 = vector.load %arg5[%c0_6, %c0_7] : memref<32x32xbf16, #tpu.memory_space<vmem>>, vector<32x32xbf16>
    %cst_8 = arith.constant dense<0.000000e+00> : vector<256x32xf32>
    %15 = tpu.matmul %0, %14, %cst_8 {dimension_numbers = #tpu.dot_dimension_numbers<[1], [0], [0], [1], [0, 0, 1, 1], [], []>} : vector<256x32xbf16>, vector<32x32xbf16>, vector<256x32xf32> -> vector<256x32xf32>
    %16 = arith.truncf %13 : vector<256x32xf32> to vector<256x32xbf16>
    %c0_9 = arith.constant 0 : index
    %c0_10 = arith.constant 0 : index
    %17 = vector.load %arg6[%c0_9, %c0_10] : memref<32x32xbf16, #tpu.memory_space<vmem>>, vector<32x32xbf16>
    %cst_11 = arith.constant dense<0.000000e+00> : vector<256x32xf32>
    %18 = tpu.matmul %16, %17, %cst_11 {dimension_numbers = #tpu.dot_dimension_numbers<[1], [0], [0], [1], [0, 0, 1, 1], [], []>} : vector<256x32xbf16>, vector<32x32xbf16>, vector<256x32xf32> -> vector<256x32xf32>
    %19 = arith.addf %15, %18 : vector<256x32xf32>
    %c0_12 = arith.constant 0 : index
    %c0_13 = arith.constant 0 : index
    %20 = vector.load %arg7[%c0_12, %c0_13] : memref<1x32xf32, #tpu.memory_space<vmem>>, vector<1x32xf32>
    %21 = vector.broadcast %20 : vector<1x32xf32> to vector<256x32xf32>
    %22 = arith.addf %19, %21 : vector<256x32xf32>
    %23 = arith.negf %22 : vector<256x32xf32>
    %24 = math.exp %23 : vector<256x32xf32>
    %cst_14 = arith.constant 1.000000e+00 : f32
    %25 = vector.broadcast %cst_14 : f32 to vector<256x32xf32>
    %26 = arith.addf %25, %24 : vector<256x32xf32>
    %27 = arith.divf %25, %26 : vector<256x32xf32>
    %28 = arith.mulf %22, %27 : vector<256x32xf32>
    %29 = arith.truncf %28 : vector<256x32xf32> to vector<256x32xbf16>
    %c0_15 = arith.constant 0 : index
    %c0_16 = arith.constant 0 : index
    %30 = vector.load %arg8[%c0_15, %c0_16] : memref<32x32xbf16, #tpu.memory_space<vmem>>, vector<32x32xbf16>
    %cst_17 = arith.constant dense<0.000000e+00> : vector<256x32xf32>
    %31 = tpu.matmul %29, %30, %cst_17 {dimension_numbers = #tpu.dot_dimension_numbers<[1], [0], [0], [1], [0, 0, 1, 1], [], []>} : vector<256x32xbf16>, vector<32x32xbf16>, vector<256x32xf32> -> vector<256x32xf32>
    %c0_18 = arith.constant 0 : index
    %c0_19 = arith.constant 0 : index
    %32 = vector.load %arg9[%c0_18, %c0_19] : memref<1x32xf32, #tpu.memory_space<vmem>>, vector<1x32xf32>
    %33 = vector.broadcast %32 : vector<1x32xf32> to vector<256x32xf32>
    %34 = arith.addf %31, %33 : vector<256x32xf32>
    %35 = vector.extract_strided_slice %34 {offsets = [0, 0], sizes = [256, 16], strides = [1, 1]} : vector<256x32xf32> to vector<256x16xf32>
    %36 = vector.extract_strided_slice %34 {offsets = [0, 16], sizes = [256, 16], strides = [1, 1]} : vector<256x32xf32> to vector<256x16xf32>
    %37 = arith.negf %35 : vector<256x16xf32>
    %38 = math.exp %37 : vector<256x16xf32>
    %cst_20 = arith.constant 1.000000e+00 : f32
    %39 = vector.broadcast %cst_20 : f32 to vector<256x16xf32>
    %40 = arith.addf %39, %38 : vector<256x16xf32>
    %41 = arith.divf %39, %40 : vector<256x16xf32>
    %42 = arith.mulf %35, %41 : vector<256x16xf32>
    %c0_21 = arith.constant 0 : index
    %c0_22 = arith.constant 0 : index
    %43 = vector.load %arg10[%c0_21, %c0_22] : memref<256x16xf32, #tpu.memory_space<vmem>>, vector<256x16xf32>
    tpu.vector_store %arg10[%c0_21, %c0_22], %42 {strides = array<i32>} : memref<256x16xf32, #tpu.memory_space<vmem>>, vector<256x16xf32>,
    %c0_23 = arith.constant 0 : index
    %c0_24 = arith.constant 0 : index
    %44 = vector.load %arg4[%c0_23, %c0_24] : memref<32x16xbf16, #tpu.memory_space<vmem>>, vector<32x16xbf16>
    %cst_25 = arith.constant dense<0.000000e+00> : vector<768x16xf32>
    %45 = tpu.matmul %2, %44, %cst_25 {dimension_numbers = #tpu.dot_dimension_numbers<[1], [0], [0], [1], [0, 0, 1, 1], [], []>} : vector<768x32xbf16>, vector<32x16xbf16>, vector<768x16xf32> -> vector<768x16xf32>
    %46 = vector.extract_strided_slice %45 {offsets = [0, 0], sizes = [256, 16], strides = [1, 1]} : vector<768x16xf32> to vector<256x16xf32>
    %47 = arith.mulf %36, %46 : vector<256x16xf32>
    %c0_26 = arith.constant 0 : index
    %c0_27 = arith.constant 0 : index
    %c0_28 = arith.constant 0 : index
    %48 = vector.load %arg11[%c0_26, %c0_27, %c0_28] : memref<3x256x16xf32, #tpu.memory_space<vmem>>, vector<1x256x16xf32>
    %49 = vector.shape_cast %48 : vector<1x256x16xf32> to vector<256x16xf32>
    %50 = vector.shape_cast %47 : vector<256x16xf32> to vector<1x256x16xf32>
    tpu.vector_store %arg11[%c0_26, %c0_27, %c0_28], %50 {strides = array<i32>} : memref<3x256x16xf32, #tpu.memory_space<vmem>>, vector<1x256x16xf32>,
    %51 = vector.extract_strided_slice %45 {offsets = [256, 0], sizes = [256, 16], strides = [1, 1]} : vector<768x16xf32> to vector<256x16xf32>
    %52 = arith.mulf %36, %51 : vector<256x16xf32>
    %c1 = arith.constant 1 : index
    %c0_29 = arith.constant 0 : index
    %c0_30 = arith.constant 0 : index
    %53 = vector.load %arg11[%c1, %c0_29, %c0_30] : memref<3x256x16xf32, #tpu.memory_space<vmem>>, vector<1x256x16xf32>
    %54 = vector.shape_cast %53 : vector<1x256x16xf32> to vector<256x16xf32>
    %55 = vector.shape_cast %52 : vector<256x16xf32> to vector<1x256x16xf32>
    tpu.vector_store %arg11[%c1, %c0_29, %c0_30], %55 {strides = array<i32>} : memref<3x256x16xf32, #tpu.memory_space<vmem>>, vector<1x256x16xf32>,
    %56 = vector.extract_strided_slice %45 {offsets = [512, 0], sizes = [256, 16], strides = [1, 1]} : vector<768x16xf32> to vector<256x16xf32>
    %57 = arith.mulf %36, %56 : vector<256x16xf32>
    %c2 = arith.constant 2 : index
    %c0_31 = arith.constant 0 : index
    %c0_32 = arith.constant 0 : index
    %58 = vector.load %arg11[%c2, %c0_31, %c0_32] : memref<3x256x16xf32, #tpu.memory_space<vmem>>, vector<1x256x16xf32>
    %59 = vector.shape_cast %58 : vector<1x256x16xf32> to vector<256x16xf32>
    %60 = vector.shape_cast %57 : vector<256x16xf32> to vector<1x256x16xf32>
    tpu.vector_store %arg11[%c2, %c0_31, %c0_32], %60 {strides = array<i32>} : memref<3x256x16xf32, #tpu.memory_space<vmem>>, vector<1x256x16xf32>,
    return
  }
  func.func @transform_0(%arg0: i32) -> (i32, i32) {
    %c0_i32 = arith.constant 0 : i32
    %c0_i32_0 = arith.constant 0 : i32
    return %arg0, %c0_i32 : i32, i32
  }
  func.func @transform_1(%arg0: i32) -> (i32, i32, i32) {
    %c0_i32 = arith.constant 0 : i32
    %c0_i32_0 = arith.constant 0 : i32
    %c0_i32_1 = arith.constant 0 : i32
    return %c0_i32, %arg0, %c0_i32_0 : i32, i32, i32
  }
  func.func @transform_2(%arg0: i32) -> (i32, i32) {
    %c0_i32 = arith.constant 0 : i32
    %c0_i32_0 = arith.constant 0 : i32
    %c0_i32_1 = arith.constant 0 : i32
    return %c0_i32, %c0_i32_0 : i32, i32
  }
  func.func @transform_3(%arg0: i32) -> (i32, i32) {
    %c0_i32 = arith.constant 0 : i32
    %c0_i32_0 = arith.constant 0 : i32
    %c0_i32_1 = arith.constant 0 : i32
    return %c0_i32, %c0_i32_0 : i32, i32
  }
  func.func @transform_4(%arg0: i32) -> (i32, i32) {
    %c0_i32 = arith.constant 0 : i32
    %c0_i32_0 = arith.constant 0 : i32
    %c0_i32_1 = arith.constant 0 : i32
    return %c0_i32, %c0_i32_0 : i32, i32
  }
  func.func @transform_5(%arg0: i32) -> (i32, i32) {
    %c0_i32 = arith.constant 0 : i32
    %c0_i32_0 = arith.constant 0 : i32
    %c0_i32_1 = arith.constant 0 : i32
    return %c0_i32, %c0_i32_0 : i32, i32
  }
  func.func @transform_6(%arg0: i32) -> (i32, i32) {
    %c0_i32 = arith.constant 0 : i32
    %c0_i32_0 = arith.constant 0 : i32
    %c0_i32_1 = arith.constant 0 : i32
    return %c0_i32, %c0_i32_0 : i32, i32
  }
  func.func @transform_7(%arg0: i32) -> (i32, i32) {
    %c0_i32 = arith.constant 0 : i32
    %c0_i32_0 = arith.constant 0 : i32
    %c0_i32_1 = arith.constant 0 : i32
    return %c0_i32, %c0_i32_0 : i32, i32
  }
  func.func @transform_8(%arg0: i32) -> (i32, i32) {
    %c0_i32 = arith.constant 0 : i32
    %c0_i32_0 = arith.constant 0 : i32
    %c0_i32_1 = arith.constant 0 : i32
    return %c0_i32, %c0_i32_0 : i32, i32
  }
  func.func @transform_9(%arg0: i32) -> (i32, i32) {
    %c0_i32 = arith.constant 0 : i32
    %c0_i32_0 = arith.constant 0 : i32
    return %arg0, %c0_i32 : i32, i32
  }
  func.func @transform_10(%arg0: i32) -> (i32, i32, i32) {
    %c0_i32 = arith.constant 0 : i32
    %c0_i32_0 = arith.constant 0 : i32
    %c0_i32_1 = arith.constant 0 : i32
    return %c0_i32, %arg0, %c0_i32_0 : i32, i32, i32
  }
}

</mosaic_0001>

<bundles_post_ra>
// kernel: tpu_custom_call.1
= control target key start
LH: loop header
LB: loop body
LE: loop exit
PB: predicated region body
PF: predicated region fallthrough
CT: control target
= control target key end

     0   :  { %s6769_s13 = smov 0   ;;  %s6771_s14 = smov 0   ;;  %s9427_s0 = inlined_call_operand.vmem [shape: bf16[512,32], index: 0, kind: input, shape index: {}]   ;;  %s9428_s1 = inlined_call_operand.vmem [shape: bf16[3,512,32], index: 1, kind: input, shape index: {}]   ;;  %s9429_s2 = inlined_call_operand.vmem [shape: bf16[32,32], index: 2, kind: input, shape index: {}]   ;;  %s9430_s3 = inlined_call_operand.vmem [shape: bf16[32,16], index: 3, kind: input, shape index: {}]   ;;  %s9431_s4 = inlined_call_operand.vmem [shape: bf16[32,32], index: 4, kind: input, shape index: {}]   ;;  %s9432_s5 = inlined_call_operand.vmem [shape: bf16[32,32], index: 5, kind: input, shape index: {}]   ;;  %s9433_s6 = inlined_call_operand.vmem [shape: f32[1,32], index: 6, kind: input, shape index: {}]   ;;  %s9434_s7 = inlined_call_operand.vmem [shape: bf16[32,32], index: 7, kind: input, shape index: {}]   ;;  %s9435_s8 = inlined_call_operand.vmem [shape: f32[1,32], index: 8, kind: input, shape index: {}]   ;;  %s9436_s9 = inlined_call_operand.vmem [shape: f32[512,16], index: 9, kind: output, shape index: {0}]   ;;  %s9437_s10 = inlined_call_operand.vmem [shape: f32[3,512,16], index: 10, kind: output, shape index: {1}]  }
   0x1   :  { %s6773_s15 = smov 0  }
   0x2 LB: > { %s6785_s16 = sadd.s32 4294967295, %s6710_s15   ;;  %s6788_s17 = sadd.s32 1, %s6710_s15   ;;  %s6710_s15 = sphi %s6773_s15, %s9561_s15   ;;  %s6706_s14 = sphi %s6771_s14, %s9560_s14   ;;  %s6702_s13 = sphi %s6769_s13, %s9559_s13  }
   0x3   : > { %s51_s18 = ssub.s32 %s6710_s15, %s6788_s17  ;;  %s54_s19 = sadd.s32 1, %s6706_s14 }
   0x4   : > { %p52_p0 = scmp.eq.s32.totalorder %s51_s18, 0  ;;  %p61_p1 = scmp.ne.s32.totalorder %s6706_s14, %s6702_s13 }
   0x5   : > { %p62_p2 = scmp.eq.s32.totalorder %s6710_s15, 0  ;;  %p264_p3 = scmp.eq.s32.totalorder %s6785_s16, 1 }
   0x6   : > { %s6798_s20 = scalar_select %p52_p0, %s6706_s14, %s54_s19  }
   0x7   : > { %p63_p4 = por %p62_p2, %p61_p1  ;;  %p6800_p5 = por %p264_p3, %p61_p1 }
   0x8   : > { %p5381_p6 = scmp.ge.s32.totalorder %s6710_s15, 2 }
   0xa   : > { %307 = sbr.rel (%p5381_p6) target bundleno = 46 (0x2e), region = 44 }
  0x11   : > { %319 = sbr.rel (!%p63_p4) target bundleno = 46 (0x2e), region = 52  ;;  %s321_s22 = sand.u32 (%p63_p4), 1, %s6706_s14  }
  0x12   : > { %s5741_s23 = sshll.u32 (%p63_p4), %s6710_s15, 7  ;;  %s6241_s24 = smul.u32 (%p63_p4), 384, %s321_s22 }
  0x13   : > { %s6810_s27 = scalar_lea.vmem (%p63_p4), %s9428_s1, %s5741_s23 }
  0x14   : > { %v342_v0 = vld [vmem:[%s6810_s27] sm:$0xff] (%p63_p4)   ;;  %v346_v1 = vld [vmem:[%s6810_s27 + $0x8] sm:$0xff] (%p63_p4)   ;;  %v350_v2 = vld [vmem:[%s6810_s27 + $0x10] sm:$0xff] (%p63_p4)   ;;  %s6818_s28 = scalar_lea.vmem (%p63_p4), [#allocation2], %s6241_s24 }
  0x15   : > { %v354_v3 = vld [vmem:[%s6810_s27 + $0x18] sm:$0xff] (%p63_p4)   ;;  %v358_v4 = vld [vmem:[%s6810_s27 + $0x20] sm:$0xff] (%p63_p4)   ;;  %v362_v5 = vld [vmem:[%s6810_s27 + $0x28] sm:$0xff] (%p63_p4)   ;;  %343 = vst [vmem:[%s6818_s28] sm:$0xff] (%p63_p4), %v342_v0  }
  0x16   : > { %347 = vst [vmem:[%s6818_s28 + $0x8] sm:$0xff] (%p63_p4), %v346_v1   ;;  %351 = vst [vmem:[%s6818_s28 + $0x10] sm:$0xff] (%p63_p4), %v350_v2   ;;  %v366_v6 = vld [vmem:[%s6810_s27 + $0x30] sm:$0xff] (%p63_p4)   ;;  %v370_v7 = vld [vmem:[%s6810_s27 + $0x38] sm:$0xff] (%p63_p4)  }
  0x17   : > { %355 = vst [vmem:[%s6818_s28 + $0x18] sm:$0xff] (%p63_p4), %v354_v3   ;;  %359 = vst [vmem:[%s6818_s28 + $0x20] sm:$0xff] (%p63_p4), %v358_v4   ;;  %v374_v8 = vld [vmem:[%s6810_s27 + $0x40] sm:$0xff] (%p63_p4)   ;;  %v378_v9 = vld [vmem:[%s6810_s27 + $0x48] sm:$0xff] (%p63_p4)  }
  0x18   : > { %363 = vst [vmem:[%s6818_s28 + $0x28] sm:$0xff] %v362_v5   ;;  %367 = vst [vmem:[%s6818_s28 + $0x30] sm:$0xff] %v366_v6   ;;  %v382_v10 = vld [vmem:[%s6810_s27 + $0x50] sm:$0xff]   ;;  %v386_v11 = vld [vmem:[%s6810_s27 + $0x58] sm:$0xff]  }
  0x19   : > { %371 = vst [vmem:[%s6818_s28 + $0x38] sm:$0xff] %v370_v7   ;;  %375 = vst [vmem:[%s6818_s28 + $0x40] sm:$0xff] %v374_v8   ;;  %v390_v12 = vld [vmem:[%s6810_s27 + $0x60] sm:$0xff]   ;;  %v394_v13 = vld [vmem:[%s6810_s27 + $0x68] sm:$0xff]  }
  0x1a   : > { %379 = vst [vmem:[%s6818_s28 + $0x48] sm:$0xff] %v378_v9   ;;  %383 = vst [vmem:[%s6818_s28 + $0x50] sm:$0xff] %v382_v10   ;;  %v398_v14 = vld [vmem:[%s6810_s27 + $0x70] sm:$0xff]   ;;  %v402_v15 = vld [vmem:[%s6810_s27 + $0x78] sm:$0xff]  }
  0x1b   : > { %387 = vst [vmem:[%s6818_s28 + $0x58] sm:$0xff] %v386_v11   ;;  %391 = vst [vmem:[%s6818_s28 + $0x60] sm:$0xff] %v390_v12   ;;  %v406_v16 = vld [vmem:[%s6810_s27 + $0x100] sm:$0xff]   ;;  %v410_v17 = vld [vmem:[%s6810_s27 + $0x108] sm:$0xff]  }
  0x1c   : > { %395 = vst [vmem:[%s6818_s28 + $0x68] sm:$0xff] %v394_v13   ;;  %399 = vst [vmem:[%s6818_s28 + $0x70] sm:$0xff] %v398_v14   ;;  %v414_v18 = vld [vmem:[%s6810_s27 + $0x110] sm:$0xff]   ;;  %v418_v19 = vld [vmem:[%s6810_s27 + $0x118] sm:$0xff]  }
  0x1d   : > { %403 = vst [vmem:[%s6818_s28 + $0x78] sm:$0xff] %v402_v15   ;;  %407 = vst [vmem:[%s6818_s28 + $0x80] sm:$0xff] %v406_v16   ;;  %v422_v20 = vld [vmem:[%s6810_s27 + $0x120] sm:$0xff]   ;;  %v426_v21 = vld [vmem:[%s6810_s27 + $0x128] sm:$0xff]  }
  0x1e   : > { %411 = vst [vmem:[%s6818_s28 + $0x88] sm:$0xff] %v410_v17   ;;  %415 = vst [vmem:[%s6818_s28 + $0x90] sm:$0xff] %v414_v18   ;;  %v430_v22 = vld [vmem:[%s6810_s27 + $0x130] sm:$0xff]   ;;  %v434_v23 = vld [vmem:[%s6810_s27 + $0x138] sm:$0xff]  }
  0x1f   : > { %419 = vst [vmem:[%s6818_s28 + $0x98] sm:$0xff] %v418_v19   ;;  %423 = vst [vmem:[%s6818_s28 + $0xa0] sm:$0xff] %v422_v20   ;;  %v438_v24 = vld [vmem:[%s6810_s27 + $0x140] sm:$0xff]   ;;  %v442_v25 = vld [vmem:[%s6810_s27 + $0x148] sm:$0xff]  }
  0x20   : > { %427 = vst [vmem:[%s6818_s28 + $0xa8] sm:$0xff] %v426_v21   ;;  %431 = vst [vmem:[%s6818_s28 + $0xb0] sm:$0xff] %v430_v22   ;;  %v446_v26 = vld [vmem:[%s6810_s27 + $0x150] sm:$0xff]   ;;  %v450_v27 = vld [vmem:[%s6810_s27 + $0x158] sm:$0xff]  }
  0x21   : > { %435 = vst [vmem:[%s6818_s28 + $0xb8] sm:$0xff] %v434_v23   ;;  %439 = vst [vmem:[%s6818_s28 + $0xc0] sm:$0xff] %v438_v24   ;;  %v454_v28 = vld [vmem:[%s6810_s27 + $0x160] sm:$0xff]   ;;  %v458_v29 = vld [vmem:[%s6810_s27 + $0x168] sm:$0xff]  }
  0x22   : > { %443 = vst [vmem:[%s6818_s28 + $0xc8] sm:$0xff] %v442_v25   ;;  %447 = vst [vmem:[%s6818_s28 + $0xd0] sm:$0xff] %v446_v26   ;;  %v462_v30 = vld [vmem:[%s6810_s27 + $0x170] sm:$0xff]   ;;  %v466_v31 = vld [vmem:[%s6810_s27 + $0x178] sm:$0xff]  }
  0x23   : > { %451 = vst [vmem:[%s6818_s28 + $0xd8] sm:$0xff] %v450_v27   ;;  %455 = vst [vmem:[%s6818_s28 + $0xe0] sm:$0xff] %v454_v28   ;;  %v470_v32 = vld [vmem:[%s6810_s27 + $0x200] sm:$0xff]   ;;  %v474_v33 = vld [vmem:[%s6810_s27 + $0x208] sm:$0xff]  }
  0x24   : > { %459 = vst [vmem:[%s6818_s28 + $0xe8] sm:$0xff] %v458_v29   ;;  %463 = vst [vmem:[%s6818_s28 + $0xf0] sm:$0xff] %v462_v30   ;;  %v478_v34 = vld [vmem:[%s6810_s27 + $0x210] sm:$0xff]   ;;  %v482_v35 = vld [vmem:[%s6810_s27 + $0x218] sm:$0xff]  }
  0x25   : > { %467 = vst [vmem:[%s6818_s28 + $0xf8] sm:$0xff] %v466_v31   ;;  %471 = vst [vmem:[%s6818_s28 + $0x100] sm:$0xff] %v470_v32   ;;  %v486_v36 = vld [vmem:[%s6810_s27 + $0x220] sm:$0xff]   ;;  %v490_v37 = vld [vmem:[%s6810_s27 + $0x228] sm:$0xff]  }
  0x26   : > { %475 = vst [vmem:[%s6818_s28 + $0x108] sm:$0xff] %v474_v33   ;;  %479 = vst [vmem:[%s6818_s28 + $0x110] sm:$0xff] %v478_v34   ;;  %v494_v38 = vld [vmem:[%s6810_s27 + $0x230] sm:$0xff]   ;;  %v498_v39 = vld [vmem:[%s6810_s27 + $0x238] sm:$0xff]  }
  0x27   : > { %483 = vst [vmem:[%s6818_s28 + $0x118] sm:$0xff] %v482_v35   ;;  %487 = vst [vmem:[%s6818_s28 + $0x120] sm:$0xff] %v486_v36   ;;  %v502_v40 = vld [vmem:[%s6810_s27 + $0x240] sm:$0xff]   ;;  %v506_v41 = vld [vmem:[%s6810_s27 + $0x248] sm:$0xff]  }
  0x28   : > { %491 = vst [vmem:[%s6818_s28 + $0x128] sm:$0xff] %v490_v37   ;;  %495 = vst [vmem:[%s6818_s28 + $0x130] sm:$0xff] %v494_v38   ;;  %v510_v42 = vld [vmem:[%s6810_s27 + $0x250] sm:$0xff]   ;;  %v514_v43 = vld [vmem:[%s6810_s27 + $0x258] sm:$0xff]  }
  0x29   : > { %499 = vst [vmem:[%s6818_s28 + $0x138] sm:$0xff] %v498_v39   ;;  %503 = vst [vmem:[%s6818_s28 + $0x140] sm:$0xff] %v502_v40   ;;  %v518_v44 = vld [vmem:[%s6810_s27 + $0x260] sm:$0xff]   ;;  %v522_v45 = vld [vmem:[%s6810_s27 + $0x268] sm:$0xff]  }
  0x2a   : > { %507 = vst [vmem:[%s6818_s28 + $0x148] sm:$0xff] %v506_v41   ;;  %511 = vst [vmem:[%s6818_s28 + $0x150] sm:$0xff] %v510_v42   ;;  %v526_v46 = vld [vmem:[%s6810_s27 + $0x270] sm:$0xff]   ;;  %v530_v47 = vld [vmem:[%s6810_s27 + $0x278] sm:$0xff]  }
  0x2b   : > { %515 = vst [vmem:[%s6818_s28 + $0x158] sm:$0xff] %v514_v43   ;;  %519 = vst [vmem:[%s6818_s28 + $0x160] sm:$0xff] %v518_v44  }
  0x2c   : > { %523 = vst [vmem:[%s6818_s28 + $0x168] sm:$0xff] %v522_v45   ;;  %527 = vst [vmem:[%s6818_s28 + $0x170] sm:$0xff] %v526_v46  }
  0x2d   : > { %531 = vst [vmem:[%s6818_s28 + $0x178] sm:$0xff] %v530_v47  }
  0x2e PF: > { %p5384_p7 = scmp.ge.s32.totalorder %s6710_s15, 1  ;;  %p747_p8 = scmp.lt.s32.totalorder %s6710_s15, 3 }
  0x30   : > { %p748_p9 = pnand %p5384_p7, %p747_p8 }
  0x32   : > { %751 = sbr.rel (%p748_p9) target bundleno = 1225 (0x4c9), region = 93 }
  0x39   : > { %v6270_v48 = vld [vmem:[%s9429_s2] sm:$0xff]   ;;  %s754_s11 = sand.u32 1, %s6702_s13   ;;  %v6271_v49 = vld [vmem:[%s9429_s2 + $0x8] sm:$0xff]   ;;  %vm1199_vm0 = vcmask 261120   ;;  %s5385_s18 = sshll.u32 %s6785_s16, 5 }
  0x3a   : > { %s6242_s19 = smul.u32 384, %s754_s11  ;;  %5897 = vmatprep.subr.bf16.mxu0 %v6270_v48  ;;  %6205 = vmatprep.subr.bf16.mxu1 %v6270_v48  ;;  %v6320_v50 = vld [vmem:[%s9432_s5] sm:$0xff]   ;;  %v6321_v35 = vld [vmem:[%s9432_s5 + $0x8] sm:$0xff]   ;;  %p801_p10 = scmp.lt.s32.totalorder %s5385_s18, 63 }
  0x3b   : > { %5898 = vmatpush3.bf16.msra.mxu0 %v6270_v48  ;;  %6207 = vmatpush3.bf16.msra.mxu1 %v6270_v48  ;;  %v6322_v36 = vld [vmem:[%s9430_s3] sm:$0xff]   ;;  %v6324_v40 = vld [vmem:[%s9430_s3 + $0x8] sm:$0xff]   ;;  %s6712_s30 = smov 16   ;;  %s6243_s28 = smul.u32 768, %s754_s11 }
  0x3c   : > { %5899 = vmatprep.subr.bf16.mxu0 %v6271_v49  ;;  %6206 = vmatprep.subr.bf16.mxu1 %v6271_v49  ;;  %s6924_s23 = scalar_lea.vmem [#allocation2], %s6242_s19  ;;  %v7105_v37 = vld [vmem:[%s9431_s4] sm:$0xff]   ;;  %s9563_s18 = smov (!%p801_p10, %s5385_s18), 63 }
  0x3d   : > { %v6927_v51 = vld [vmem:[%s6924_s23] sm:$0xff]   ;;  %v6933_v53 = vld [vmem:[%s6924_s23 + $0x8] sm:$0xff]   ;;  %v6938_v55 = vld [vmem:[%s6924_s23 + $0x10] sm:$0xff]   ;;  %9446 = vst [vmem:[#allocation7_spill] sm:$0xff] %v7105_v37  ;;  %s5386_s19 = sshll.u32 %s9563_s18, 2  ;;  %s5388_s25 = sshll.u32 %s9563_s18, 3 }
  0x3e   : > { %v6273_v52 = vld [vmem:[%s6924_s23 + $0xc0] sm:$0xff]   ;;  %5901 = vmatprep.mubr.msk.bf16.mxu0 %vm1199_vm0, %v6927_v51  ;;  %v6275_v54 = vld [vmem:[%s6924_s23 + $0xc8] sm:$0xff]   ;;  %v6277_v56 = vld [vmem:[%s6924_s23 + $0xd0] sm:$0xff]   ;;  %s7196_s24 = scalar_lea.vmem %s9427_s0, %s5386_s19  ;;  %s8575_s27 = scalar_lea.vmem %s9436_s9, %s5388_s25 }
  0x3f   : > { %5900 = vmatpush3.bf16.msra.mxu0 %v6271_v49  ;;  %6208 = vmatpush3.bf16.msra.mxu1 %v6271_v49  ;;  %v6948_v57 = vld [vmem:[%s6924_s23 + $0x18] sm:$0xff]   ;;  %v6952_v59 = vld [vmem:[%s6924_s23 + $0x20] sm:$0xff]   ;;  %v6962_v61 = vld [vmem:[%s6924_s23 + $0x28] sm:$0xff]   ;;  %s5742_s13 = sshll.u32 (%p6800_p5), %s6785_s16, 8 }
  0x40   : > { %5949 = vmatprep.mubr.msk.bf16.mxu1 %vm1199_vm0, %v6273_v52  ;;  %5997 = vmatprep.subr.bf16.mxu1 %v6320_v50  ;;  %v6279_v58 = vld [vmem:[%s6924_s23 + $0xd8] sm:$0xff]   ;;  %v6281_v60 = vld [vmem:[%s6924_s23 + $0xe0] sm:$0xff]   ;;  %v6283_v62 = vld [vmem:[%s6924_s23 + $0xe8] sm:$0xff]  }
  0x41   : > { %v6966_v63 = vld [vmem:[%s6924_s23 + $0x30] sm:$0xff]   ;;  %v6976_v1 = vld [vmem:[%s6924_s23 + $0x38] sm:$0xff]   ;;  %v6980_v3 = vld [vmem:[%s6924_s23 + $0x40] sm:$0xff]   ;;  %6105 = vmatprep.subr.bf16.mxu0 %v6322_v36 }
  0x42   : > { %5902 = vmatmul.mubr.msk.bf16.vlgmr.msra.gmra.mrb[0].mxu0 %vm1199_vm0, %v6933_v53  ;;  %5950 = vmatmul.mubr.msk.bf16.vlgmr.msra.gmra.mrb[0].mxu1 %vm1199_vm0, %v6275_v54  ;;  %v6285_v0 = vld [vmem:[%s6924_s23 + $0xf0] sm:$0xff]   ;;  %v6287_v2 = vld [vmem:[%s6924_s23 + $0xf8] sm:$0xff]   ;;  %v6289_v4 = vld [vmem:[%s6924_s23 + $0x100] sm:$0xff]  }
  0x43   : > { %5905 = vmatprep.mubr.msk.bf16.mxu0 %vm1199_vm0, %v6938_v55  ;;  %5953 = vmatprep.mubr.msk.bf16.mxu1 %vm1199_vm0, %v6277_v56  ;;  %v6990_v5 = vld [vmem:[%s6924_s23 + $0x48] sm:$0xff]   ;;  %v6994_v7 = vld [vmem:[%s6924_s23 + $0x50] sm:$0xff]   ;;  %v7004_v9 = vld [vmem:[%s6924_s23 + $0x58] sm:$0xff]  }
  0x44   : > { %5998 = vmatpush3.bf16.msra.mxu1 %v6320_v50  ;;  %v6291_v6 = vld [vmem:[%s6924_s23 + $0x108] sm:$0xff]   ;;  %v6293_v8 = vld [vmem:[%s6924_s23 + $0x110] sm:$0xff]   ;;  %v6295_v10 = vld [vmem:[%s6924_s23 + $0x118] sm:$0xff]   ;;  %6106 = vmatpush3.bf16.msra.mxu0 %v6322_v36 }
  0x45   : > { %v7008_v11 = vld [vmem:[%s6924_s23 + $0x60] sm:$0xff]   ;;  %v7018_v13 = vld [vmem:[%s6924_s23 + $0x68] sm:$0xff]   ;;  %v7022_v15 = vld [vmem:[%s6924_s23 + $0x70] sm:$0xff]   ;;  %5999 = vmatprep.subr.bf16.mxu1 %v6321_v35  ;;  %6107 = vmatprep.subr.bf16.mxu0 %v6324_v40 }
  0x46   : > { %v6297_v12 = vld [vmem:[%s6924_s23 + $0x120] sm:$0xff]   ;;  %v6299_v14 = vld [vmem:[%s6924_s23 + $0x128] sm:$0xff]   ;;  %v6301_v16 = vld [vmem:[%s6924_s23 + $0x130] sm:$0xff]  }
  0x47   : > { %v7032_v17 = vld [vmem:[%s6924_s23 + $0x78] sm:$0xff]   ;;  %v7036_v19 = vld [vmem:[%s6924_s23 + $0x80] sm:$0xff]   ;;  %v7046_v21 = vld [vmem:[%s6924_s23 + $0x88] sm:$0xff]  }
  0x48   : > { %v6303_v18 = vld [vmem:[%s6924_s23 + $0x138] sm:$0xff]   ;;  %v6305_v20 = vld [vmem:[%s6924_s23 + $0x140] sm:$0xff]   ;;  %v6307_v22 = vld [vmem:[%s6924_s23 + $0x148] sm:$0xff]   ;;  %6000 = vmatpush3.bf16.msra.mxu1 %v6321_v35  ;;  %6108 = vmatpush3.bf16.msra.mxu0 %v6324_v40 }
  0x49   : > { %v7050_v23 = vld [vmem:[%s6924_s23 + $0x90] sm:$0xff]   ;;  %v7060_v25 = vld [vmem:[%s6924_s23 + $0x98] sm:$0xff]   ;;  %v7064_v27 = vld [vmem:[%s6924_s23 + $0xa0] sm:$0xff]   ;;  %6033 = vmatprep.subr.bf16.mxu1 %v7105_v37 }
  0x4a   : > { %5906 = vmatmul.mubr.msk.bf16.gmra.mrb[4].mxu0 %vm1199_vm0, %v6948_v57  ;;  %5954 = vmatmul.mubr.msk.bf16.gmra.mrb[4].mxu1 %vm1199_vm0, %v6279_v58  ;;  %v6309_v24 = vld [vmem:[%s6924_s23 + $0x150] sm:$0xff]   ;;  %v6311_v26 = vld [vmem:[%s6924_s23 + $0x158] sm:$0xff]   ;;  %v6313_v28 = vld [vmem:[%s6924_s23 + $0x160] sm:$0xff]  }
  0x4b   : > { %5909 = vmatprep.mubr.msk.bf16.mxu0 %vm1199_vm0, %v6952_v59  ;;  %5957 = vmatprep.mubr.msk.bf16.mxu1 %vm1199_vm0, %v6281_v60  ;;  %v7074_v29 = vld [vmem:[%s6924_s23 + $0xa8] sm:$0xff]   ;;  %v7078_v31 = vld [vmem:[%s6924_s23 + $0xb0] sm:$0xff]   ;;  %v7088_v33 = vld [vmem:[%s6924_s23 + $0xb8] sm:$0xff]  }
  0x4c   : > { %9443 = vst [vmem:[#allocation4_spill] sm:$0xff] %v7074_v29  ;;  %v6315_v30 = vld [vmem:[%s6924_s23 + $0x168] sm:$0xff]   ;;  %9444 = vst [vmem:[#allocation5_spill] sm:$0xff] %v7078_v31  ;;  %v6317_v32 = vld [vmem:[%s6924_s23 + $0x170] sm:$0xff]  }
  0x4d   : > { %9445 = vst [vmem:[#allocation6_spill] sm:$0xff] %v7088_v33  ;;  %v6319_v34 = vld [vmem:[%s6924_s23 + $0x178] sm:$0xff]  }
  0x52   : > { %5910 = vmatmul.mubr.msk.bf16.gmra.mrb[8].mxu0 %vm1199_vm0, %v6962_v61  ;;  %5958 = vmatmul.mubr.msk.bf16.gmra.mrb[8].mxu1 %vm1199_vm0, %v6283_v62 }
  0x53   : > { %5913 = vmatprep.mubr.msk.bf16.mxu0 %vm1199_vm0, %v6966_v63  ;;  %5961 = vmatprep.mubr.msk.bf16.mxu1 %vm1199_vm0, %v6285_v0 }
  0x5a   : > { %5914 = vmatmul.mubr.msk.bf16.gmra.mrb[12].mxu0 %vm1199_vm0, %v6976_v1  ;;  %5962 = vmatmul.mubr.msk.bf16.gmra.mrb[12].mxu1 %vm1199_vm0, %v6287_v2 }
  0x5b   : > { %5917 = vmatprep.mubr.msk.bf16.mxu0 %vm1199_vm0, %v6980_v3  ;;  %5965 = vmatprep.mubr.msk.bf16.mxu1 %vm1199_vm0, %v6289_v4 }
  0x62   : > { %5918 = vmatmul.mubr.msk.bf16.gmra.mrb[16].mxu0 %vm1199_vm0, %v6990_v5  ;;  %5966 = vmatmul.mubr.msk.bf16.gmra.mrb[16].mxu1 %vm1199_vm0, %v6291_v6 }
  0x63   : > { %5921 = vmatprep.mubr.msk.bf16.mxu0 %vm1199_vm0, %v6994_v7  ;;  %5969 = vmatprep.mubr.msk.bf16.mxu1 %vm1199_vm0, %v6293_v8 }
  0x6a   : > { %5922 = vmatmul.mubr.msk.bf16.gmra.mrb[20].mxu0 %vm1199_vm0, %v7004_v9  ;;  %5970 = vmatmul.mubr.msk.bf16.gmra.mrb[20].mxu1 %vm1199_vm0, %v6295_v10 }
  0x6b   : > { %5925 = vmatprep.mubr.msk.bf16.mxu0 %vm1199_vm0, %v7008_v11  ;;  %5973 = vmatprep.mubr.msk.bf16.mxu1 %vm1199_vm0, %v6297_v12 }
  0x72   : > { %5926 = vmatmul.mubr.msk.bf16.gmra.mrb[24].mxu0 %vm1199_vm0, %v7018_v13  ;;  %5974 = vmatmul.mubr.msk.bf16.gmra.mrb[24].mxu1 %vm1199_vm0, %v6299_v14 }
  0x73   : > { %5929 = vmatprep.mubr.msk.bf16.mxu0 %vm1199_vm0, %v7022_v15  ;;  %5977 = vmatprep.mubr.msk.bf16.mxu1 %vm1199_vm0, %v6301_v16 }
  0x7a   : > { %5930 = vmatmul.mubr.msk.bf16.gmra.mrb[28].mxu0 %vm1199_vm0, %v7032_v17  ;;  %5978 = vmatmul.mubr.msk.bf16.gmra.mrb[28].mxu1 %vm1199_vm0, %v6303_v18 }
  0x7b   : > { %5933 = vmatprep.mubr.msk.bf16.mxu0 %vm1199_vm0, %v7036_v19  ;;  %5981 = vmatprep.mubr.msk.bf16.mxu1 %vm1199_vm0, %v6305_v20 }
  0x82   : > { %5934 = vmatmul.mubr.msk.bf16.gmra.mrb[32].mxu0 %vm1199_vm0, %v7046_v21  ;;  %5982 = vmatmul.mubr.msk.bf16.gmra.mrb[32].mxu1 %vm1199_vm0, %v6307_v22 }
  0x83   : > { %5937 = vmatprep.mubr.msk.bf16.mxu0 %vm1199_vm0, %v7050_v23  ;;  %5985 = vmatprep.mubr.msk.bf16.mxu1 %vm1199_vm0, %v6309_v24 }
  0x8a   : > { %5938 = vmatmul.mubr.msk.bf16.gmra.mrb[36].mxu0 %vm1199_vm0, %v7060_v25  ;;  %5986 = vmatmul.mubr.msk.bf16.gmra.mrb[36].mxu1 %vm1199_vm0, %v6311_v26 }
  0x8b   : > { %5941 = vmatprep.mubr.msk.bf16.mxu0 %vm1199_vm0, %v7064_v27  ;;  %5989 = vmatprep.mubr.msk.bf16.mxu1 %vm1199_vm0, %v6313_v28 }
  0x92   : > { %5942 = vmatmul.mubr.msk.bf16.gmra.mrb[40].mxu0 %vm1199_vm0, %v7074_v29  ;;  %5990 = vmatmul.mubr.msk.bf16.gmra.mrb[40].mxu1 %vm1199_vm0, %v6315_v30 }
  0x93   : > { %5945 = vmatprep.mubr.msk.bf16.mxu0 %vm1199_vm0, %v7078_v31  ;;  %5993 = vmatprep.mubr.msk.bf16.mxu1 %vm1199_vm0, %v6317_v32 }
  0x9a   : > { %5946 = vmatmul.mubr.msk.bf16.gmra.mrb[44].mxu0 %vm1199_vm0, %v7088_v33  ;;  %5994 = vmatmul.mubr.msk.bf16.gmra.mrb[44].mxu1 %vm1199_vm0, %v6319_v34 }
  0x9b   : > { %6109 = vmatprep.mubr.msk.bf16.mxu0 %vm1199_vm0, %v6927_v51 }
  0xa2   : > { %6110 = vmatmul.mubr.msk.bf16.vlgmr.msra.gmra.mrb[48].mxu0 %vm1199_vm0, %v6933_v53 }
  0xa3   : > { %6113 = vmatprep.mubr.msk.bf16.mxu0 %vm1199_vm0, %v6938_v55 }
  0xaa   : > { %6114 = vmatmul.mubr.msk.bf16.gmra.mrb[52].mxu0 %vm1199_vm0, %v6948_v57 }
  0xab   : > { %6117 = vmatprep.mubr.msk.bf16.mxu0 %vm1199_vm0, %v6952_v59 }
  0xb2   : > { %6118 = vmatmul.mubr.msk.bf16.gmra.mrb[56].mxu0 %vm1199_vm0, %v6962_v61 }
  0xb3   : > { %6121 = vmatprep.mubr.msk.bf16.mxu0 %vm1199_vm0, %v6966_v63 }
  0xba   : > { %6122 = vmatmul.mubr.msk.bf16.gmra.mrb[60].mxu0 %vm1199_vm0, %v6976_v1 }
  0xbb   : > { %6125 = vmatprep.mubr.msk.bf16.mxu0 %vm1199_vm0, %v6980_v3 }
  0xc2   : > { %6126 = vmatmul.mubr.msk.bf16.gmra.mrb[64].mxu0 %vm1199_vm0, %v6990_v5 }
  0xc3   : > { %6129 = vmatprep.mubr.msk.bf16.mxu0 %vm1199_vm0, %v6994_v7 }
  0xca   : > { %6130 = vmatmul.mubr.msk.bf16.gmra.mrb[68].mxu0 %vm1199_vm0, %v7004_v9 }
  0xcb   : > { %6133 = vmatprep.mubr.msk.bf16.mxu0 %vm1199_vm0, %v7008_v11 }
  0xd2   : > { %6134 = vmatmul.mubr.msk.bf16.gmra.mrb[72].mxu0 %vm1199_vm0, %v7018_v13 }
  0xd3   : > { %6137 = vmatprep.mubr.msk.bf16.mxu0 %vm1199_vm0, %v7022_v15 }
  0xda   : > { %6138 = vmatmul.mubr.msk.bf16.gmra.mrb[76].mxu0 %vm1199_vm0, %v7032_v17 }
  0xdb   : > { %6141 = vmatprep.mubr.msk.bf16.mxu0 %vm1199_vm0, %v7036_v19 }
  0xe2   : > { %6142 = vmatmul.mubr.msk.bf16.gmra.mrb[80].mxu0 %vm1199_vm0, %v7046_v21 }
  0xe3   : > { %6145 = vmatprep.mubr.msk.bf16.mxu0 %vm1199_vm0, %v7050_v23 }
  0xea   : > { %6146 = vmatmul.mubr.msk.bf16.gmra.mrb[84].mxu0 %vm1199_vm0, %v7060_v25 }
  0xeb   : > { %6149 = vmatprep.mubr.msk.bf16.mxu0 %vm1199_vm0, %v7064_v27 }
 0x115   : > { %v7108_v38 = vpop.f32.mrb[0].mxu0  ;;  %v5951_v39 = vpop.f32.mrb[0].mxu1 }
 0x116   : > { %v7113_v41 = vpop.f32.mrb[1].mxu0  ;;  %v1570_v42 = vpop.f32.mrb[1].mxu1  ;;  %v1811_v61 = vmul.f32 %v5951_v39, %v5951_v39 }
 0x117   : > { %v7115_v43 = vpop.f32.mrb[2].mxu0  ;;  %v5952_v44 = vpop.f32.mrb[2].mxu1  ;;  %v1809_v18 = vmul.f32 %v1570_v42, %v1570_v42 }
 0x118   : > { %v7117_v45 = vpop.f32.mrb[3].mxu0  ;;  %v1573_v46 = vpop.f32.mrb[3].mxu1  ;;  %v1812_v26 = vmul.f32 %v5952_v44, %v5952_v44  ;;  %v1764_v15 = vmul.f32 %v7115_v43, %v7115_v43 }
 0x119   : > { %v1810_v34 = vmul.f32 %v1573_v46, %v1573_v46 }
 0x11d   : > { %v7123_v47 = vpop.f32.mrb[4].mxu0  ;;  %v5955_v48 = vpop.f32.mrb[4].mxu1 }
 0x11e   : > { %v7125_v49 = vpop.f32.mrb[5].mxu0  ;;  %v1586_v50 = vpop.f32.mrb[5].mxu1 }
 0x11f   : > { %v7127_v51 = vpop.f32.mrb[6].mxu0  ;;  %v5956_v52 = vpop.f32.mrb[6].mxu1  ;;  %v7284_v43 = vmul.f32 %v7125_v49, %v7125_v49 }
 0x120   : > { %v7129_v54 = vpop.f32.mrb[7].mxu0  ;;  %v1589_v56 = vpop.f32.mrb[7].mxu1 }
 0x125   : > { %v7135_v53 = vpop.f32.mrb[8].mxu0  ;;  %v7137_v55 = vpop.f32.mrb[8].mxu1 }
 0x126   : > { %v7139_v58 = vpop.f32.mrb[9].mxu0  ;;  %v7141_v60 = vpop.f32.mrb[9].mxu1 }
 0x127   : > { %v7143_v62 = vpop.f32.mrb[10].mxu0  ;;  %v7145_v0 = vpop.f32.mrb[10].mxu1 }
 0x128   : > { %v7147_v2 = vpop.f32.mrb[11].mxu0  ;;  %v7149_v4 = vpop.f32.mrb[11].mxu1 }
 0x129   : > { %v1818_v9 = vmul.f32 %v7149_v4, %v7149_v4 }
 0x12d   : > { %v7155_v57 = vpop.f32.mrb[12].mxu0  ;;  %v7157_v59 = vpop.f32.mrb[12].mxu1 }
 0x12e   : > { %v7159_v6 = vpop.f32.mrb[13].mxu0  ;;  %v7161_v8 = vpop.f32.mrb[13].mxu1  ;;  %v1823_v4 = vmul.f32 %v7157_v59, %v7157_v59  ;;  %v1761_v59 = vmul.f32 %v7113_v41, %v7113_v41 }
 0x12f   : > { %v7163_v10 = vpop.f32.mrb[14].mxu0  ;;  %v7165_v12 = vpop.f32.mrb[14].mxu1 }
 0x130   : > { %v7167_v14 = vpop.f32.mrb[15].mxu0  ;;  %v7169_v16 = vpop.f32.mrb[15].mxu1 }
 0x135   : > { %v5919_v63 = vpop.f32.mrb[16].mxu0  ;;  %v7176_v20 = vpop.f32.mrb[16].mxu1 }
 0x136   : > { %v1779_v22 = vmul.f32 %v5919_v63, %v5919_v63  ;;  %v1442_v24 = vpop.f32.mrb[17].mxu0  ;;  %v7178_v28 = vpop.f32.mrb[17].mxu1  ;;  %v1813_v63 = vmul.f32 %v1586_v50, %v1586_v50 }
 0x137   : > { %v1777_v30 = vmul.f32 %v1442_v24, %v1442_v24  ;;  %v5920_v32 = vpop.f32.mrb[18].mxu0  ;;  %v7180_v35 = vpop.f32.mrb[18].mxu1  ;;  %v1816_v24 = vmul.f32 %v5956_v52, %v5956_v52  ;;  %v1857_v17 = vmul.f32 %v7178_v28, %v7178_v28 }
 0x138   : > { %v7184_v1 = vadd.f32 %v1811_v61, %v1779_v22  ;;  %v1780_v3 = vmul.f32 %v5920_v32, %v5920_v32  ;;  %v1445_v36 = vpop.f32.mrb[19].mxu0  ;;  %v7186_v39 = vpop.f32.mrb[19].mxu1  ;;  %v1815_v61 = vmul.f32 %v5955_v48, %v5955_v48 }
 0x139   : > { %v7188_v40 = vadd.f32 %v1809_v18, %v1777_v30  ;;  %v1778_v42 = vmul.f32 %v1445_v36, %v1445_v36 }
 0x13a   : > { %v7191_v44 = vadd.f32 %v1812_v26, %v1780_v3  ;;  %v1814_v3 = vmul.f32 %v1589_v56, %v1589_v56  ;;  %v1819_v56 = vmul.f32 %v7137_v55, %v7137_v55 }
 0x13b   : > { %v7198_v46 = vadd.f32 %v1810_v34, %v1778_v42 }
 0x13d   : > { %v5923_v18 = vpop.f32.mrb[20].mxu0  ;;  %v7204_v22 = vpop.f32.mrb[20].mxu1 }
 0x13e   : > { %v1783_v26 = vmul.f32 %v5923_v18, %v5923_v18  ;;  %v1458_v30 = vpop.f32.mrb[21].mxu0  ;;  %v7206_v32 = vpop.f32.mrb[21].mxu1 }
 0x13f   : > { %v1781_v36 = vmul.f32 %v1458_v30, %v1458_v30  ;;  %v5924_v34 = vpop.f32.mrb[22].mxu0  ;;  %v7208_v42 = vpop.f32.mrb[22].mxu1 }
 0x140   : > { %v7210_v37 = vadd.f32 %v1815_v61, %v1783_v26  ;;  %v1784_v5 = vmul.f32 %v5924_v34, %v5924_v34  ;;  %v1461_v48 = vpop.f32.mrb[23].mxu0  ;;  %v7212_v33 = vpop.f32.mrb[23].mxu1  ;;  %v1817_v61 = vmul.f32 %v7141_v60, %v7141_v60  ;;  %v7354_v19 = vmul.f32 %v7208_v42, %v7208_v42 }
 0x141   : > { %v7214_v7 = vadd.f32 %v1813_v63, %v1781_v36  ;;  %v1782_v50 = vmul.f32 %v1461_v48, %v1461_v48 }
 0x142   : > { %v7216_v31 = vadd.f32 %v1816_v24, %v1784_v5  ;;  %v1820_v24 = vmul.f32 %v7145_v0, %v7145_v0 }
 0x143   : > { %v7218_v52 = vadd.f32 %v1814_v3, %v1782_v50 }
 0x145   : > { %v5927_v18 = vpop.f32.mrb[24].mxu0  ;;  %v7228_v63 = vpop.f32.mrb[24].mxu1 }
 0x146   : > { %v1787_v26 = vmul.f32 %v5927_v18, %v5927_v18  ;;  %v1474_v30 = vpop.f32.mrb[25].mxu0  ;;  %v7232_v3 = vpop.f32.mrb[25].mxu1 }
 0x147   : > { %v1785_v55 = vmul.f32 %v1474_v30, %v1474_v30  ;;  %v5928_v36 = vpop.f32.mrb[26].mxu0  ;;  %v7236_v34 = vpop.f32.mrb[26].mxu1  ;;  %v1824_v30 = vmul.f32 %v7165_v12, %v7165_v12  ;;  %v7276_v12 = vmul.f32 %v7123_v47, %v7123_v47  ;;  %v7294_v47 = vmul.f32 %v7129_v54, %v7129_v54 }
 0x148   : > { %v7238_v11 = vadd.f32 %v1819_v56, %v1787_v26  ;;  %v1788_v60 = vmul.f32 %v5928_v36, %v5928_v36  ;;  %v1477_v5 = vpop.f32.mrb[27].mxu0  ;;  %v7240_v48 = vpop.f32.mrb[27].mxu1  ;;  %v1821_v56 = vmul.f32 %v7161_v8, %v7161_v8  ;;  %v1822_v8 = vmul.f32 %v7169_v16, %v7169_v16 }
 0x149   : > { %v7242_v50 = vadd.f32 %v1817_v61, %v1785_v55  ;;  %v1786_v0 = vmul.f32 %v1477_v5, %v1477_v5  ;;  %v7288_v16 = vmul.f32 %v7127_v51, %v7127_v51  ;;  %v7308_v51 = vmul.f32 %v7143_v62, %v7143_v62 }
 0x14a   : > { %v7244_v18 = vadd.f32 %v1820_v24, %v1788_v60  ;;  %v1763_v24 = vmul.f32 %v7108_v38, %v7108_v38  ;;  %v1762_v38 = vmul.f32 %v7117_v45, %v7117_v45  ;;  %v7316_v54 = vmul.f32 %v7155_v57, %v7155_v57 }
 0x14b   : > { %v7246_v29 = vadd.f32 %v1818_v9, %v1786_v0  ;;  %v7328_v62 = vmul.f32 %v7163_v10, %v7163_v10  ;;  %v1859_v57 = vmul.f32 %v7176_v20, %v7176_v20  ;;  %v1858_v10 = vmul.f32 %v7186_v39, %v7186_v39 }
 0x14c   : > { %v7350_v20 = vmul.f32 %v7206_v32, %v7206_v32  ;;  %v7358_v39 = vmul.f32 %v7212_v33, %v7212_v33 }
 0x14d   : > { %9447 = vst [vmem:[#allocation8_spill] sm:$0xff] %v7246_v29  ;;  %v5931_v26 = vpop.f32.mrb[28].mxu0  ;;  %v7256_v61 = vpop.f32.mrb[28].mxu1  ;;  %9452 = vst [vmem:[#allocation13_spill] sm:$0xff] %v7328_v62 }
 0x14e   : > { %v1791_v9 = vmul.f32 %v5931_v26, %v5931_v26  ;;  %v1490_v13 = vpop.f32.mrb[29].mxu0  ;;  %v7262_v55 = vpop.f32.mrb[29].mxu1  ;;  %v7403_v21 = vmul.f32 %v7256_v61, %v7256_v61 }
 0x14f   : > { %v1789_v36 = vmul.f32 %v1490_v13, %v1490_v13  ;;  %v5932_v60 = vpop.f32.mrb[30].mxu0  ;;  %v7270_v5 = vpop.f32.mrb[30].mxu1 }
 0x150   : > { %v7278_v0 = vadd.f32 %v1823_v4, %v1791_v9  ;;  %v1792_v41 = vmul.f32 %v5932_v60, %v5932_v60  ;;  %v1493_v26 = vpop.f32.mrb[31].mxu0  ;;  %v7280_v29 = vpop.f32.mrb[31].mxu1  ;;  %v7298_v4 = vmul.f32 %v7135_v53, %v7135_v53  ;;  %v7302_v9 = vmul.f32 %v7139_v58, %v7139_v58 }
 0x151   : > { %v7290_v13 = vadd.f32 %v1821_v56, %v1789_v36  ;;  %v1790_v45 = vmul.f32 %v1493_v26, %v1493_v26  ;;  %v7312_v56 = vmul.f32 %v7147_v2, %v7147_v2  ;;  %v7324_v58 = vmul.f32 %v7159_v6, %v7159_v6 }
 0x152   : > { %v7304_v49 = vadd.f32 %v1824_v30, %v1792_v41  ;;  %v7332_v2 = vmul.f32 %v7167_v14, %v7167_v14  ;;  %v1860_v6 = vmul.f32 %v7180_v35, %v7180_v35  ;;  %v7346_v30 = vmul.f32 %v7204_v22, %v7204_v22 }
 0x153   : > { %9448 = vst [vmem:[#allocation9_spill] sm:$0xff] %v7290_v13  ;;  %v7318_v53 = vadd.f32 %v1822_v8, %v1790_v45  ;;  %9451 = vst [vmem:[#allocation12_spill] sm:$0xff] %v7324_v58  ;;  %v7362_v22 = vmul.f32 %v7228_v63, %v7228_v63  ;;  %v7414_v23 = vmul.f32 %v7270_v5, %v7270_v5 }
 0x154   : > { %9449 = vst [vmem:[#allocation10_spill] sm:$0xff] %v7304_v49  ;;  %9453 = vst [vmem:[#allocation14_spill] sm:$0xff] %v7332_v2 }
 0x155   : > { %9450 = vst [vmem:[#allocation11_spill] sm:$0xff] %v7318_v53  ;;  %v5935_v14 = vpop.f32.mrb[32].mxu0  ;;  %v5983_v8 = vpop.f32.mrb[32].mxu1 }
 0x156   : > { %v1795_v28 = vmul.f32 %v5935_v14, %v5935_v14  ;;  %v1875_v36 = vmul.f32 %v5983_v8, %v5983_v8  ;;  %v1506_v35 = vpop.f32.mrb[33].mxu0  ;;  %v1698_v60 = vpop.f32.mrb[33].mxu1 }
 0x157   : > { %v1793_v41 = vmul.f32 %v1506_v35, %v1506_v35  ;;  %v1873_v26 = vmul.f32 %v1698_v60, %v1698_v60  ;;  %v5936_v32 = vpop.f32.mrb[34].mxu0  ;;  %v5984_v45 = vpop.f32.mrb[34].mxu1 }
 0x158   : > { %v1827_v53 = vadd.f32 %v1795_v28, %v1763_v24  ;;  %v7365_v42 = vadd.f32 %v1875_v36, %v7184_v1  ;;  %v1796_v14 = vmul.f32 %v5936_v32, %v5936_v32  ;;  %v1876_v8 = vmul.f32 %v5984_v45, %v5984_v45  ;;  %v1509_v2 = vpop.f32.mrb[35].mxu0  ;;  %v1701_v49 = vpop.f32.mrb[35].mxu1 }
 0x159   : > { %v1825_v62 = vadd.f32 %v1793_v41, %v1761_v59  ;;  %v7368_v33 = vadd.f32 %v1873_v26, %v7188_v40  ;;  %v1794_v13 = vmul.f32 %v1509_v2, %v1509_v2  ;;  %v1874_v58 = vmul.f32 %v1701_v49, %v1701_v49 }
 0x15a   : > { %v7370_v63 = vadd.f32 %v1859_v57, %v1827_v53  ;;  %6344 = vrsqrt.f32 %v7365_v42  ;;  %v1828_v35 = vadd.f32 %v1796_v14, %v1764_v15  ;;  %v7374_v24 = vadd.f32 %v1876_v8, %v7191_v44 }
 0x15b   : > { %v7376_v1 = vadd.f32 %v1857_v17, %v1825_v62  ;;  %6346 = vrsqrt.f32 %v7368_v33  ;;  %v1826_v28 = vadd.f32 %v1794_v13, %v1762_v38  ;;  %v7380_v59 = vadd.f32 %v1874_v58, %v7198_v46 }
 0x15c   : > { %v7386_v40 = vmul.f32 %v7232_v3, %v7232_v3  ;;  %v7390_v15 = vmul.f32 %v7236_v34, %v7236_v34  ;;  %6348 = vrsqrt.f32 %v7370_v63  ;;  %v7393_v44 = vadd.f32 %v1860_v6, %v1828_v35 }
 0x15d   : > { %v7399_v46 = vmul.f32 %v7240_v48, %v7240_v48  ;;  %6350 = vrsqrt.f32 %v7376_v1  ;;  %v7406_v3 = vadd.f32 %v1858_v10, %v1826_v28  ;;  %v5939_v34 = vpop.f32.mrb[36].mxu0  ;;  %v5987_v38 = vpop.f32.mrb[36].mxu1  ;;  %v7410_v13 = vmul.f32 %v7262_v55, %v7262_v55 }
 0x15e   : > { %6352 = vrsqrt.f32 %v7393_v44  ;;  %v1799_v48 = vmul.f32 %v5939_v34, %v5939_v34  ;;  %v1522_v49 = vpop.f32.mrb[37].mxu0  ;;  %v1714_v61 = vpop.f32.mrb[37].mxu1  ;;  %v1879_v53 = vmul.f32 %v5987_v38, %v5987_v38  ;;  %v7437_v14 = vmul.f32 %v7280_v29, %v7280_v29 }
 0x15f   : > { %6354 = vrsqrt.f32 %v7374_v24  ;;  %v1797_v58 = vmul.f32 %v1522_v49, %v1522_v49  ;;  %v1877_v62 = vmul.f32 %v1714_v61, %v1714_v61  ;;  %v5940_v2 = vpop.f32.mrb[38].mxu0  ;;  %v5988_v57 = vpop.f32.mrb[38].mxu1  ;;  %vm1923_vm1 = vcmp.eq.f32.partialorder %v7376_v1, inf }
 0x160   : > { %6356 = vrsqrt.f32 %v7406_v3  ;;  %v1831_v55 = vadd.f32 %v1799_v48, %v7276_v12  ;;  %v1800_v17 = vmul.f32 %v5940_v2, %v5940_v2  ;;  %v1880_v6 = vmul.f32 %v5988_v57, %v5988_v57  ;;  %v1525_v5 = vpop.f32.mrb[39].mxu0  ;;  %v1717_v10 = vpop.f32.mrb[39].mxu1 }
 0x161   : > { %6358 = vrsqrt.f32 %v7380_v59  ;;  %v7422_v36 = vadd.f32 %v1879_v53, %v7210_v37  ;;  %v1829_v60 = vadd.f32 %v1797_v58, %v7284_v43  ;;  %v7426_v41 = vadd.f32 %v1877_v62, %v7214_v7 }
 0x162   : > { %v7429_v26 = vadd.f32 %v7346_v30, %v1831_v55  ;;  %v1832_v32 = vadd.f32 %v1800_v17, %v7288_v16  ;;  %v7433_v12 = vadd.f32 %v1880_v6, %v7216_v31  ;;  %v1798_v45 = vmul.f32 %v1525_v5, %v1525_v5 }
 0x163   : > { %6360 = vrsqrt.f32 %v7422_v36  ;;  %v7441_v37 = vadd.f32 %v7350_v20, %v1829_v60  ;;  %v1878_v7 = vmul.f32 %v1717_v10, %v1717_v10  ;;  %v1940_v16 = vand.u32 2147483648, %v7370_v63 }
 0x164   : > { %v7445_v43 = vpop.eup %6344  ;;  %6362 = vrsqrt.f32 %v7429_v26  ;;  %v7450_v31 = vadd.f32 %v7354_v19, %v1832_v32  ;;  %v1830_v29 = vadd.f32 %v1798_v45, %v7294_v47  ;;  %v1947_v20 = vand.u32 2147483648, %v7393_v44 }
 0x165   : > { %v7455_v30 = vpop.eup %6346  ;;  %6364 = vrsqrt.f32 %v7441_v37  ;;  %v7460_v25 = vadd.f32 %v1878_v7, %v7218_v52  ;;  %v5943_v8 = vpop.f32.mrb[40].mxu0  ;;  %v1926_v19 = vand.u32 2147483648, %v7376_v1  ;;  %vm1937_vm2 = vcmp.eq.f32.partialorder %v7370_v63, inf }
 0x166   : > { %v5991_v35 = vpop.f32.mrb[40].mxu1  ;;  %v6349_v28 = vpop.eup %6348  ;;  %6366 = vrsqrt.f32 %v7426_v41  ;;  %v7466_v27 = vadd.f32 %v7358_v39, %v1830_v29  ;;  %v1803_v47 = vmul.f32 %v5943_v8, %v5943_v8  ;;  %vm1930_vm3 = vcmp.eq.f32.partialorder %v7406_v3, inf }
 0x167   : > { %v1883_v34 = vmul.f32 %v5991_v35, %v5991_v35  ;;  %v1538_v38 = vpop.f32.mrb[41].mxu0  ;;  %v1730_v48 = vpop.f32.mrb[41].mxu1  ;;  %v7469_v52 = vmul.f32 %v6349_v28, %v7370_v63  ;;  %6368 = vrsqrt.f32 %v7450_v31  ;;  %vm1925_vm4 = vcmp.eq.f32.partialorder %v7376_v1, 0.0 }
 0x168   : > { %v6351_v49 = vpop.eup %6350  ;;  %v1801_v61 = vmul.f32 %v1538_v38, %v1538_v38  ;;  %v1881_v53 = vmul.f32 %v1730_v48, %v1730_v48  ;;  %v5944_v58 = vpop.f32.mrb[42].mxu0  ;;  %6370 = vrsqrt.f32 %v7433_v12  ;;  %v1835_v39 = vadd.f32 %v1803_v47, %v7298_v4  ;;  %v9456_v38 = vld [vmem:[#allocation8_spill] sm:$0xff] }
 0x169   : > { %v5992_v62 = vpop.f32.mrb[42].mxu1  ;;  %v6353_v2 = vpop.eup %6352  ;;  %v7475_v57 = vadd.f32 %v1883_v34, %v7238_v11  ;;  %v1804_v55 = vmul.f32 %v5944_v58, %v5944_v58  ;;  %6372 = vrsqrt.f32 %v7466_v27  ;;  %v1922_v28 = vmul.f32 %v6351_v49, %v7376_v1 }
 0x16a   : > { %v1541_v17 = vpop.f32.mrb[43].mxu0  ;;  %v1733_v6 = vpop.f32.mrb[43].mxu1  ;;  %v7480_v10 = vmul.f32 %v6353_v2, %v7393_v44  ;;  %v1833_v60 = vadd.f32 %v1801_v61, %v7302_v9  ;;  %v7485_v32 = vadd.f32 %v1881_v53, %v7242_v50  ;;  %6374 = vrsqrt.f32 %v7460_v25  ;;  %v9454_v50 = vld [vmem:[#allocation4_spill] sm:$0xff] }
 0x16b   : > { %v7477_v5 = vpop.eup %6354  ;;  %v7489_v11 = vadd.f32 %v7362_v22, %v1835_v39  ;;  %v1836_v4 = vadd.f32 %v1804_v55, %v7308_v51  ;;  %v1884_v7 = vmul.f32 %v5992_v62, %v5992_v62  ;;  %6376 = vrsqrt.f32 %v7475_v57  ;;  %6150 = vmatmul.mubr.msk.bf16.gmra.mrb[88].mxu0 %vm1199_vm0, %v9454_v50 }
 0x16c   : > { %v6357_v45 = vpop.eup %6356  ;;  %v7496_v8 = vadd.f32 %v7386_v40, %v1833_v60  ;;  %v1802_v9 = vmul.f32 %v1541_v17, %v1541_v17  ;;  %v1882_v35 = vmul.f32 %v1733_v6, %v1733_v6  ;;  %v9455_v40 = vld [vmem:[#allocation5_spill] sm:$0xff]  ;;  %vm1932_vm5 = vcmp.eq.f32.partialorder %v7406_v3, 0.0 }
 0x16d   : > { %v7492_v29 = vpop.eup %6358  ;;  %6378 = vrsqrt.f32 %v7489_v11  ;;  %v7503_v22 = vadd.f32 %v7390_v15, %v1836_v4  ;;  %v7506_v51 = vadd.f32 %v1884_v7, %v7244_v18  ;;  %6153 = vmatprep.mubr.msk.bf16.mxu0 %vm1199_vm0, %v9455_v40  ;;  %v5947_v15 = vpop.f32.mrb[44].mxu0  ;;  %v1929_v18 = vmul.f32 %v6357_v45, %v7406_v3 }
 0x16e   : > { %v7512_v47 = vpop.eup %6360  ;;  %6380 = vrsqrt.f32 %v7496_v8  ;;  %v1834_v34 = vadd.f32 %v1802_v9, %v7312_v56  ;;  %v7517_v48 = vadd.f32 %v1882_v35, %v9456_v38  ;;  %v5995_v61 = vpop.f32.mrb[44].mxu1  ;;  %vm1944_vm6 = vcmp.eq.f32.partialorder %v7393_v44, inf  ;;  %v9458_v38 = vld [vmem:[#allocation9_spill] sm:$0xff] }
 0x16f   : > { %v7522_v49 = vpop.eup %6362  ;;  %6382 = vrsqrt.f32 %v7485_v32  ;;  %v1807_v53 = vmul.f32 %v5947_v15, %v5947_v15  ;;  %v1887_v58 = vmul.f32 %v5995_v61, %v5995_v61  ;;  %v1554_v56 = vpop.f32.mrb[45].mxu0  ;;  %v1924_v2 = vsel %vm1923_vm1, %v7376_v1, %v1922_v28 }
 0x170   : > { %v1746_v62 = vpop.f32.mrb[45].mxu1  ;;  %v6365_v39 = vpop.eup %6364  ;;  %6384 = vrsqrt.f32 %v7503_v22  ;;  %v7531_v55 = vadd.f32 %v7399_v46, %v1834_v34  ;;  %v1805_v17 = vmul.f32 %v1554_v56, %v1554_v56  ;;  %v9457_v46 = vld [vmem:[#allocation12_spill] sm:$0xff]  ;;  %vm1939_vm7 = vcmp.eq.f32.partialorder %v7370_v63, 0.0 }
 0x171   : > { %v1885_v6 = vmul.f32 %v1746_v62, %v1746_v62  ;;  %v5948_v60 = vpop.f32.mrb[46].mxu0  ;;  %v5996_v45 = vpop.f32.mrb[46].mxu1  ;;  %6386 = vrsqrt.f32 %v7506_v51  ;;  %v1839_v7 = vadd.f32 %v1807_v53, %v7316_v54  ;;  %v7538_v9 = vadd.f32 %v1887_v58, %v7278_v0  ;;  %v9459_v54 = vld [vmem:[#allocation13_spill] sm:$0xff] }
 0x172   : > { %v7533_v4 = vpop.eup %6366  ;;  %v1808_v35 = vmul.f32 %v5948_v60, %v5948_v60  ;;  %v1557_v50 = vpop.f32.mrb[47].mxu0  ;;  %6388 = vrsqrt.f32 %v7531_v55  ;;  %v1837_v34 = vadd.f32 %v1805_v17, %v9457_v46  ;;  %v1888_v61 = vmul.f32 %v5996_v45, %v5996_v45  ;;  %v9461_v46 = vld [vmem:[#allocation6_spill] sm:$0xff] }
 0x173   : > { %v1749_v28 = vpop.f32.mrb[47].mxu1  ;;  %v7540_v40 = vpop.eup %6368  ;;  %v7545_v15 = vadd.f32 %v1885_v6, %v9458_v38  ;;  %6390 = vrsqrt.f32 %v7517_v48  ;;  %v7551_v0 = vadd.f32 %v7403_v21, %v1839_v7  ;;  %v1806_v58 = vmul.f32 %v1557_v50, %v1557_v50  ;;  %v9460_v6 = vld [vmem:[#allocation10_spill] sm:$0xff]  ;;  %6154 = vmatmul.mubr.msk.bf16.gmra.mrb[92].mxu0 %vm1199_vm0, %v9461_v46 }
 0x174   : > { %v7547_v56 = vpop.eup %6370  ;;  %v1840_v53 = vadd.f32 %v1808_v35, %v9459_v54  ;;  %6392 = vrsqrt.f32 %v7538_v9  ;;  %v7556_v17 = vadd.f32 %v7410_v13, %v1837_v34  ;;  %v7559_v60 = vadd.f32 %v1888_v61, %v9460_v6  ;;  %v9462_v7 = vld [vmem:[#allocation14_spill] sm:$0xff]  ;;  %v6664_v13 = vld [vmem:[%s6924_s23 + $0xc0] sm:$0xff]  }
 0x175   : > { %v6373_v62 = vpop.eup %6372  ;;  %v1886_v45 = vmul.f32 %v1749_v28, %v1749_v28  ;;  %6394 = vrsqrt.f32 %v7551_v0  ;;  %v1838_v35 = vadd.f32 %v1806_v58, %v9462_v7  ;;  %v1933_v50 = vand.u32 2147483648, %v7406_v3  ;;  %6157 = vmatprep.mubr.msk.bf16.mxu0 %vm1199_vm0, %v6664_v13  ;;  %v9463_v28 = vld [vmem:[#allocation11_spill] sm:$0xff]  ;;  %v6665_v13 = vld [vmem:[%s6924_s23 + $0xc8] sm:$0xff]  }
 0x176   : > { %v7563_v38 = vpop.eup %6374  ;;  %v7567_v21 = vadd.f32 %v7414_v23, %v1840_v53  ;;  %6396 = vrsqrt.f32 %v7556_v17  ;;  %v1931_v54 = vsel %vm1930_vm3, %v7406_v3, %v1929_v18  ;;  %v1938_v23 = vsel %vm1937_vm2, %v7370_v63, %v7469_v52 }
 0x177   : > { %v7573_v34 = vpop.eup %6376  ;;  %v7577_v61 = vadd.f32 %v1886_v45, %v9463_v28  ;;  %6398 = vrsqrt.f32 %v7545_v15  ;;  %v7590_v58 = vadd.f32 %v7437_v14, %v1838_v35  ;;  %v1927_v6 = vsel %vm1925_vm4, %v1926_v19, %v1924_v2  ;;  %v6325_v35 = vld [vmem:[%s9431_s4 + $0x8] sm:$0xff]  }
 0x178   : > { %v7586_v53 = vpop.eup %6378  ;;  %v1934_v18 = vsel %vm1932_vm5, %v1933_v50, %v1931_v54  ;;  %6400 = vrsqrt.f32 %v7567_v21  ;;  %v1945_v14 = vsel %vm1944_vm6, %v7393_v44, %v7480_v10  ;;  %v1941_v1 = vsel %vm1939_vm7, %v1940_v16, %v1938_v23  ;;  %v6666_v54 = vld [vmem:[%s6924_s23 + $0xd0] sm:$0xff]  }
 0x179   : > { %v6381_v45 = vpop.eup %6380  ;;  %v2149_v46 = vpack.c.bf16 %v1934_v18, %v1927_v6  ;;  %6402 = vrsqrt.f32 %v7559_v60  ;;  %vm1946_vm8 = vcmp.eq.f32.partialorder %v7393_v44, 0.0  ;;  %v1950_v3 = vmul.f32 %v6365_v39, %v7441_v37  ;;  %v9464_v6 = vld [vmem:[#allocation7_spill] sm:$0xff] }
 0x17a   : > { %v7604_v52 = vpop.eup %6382  ;;  %6404 = vrsqrt.f32 %v7590_v58  ;;  %v1948_v10 = vsel %vm1946_vm8, %v1947_v20, %v1945_v14  ;;  %vm1951_vm9 = vcmp.eq.f32.partialorder %v7441_v37, inf  ;;  %v1954_v2 = vand.u32 2147483648, %v7441_v37 }
 0x17b   : > { %v7611_v19 = vpop.eup %6384  ;;  %6001 = vmatprep.mubr.msk.bf16.mxu1 %vm1199_vm0, %v2149_v46  ;;  %v2150_v16 = vpack.c.bf16 %v1948_v10, %v1941_v1  ;;  %v1952_v7 = vsel %vm1951_vm9, %v7441_v37, %v1950_v3  ;;  %vm1953_vm10 = vcmp.eq.f32.partialorder %v7441_v37, 0.0  ;;  %v1957_v39 = vmul.f32 %v6373_v62, %v7466_v27  ;;  %6158 = vmatmul.mubr.msk.bf16.gmra.mrb[96].mxu0 %vm1199_vm0, %v6665_v13  ;;  %v7655_v10 = vld [vmem:[%s9434_s7] sm:$0xff]  }
 0x17c   : > { %v7619_v63 = vpop.eup %6386  ;;  %6406 = vrsqrt.f32 %v7577_v61  ;;  %v1955_v20 = vsel %vm1953_vm10, %v1954_v2, %v1952_v7  ;;  %vm1958_vm11 = vcmp.eq.f32.partialorder %v7466_v27, inf  ;;  %v1961_v50 = vand.u32 2147483648, %v7466_v27  ;;  %6161 = vmatprep.mubr.msk.bf16.mxu0 %vm1199_vm0, %v6666_v54 }
 0x17d   : > { %v6389_v44 = vpop.eup %6388  ;;  %6002 = vmatmul.mubr.msk.bf16.vlgmr.msra.gmra.mrb[48].mxu1 %vm1199_vm0, %v2150_v16  ;;  %v1959_v37 = vsel %vm1958_vm11, %v7466_v27, %v1957_v39  ;;  %vm1960_vm12 = vcmp.eq.f32.partialorder %v7466_v27, 0.0  ;;  %v1964_v62 = vmul.f32 %v7522_v49, %v7429_v26  ;;  %vm1965_vm13 = vcmp.eq.f32.partialorder %v7429_v26, inf }
 0x17e   : > { %v7632_v28 = vpop.eup %6390  ;;  %6034 = vmatpush3.bf16.msra.mxu1 %v9464_v6  ;;  %v1962_v18 = vsel %vm1960_vm12, %v1961_v50, %v1959_v37  ;;  %vm1967_vm14 = vcmp.eq.f32.partialorder %v7429_v26, 0.0  ;;  %v1968_v46 = vand.u32 2147483648, %v7429_v26  ;;  %v1971_v27 = vmul.f32 %v7540_v40, %v7450_v31 }
 0x17f   : > { %v7642_v23 = vpop.eup %6392  ;;  %v2151_v1 = vpack.c.bf16 %v1962_v18, %v1955_v20  ;;  %v1966_v49 = vsel %vm1965_vm13, %v7429_v26, %v1964_v62  ;;  %vm1972_vm15 = vcmp.eq.f32.partialorder %v7450_v31, inf  ;;  %v1975_v3 = vand.u32 2147483648, %v7450_v31  ;;  %6035 = vmatprep.subr.bf16.mxu1 %v6325_v35 }
 0x180   : > { %v6395_v14 = vpop.eup %6394  ;;  %v1969_v16 = vsel %vm1967_vm14, %v1968_v46, %v1966_v49  ;;  %v1973_v7 = vsel %vm1972_vm15, %v7450_v31, %v1971_v27  ;;  %vm1974_vm1 = vcmp.eq.f32.partialorder %v7450_v31, 0.0  ;;  %v1978_v40 = vmul.f32 %v6381_v45, %v7496_v8  ;;  %v6668_v27 = vld [vmem:[%s6924_s23 + $0xe0] sm:$0xff]  }
 0x181   : > { %v6397_v2 = vpop.eup %6396  ;;  %6005 = vmatprep.mubr.msk.bf16.mxu1 %vm1199_vm0, %v2151_v1  ;;  %v1976_v26 = vsel %vm1974_vm1, %v1975_v3, %v1973_v7  ;;  %vm1979_vm2 = vcmp.eq.f32.partialorder %v7496_v8, inf  ;;  %vm1981_vm3 = vcmp.eq.f32.partialorder %v7496_v8, 0.0  ;;  %v1985_v20 = vmul.f32 %v6389_v44, %v7531_v55 }
 0x182   : > { %v7660_v39 = vpop.eup %6398  ;;  %v2152_v13 = vpack.c.bf16 %v1976_v26, %v1969_v16  ;;  %v1980_v37 = vsel %vm1979_vm2, %v7496_v8, %v1978_v40  ;;  %v1982_v31 = vand.u32 2147483648, %v7496_v8  ;;  %vm1986_vm4 = vcmp.eq.f32.partialorder %v7531_v55, inf  ;;  %6036 = vmatpush3.bf16.msra.mxu1 %v6325_v35  ;;  %v6667_v35 = vld [vmem:[%s6924_s23 + $0xd8] sm:$0xff]  }
 0x183   : > { %v6401_v50 = vpop.eup %6400  ;;  %v1987_v62 = vsel %vm1986_vm4, %v7531_v55, %v1985_v20  ;;  %vm1988_vm5 = vcmp.eq.f32.partialorder %v7531_v55, 0.0  ;;  %v1989_v54 = vand.u32 2147483648, %v7531_v55  ;;  %v1992_v44 = vmul.f32 %v7586_v53, %v7489_v11  ;;  %6069 = vmatprep.subr.bf16.mxu1 %v7655_v10  ;;  %6162 = vmatmul.mubr.msk.bf16.gmra.mrb[100].mxu0 %vm1199_vm0, %v6667_v35  ;;  %v6670_v35 = vld [vmem:[%s6924_s23 + $0xf0] sm:$0xff]  }
 0x184   : > { %v7669_v45 = vpop.eup %6402  ;;  %v1983_v18 = vsel %vm1981_vm3, %v1982_v31, %v1980_v37  ;;  %vm1993_vm6 = vcmp.eq.f32.partialorder %v7489_v11, inf  ;;  %vm1995_vm7 = vcmp.eq.f32.partialorder %v7489_v11, 0.0  ;;  %v1999_v8 = vmul.f32 %v7611_v19, %v7503_v22  ;;  %6165 = vmatprep.mubr.msk.bf16.mxu0 %vm1199_vm0, %v6668_v27 }
 0x185   : > { %v6405_v6 = vpop.eup %6404  ;;  %6006 = vmatmul.mubr.msk.bf16.gmra.mrb[52].mxu1 %vm1199_vm0, %v2152_v13  ;;  %v1990_v55 = vsel %vm1988_vm5, %v1989_v54, %v1987_v62  ;;  %v1994_v46 = vsel %vm1993_vm6, %v7489_v11, %v1992_v44  ;;  %v1996_v53 = vand.u32 2147483648, %v7489_v11  ;;  %vm2000_vm8 = vcmp.eq.f32.partialorder %v7503_v22, inf }
 0x186   : > { %v7689_v1 = vpop.eup %6406  ;;  %v2153_v49 = vpack.c.bf16 %v1990_v55, %v1983_v18  ;;  %v2001_v19 = vsel %vm2000_vm8, %v7503_v22, %v1999_v8  ;;  %vm2002_vm9 = vcmp.eq.f32.partialorder %v7503_v22, 0.0  ;;  %v2003_v3 = vand.u32 2147483648, %v7503_v22  ;;  %v6669_v18 = vld [vmem:[%s6924_s23 + $0xe8] sm:$0xff]  }
 0x187   : > { %v1997_v16 = vsel %vm1995_vm7, %v1996_v53, %v1994_v46  ;;  %v2006_v7 = vmul.f32 %v6397_v2, %v7556_v17  ;;  %vm2007_vm10 = vcmp.eq.f32.partialorder %v7556_v17, inf  ;;  %vm2009_vm11 = vcmp.eq.f32.partialorder %v7556_v17, 0.0 }
 0x188   : > { %6009 = vmatprep.mubr.msk.bf16.mxu1 %vm1199_vm0, %v2153_v49  ;;  %v2004_v40 = vsel %vm2002_vm9, %v2003_v3, %v2001_v19  ;;  %v2010_v26 = vand.u32 2147483648, %v7556_v17  ;;  %v2013_v20 = vmul.f32 %v6405_v6, %v7590_v58  ;;  %vm2014_vm12 = vcmp.eq.f32.partialorder %v7590_v58, inf }
 0x189   : > { %v2154_v13 = vpack.c.bf16 %v2004_v40, %v1997_v16  ;;  %v2008_v11 = vsel %vm2007_vm10, %v7556_v17, %v2006_v7  ;;  %v2017_v22 = vand.u32 2147483648, %v7590_v58  ;;  %v2020_v2 = vmul.f32 %v6395_v14, %v7551_v0 }
 0x18a   : > { %v2011_v37 = vsel %vm2009_vm11, %v2010_v26, %v2008_v11  ;;  %v2015_v31 = vsel %vm2014_vm12, %v7590_v58, %v2013_v20  ;;  %vm2016_vm13 = vcmp.eq.f32.partialorder %v7590_v58, 0.0  ;;  %vm2021_vm14 = vcmp.eq.f32.partialorder %v7551_v0, inf }
 0x18b   : > { %v2018_v62 = vsel %vm2016_vm13, %v2017_v22, %v2015_v31  ;;  %v2022_v54 = vsel %vm2021_vm14, %v7551_v0, %v2020_v2  ;;  %v2024_v44 = vand.u32 2147483648, %v7551_v0  ;;  %v2027_v6 = vmul.f32 %v6401_v50, %v7567_v21  ;;  %6166 = vmatmul.mubr.msk.bf16.gmra.mrb[104].mxu0 %vm1199_vm0, %v6669_v18 }
 0x18c   : > { %v2155_v17 = vpack.c.bf16 %v2018_v62, %v2011_v37  ;;  %vm2023_vm15 = vcmp.eq.f32.partialorder %v7551_v0, 0.0  ;;  %vm2028_vm1 = vcmp.eq.f32.partialorder %v7567_v21, inf  ;;  %v2031_v14 = vand.u32 2147483648, %v7567_v21  ;;  %6169 = vmatprep.mubr.msk.bf16.mxu0 %vm1199_vm0, %v6670_v35 }
 0x18d   : > { %6010 = vmatmul.mubr.msk.bf16.gmra.mrb[56].mxu1 %vm1199_vm0, %v2154_v13  ;;  %v2025_v58 = vsel %vm2023_vm15, %v2024_v44, %v2022_v54  ;;  %v2029_v8 = vsel %vm2028_vm1, %v7567_v21, %v2027_v6  ;;  %vm2030_vm2 = vcmp.eq.f32.partialorder %v7567_v21, 0.0  ;;  %v2034_v50 = vmul.f32 %v7455_v30, %v7368_v33 }
 0x18e   : > { %6013 = vmatprep.mubr.msk.bf16.mxu1 %vm1199_vm0, %v2155_v17  ;;  %v2032_v0 = vsel %vm2030_vm2, %v2031_v14, %v2029_v8  ;;  %vm2035_vm3 = vcmp.eq.f32.partialorder %v7368_v33, inf  ;;  %vm2037_vm4 = vcmp.eq.f32.partialorder %v7368_v33, 0.0  ;;  %v2041_v55 = vmul.f32 %v7492_v29, %v7380_v59 }
 0x18f   : > { %v2156_v46 = vpack.c.bf16 %v2032_v0, %v2025_v58  ;;  %v2036_v53 = vsel %vm2035_vm3, %v7368_v33, %v2034_v50  ;;  %v2038_v21 = vand.u32 2147483648, %v7368_v33  ;;  %vm2042_vm5 = vcmp.eq.f32.partialorder %v7380_v59, inf  ;;  %v6674_v50 = vld [vmem:[%s6924_s23 + $0x110] sm:$0xff]  }
 0x190   : > { %v2043_v30 = vsel %vm2042_vm5, %v7380_v59, %v2041_v55  ;;  %vm2044_vm6 = vcmp.eq.f32.partialorder %v7380_v59, 0.0  ;;  %v2045_v27 = vand.u32 2147483648, %v7380_v59  ;;  %v2048_v49 = vmul.f32 %v7445_v43, %v7365_v42 }
 0x191   : > { %v2039_v19 = vsel %vm2037_vm4, %v2038_v21, %v2036_v53  ;;  %vm2049_vm7 = vcmp.eq.f32.partialorder %v7365_v42, inf  ;;  %vm2051_vm8 = vcmp.eq.f32.partialorder %v7365_v42, 0.0  ;;  %v2055_v33 = vmul.f32 %v7477_v5, %v7374_v24  ;;  %v6671_v5 = vld [vmem:[%s6924_s23 + $0xf8] sm:$0xff]  }
 0x192   : > { %v2046_v29 = vsel %vm2044_vm6, %v2045_v27, %v2043_v30  ;;  %v2050_v3 = vsel %vm2049_vm7, %v7365_v42, %v2048_v49  ;;  %v2052_v16 = vand.u32 2147483648, %v7365_v42  ;;  %vm2056_vm9 = vcmp.eq.f32.partialorder %v7374_v24, inf }
 0x193   : > { %v2157_v59 = vpack.c.bf16 %v2046_v29, %v2039_v19  ;;  %v2057_v43 = vsel %vm2056_vm9, %v7374_v24, %v2055_v33  ;;  %vm2058_vm10 = vcmp.eq.f32.partialorder %v7374_v24, 0.0  ;;  %v2059_v7 = vand.u32 2147483648, %v7374_v24  ;;  %6170 = vmatmul.mubr.msk.bf16.gmra.mrb[108].mxu0 %vm1199_vm0, %v6671_v5  ;;  %v6672_v24 = vld [vmem:[%s6924_s23 + $0x100] sm:$0xff]   ;;  %v6677_v5 = vld [vmem:[%s6924_s23 + $0x128] sm:$0xff]  }
 0x194   : > { %v2053_v40 = vsel %vm2051_vm8, %v2052_v16, %v2050_v3  ;;  %v2062_v26 = vmul.f32 %v7533_v4, %v7426_v41  ;;  %vm2063_vm11 = vcmp.eq.f32.partialorder %v7426_v41, inf  ;;  %vm2065_vm12 = vcmp.eq.f32.partialorder %v7426_v41, 0.0  ;;  %6173 = vmatprep.mubr.msk.bf16.mxu0 %vm1199_vm0, %v6672_v24  ;;  %v6675_v3 = vld [vmem:[%s6924_s23 + $0x118] sm:$0xff]   ;;  %v6328_v24 = vld [vmem:[%s7196_s24 + $0x10] sm:$0xff]  }
 0x195   : > { %6014 = vmatmul.mubr.msk.bf16.gmra.mrb[60].mxu1 %vm1199_vm0, %v2156_v46  ;;  %v2060_v42 = vsel %vm2058_vm10, %v2059_v7, %v2057_v43  ;;  %v2066_v20 = vand.u32 2147483648, %v7426_v41  ;;  %v2069_v13 = vmul.f32 %v7563_v38, %v7460_v25  ;;  %vm2070_vm13 = vcmp.eq.f32.partialorder %v7460_v25, inf }
 0x196   : > { %6017 = vmatprep.mubr.msk.bf16.mxu1 %vm1199_vm0, %v2157_v59  ;;  %v2158_v4 = vpack.c.bf16 %v2060_v42, %v2053_v40  ;;  %v2064_v11 = vsel %vm2063_vm11, %v7426_v41, %v2062_v26  ;;  %v2073_v22 = vand.u32 2147483648, %v7460_v25  ;;  %v2076_v2 = vmul.f32 %v7512_v47, %v7422_v36  ;;  %v6678_v42 = vld [vmem:[%s6924_s23 + $0x130] sm:$0xff]  }
 0x197   : > { %v2067_v37 = vsel %vm2065_vm12, %v2066_v20, %v2064_v11  ;;  %v2071_v31 = vsel %vm2070_vm13, %v7460_v25, %v2069_v13  ;;  %vm2072_vm14 = vcmp.eq.f32.partialorder %v7460_v25, 0.0  ;;  %vm2077_vm15 = vcmp.eq.f32.partialorder %v7422_v36, inf  ;;  %v6680_v20 = vld [vmem:[%s6924_s23 + $0x140] sm:$0xff]   ;;  %v6327_v13 = vld [vmem:[%s7196_s24 + $0x8] sm:$0xff]   ;;  %v6682_v11 = vld [vmem:[%s6924_s23 + $0x150] sm:$0xff]  }
 0x198   : > { %v2074_v38 = vsel %vm2072_vm14, %v2073_v22, %v2071_v31  ;;  %v2078_v62 = vsel %vm2077_vm15, %v7422_v36, %v2076_v2  ;;  %v2080_v54 = vand.u32 2147483648, %v7422_v36  ;;  %v2083_v41 = vmul.f32 %v7547_v56, %v7433_v12  ;;  %v6329_v22 = vld [vmem:[%s7196_s24 + $0x18] sm:$0xff]   ;;  %v6330_v2 = vld [vmem:[%s7196_s24 + $0x20] sm:$0xff]  }
 0x199   : > { %v2159_v44 = vpack.c.bf16 %v2074_v38, %v2067_v37  ;;  %vm2079_vm1 = vcmp.eq.f32.partialorder %v7422_v36, 0.0  ;;  %vm2084_vm2 = vcmp.eq.f32.partialorder %v7433_v12, inf  ;;  %v2087_v47 = vand.u32 2147483648, %v7433_v12  ;;  %v6683_v37 = vld [vmem:[%s6924_s23 + $0x158] sm:$0xff]   ;;  %v6684_v31 = vld [vmem:[%s6924_s23 + $0x160] sm:$0xff]   ;;  %v6331_v38 = vld [vmem:[%s7196_s24 + $0x28] sm:$0xff]  }
 0x19a   : > { %v2081_v6 = vsel %vm2079_vm1, %v2080_v54, %v2078_v62  ;;  %v2085_v25 = vsel %vm2084_vm2, %v7433_v12, %v2083_v41  ;;  %vm2086_vm3 = vcmp.eq.f32.partialorder %v7433_v12, 0.0  ;;  %v2090_v17 = vmul.f32 %v7604_v52, %v7485_v32  ;;  %v6673_v12 = vld [vmem:[%s6924_s23 + $0x108] sm:$0xff]   ;;  %v6332_v62 = vld [vmem:[%s7196_s24 + $0x30] sm:$0xff]   ;;  %v6333_v41 = vld [vmem:[%s7196_s24 + $0x38] sm:$0xff]  }
 0x19b   : > { %v2088_v14 = vsel %vm2086_vm3, %v2087_v47, %v2085_v25  ;;  %vm2091_vm4 = vcmp.eq.f32.partialorder %v7485_v32, inf  ;;  %vm2093_vm5 = vcmp.eq.f32.partialorder %v7485_v32, 0.0  ;;  %v2097_v36 = vmul.f32 %v7632_v28, %v7517_v48  ;;  %6174 = vmatmul.mubr.msk.bf16.gmra.mrb[112].mxu0 %vm1199_vm0, %v6673_v12  ;;  %v6686_v54 = vld [vmem:[%s6924_s23 + $0x170] sm:$0xff]   ;;  %v6687_v47 = vld [vmem:[%s6924_s23 + $0x178] sm:$0xff]   ;;  %v6343_v12 = vld [vmem:[%s9434_s7 + $0x8] sm:$0xff]  }
 0x19c   : > { %v2160_v56 = vpack.c.bf16 %v2088_v14, %v2081_v6  ;;  %v2092_v18 = vsel %vm2091_vm4, %v7485_v32, %v2090_v17  ;;  %v2094_v58 = vand.u32 2147483648, %v7485_v32  ;;  %vm2098_vm6 = vcmp.eq.f32.partialorder %v7517_v48, inf  ;;  %6177 = vmatprep.mubr.msk.bf16.mxu0 %vm1199_vm0, %v6674_v50  ;;  %v6335_v6 = vld [vmem:[%s7196_s24 + $0x48] sm:$0xff]   ;;  %v6336_v25 = vld [vmem:[%s7196_s24 + $0x50] sm:$0xff]   ;;  %v6337_v17 = vld [vmem:[%s7196_s24 + $0x58] sm:$0xff]  }
 0x19d   : > { %6018 = vmatmul.mubr.msk.bf16.gmra.mrb[64].mxu1 %vm1199_vm0, %v2158_v4  ;;  %v2099_v52 = vsel %vm2098_vm6, %v7517_v48, %v2097_v36  ;;  %vm2100_vm7 = vcmp.eq.f32.partialorder %v7517_v48, 0.0  ;;  %v2101_v8 = vand.u32 2147483648, %v7517_v48  ;;  %v2104_v28 = vmul.f32 %v7573_v34, %v7475_v57  ;;  %v6681_v4 = vld [vmem:[%s6924_s23 + $0x148] sm:$0xff]   ;;  %v6338_v14 = vld [vmem:[%s7196_s24 + $0x60] sm:$0xff]  }
 0x19e   : > { %6021 = vmatprep.mubr.msk.bf16.mxu1 %vm1199_vm0, %v2159_v44  ;;  %v2095_v35 = vsel %vm2093_vm5, %v2094_v58, %v2092_v18  ;;  %vm2105_vm8 = vcmp.eq.f32.partialorder %v7475_v57, inf  ;;  %vm2107_vm9 = vcmp.eq.f32.partialorder %v7475_v57, 0.0  ;;  %v2111_v0 = vmul.f32 %v7619_v63, %v7506_v51  ;;  %v6334_v44 = vld [vmem:[%s7196_s24 + $0x40] sm:$0xff]   ;;  %v6339_v36 = vld [vmem:[%s7196_s24 + $0x68] sm:$0xff]   ;;  %v6341_v18 = vld [vmem:[%s7196_s24 + $0x78] sm:$0xff]   ;;  %v6111_v58 = vpop.f32.mrb[48].mxu0 }
 0x19f   : > { %v2102_v55 = vsel %vm2100_vm7, %v2101_v8, %v2099_v52  ;;  %v2106_v48 = vsel %vm2105_vm8, %v7475_v57, %v2104_v28  ;;  %v2108_v34 = vand.u32 2147483648, %v7475_v57  ;;  %vm2112_vm10 = vcmp.eq.f32.partialorder %v7506_v51, inf  ;;  %v3509_v52 = vpop.f32.mrb[49].mxu0  ;;  %3928 = vrot.lane.b32.xlu1 %v6111_v58, %s6712_s30 }
 0x1a0   : > { %v2161_v46 = vpack.c.bf16 %v2102_v55, %v2095_v35  ;;  %v2113_v53 = vsel %vm2112_vm10, %v7506_v51, %v2111_v0  ;;  %vm2114_vm11 = vcmp.eq.f32.partialorder %v7506_v51, 0.0  ;;  %v2115_v32 = vand.u32 2147483648, %v7506_v51  ;;  %3924 = vrot.lane.b32.xlu0 %v3509_v52, %s6712_s30  ;;  %v6112_v8 = vpop.f32.mrb[50].mxu0 }
 0x1a1   : > { %v2109_v21 = vsel %vm2107_vm9, %v2108_v34, %v2106_v48  ;;  %v2118_v30 = vmul.f32 %v7660_v39, %v7545_v15  ;;  %vm2119_vm12 = vcmp.eq.f32.partialorder %v7545_v15, inf  ;;  %vm2121_vm13 = vcmp.eq.f32.partialorder %v7545_v15, 0.0  ;;  %v3512_v28 = vpop.f32.mrb[51].mxu0 }
 0x1a2   : > { %v2116_v63 = vsel %vm2114_vm11, %v2115_v32, %v2113_v53  ;;  %v2122_v57 = vand.u32 2147483648, %v7545_v15  ;;  %v2125_v27 = vmul.f32 %v7689_v1, %v7577_v61  ;;  %vm2126_vm14 = vcmp.eq.f32.partialorder %v7577_v61, inf  ;;  %v6115_v50 = vpop.f32.mrb[52].mxu0 }
 0x1a3   : > { %v2162_v49 = vpack.c.bf16 %v2116_v63, %v2109_v21  ;;  %v2120_v51 = vsel %vm2119_vm12, %v7545_v15, %v2118_v30  ;;  %v2129_v19 = vand.u32 2147483648, %v7577_v61  ;;  %v2132_v39 = vmul.f32 %v7642_v23, %v7538_v9  ;;  %6178 = vmatmul.mubr.msk.bf16.gmra.mrb[116].mxu0 %vm1199_vm0, %v6675_v3  ;;  %v6676_v23 = vld [vmem:[%s6924_s23 + $0x120] sm:$0xff]   ;;  %3930 = vrot.lane.b32.xlu1 %v6112_v8, %s6712_s30  ;;  %v3525_v35 = vpop.f32.mrb[53].mxu0 }
 0x1a4   : > { %v2123_v33 = vsel %vm2121_vm13, %v2122_v57, %v2120_v51  ;;  %v2127_v29 = vsel %vm2126_vm14, %v7577_v61, %v2125_v27  ;;  %vm2128_vm15 = vcmp.eq.f32.partialorder %v7577_v61, 0.0  ;;  %vm2133_vm1 = vcmp.eq.f32.partialorder %v7538_v9, inf  ;;  %6181 = vmatprep.mubr.msk.bf16.mxu0 %vm1199_vm0, %v6676_v23  ;;  %3926 = vrot.lane.b32.xlu0 %v3512_v28, %s6712_s30  ;;  %v6116_v0 = vpop.f32.mrb[54].mxu0 }
 0x1a5   : > { %6022 = vmatmul.mubr.msk.bf16.gmra.mrb[68].mxu1 %vm1199_vm0, %v2160_v56  ;;  %v2130_v1 = vsel %vm2128_vm15, %v2129_v19, %v2127_v29  ;;  %v2134_v15 = vsel %vm2133_vm1, %v7538_v9, %v2132_v39  ;;  %v2139_v16 = vmul.f32 %v7669_v45, %v7559_v60  ;;  %v2136_v59 = vand.u32 2147483648, %v7538_v9  ;;  %v6340_v56 = vld [vmem:[%s7196_s24 + $0x70] sm:$0xff]   ;;  %v3528_v55 = vpop.f32.mrb[55].mxu0 }
 0x1a6   : > { %6025 = vmatprep.mubr.msk.bf16.mxu1 %vm1199_vm0, %v2161_v46  ;;  %v2163_v61 = vpack.c.bf16 %v2130_v1, %v2123_v33  ;;  %vm2140_vm2 = vcmp.eq.f32.partialorder %v7559_v60, inf  ;;  %v2143_v43 = vand.u32 2147483648, %v7559_v60  ;;  %vm2135_vm3 = vcmp.eq.f32.partialorder %v7538_v9, 0.0  ;;  %v6326_v9 = vld [vmem:[%s7196_s24] sm:$0xff]   ;;  %v6119_v48 = vpop.f32.mrb[56].mxu0  ;;  %s6713_s24 = smov 112  }
 0x1a7   : > { %v2141_v45 = vsel %vm2140_vm2, %v7559_v60, %v2139_v16  ;;  %vm2142_vm4 = vcmp.eq.f32.partialorder %v7559_v60, 0.0  ;;  %v2137_v7 = vsel %vm2135_vm3, %v2136_v59, %v2134_v15  ;;  %v6679_v60 = vld [vmem:[%s6924_s23 + $0x138] sm:$0xff]   ;;  %3938 = vrot.lane.b32.xlu1 %v6116_v0, %s6712_s30  ;;  %v3541_v34 = vpop.f32.mrb[57].mxu0 }
 0x1a8   : > { %v2144_v40 = vsel %vm2142_vm4, %v2143_v43, %v2141_v45  ;;  %3936 = vrot.lane.b32.xlu0 %v6115_v50, %s6712_s30  ;;  %v6120_v46 = vpop.f32.mrb[58].mxu0 }
 0x1a9   : > { %v2164_v26 = vpack.c.bf16 %v2144_v40, %v2137_v7  ;;  %v3544_v53 = vpop.f32.mrb[59].mxu0 }
 0x1aa   : > { %v6123_v32 = vpop.f32.mrb[60].mxu0 }
 0x1ab   : > { %6182 = vmatmul.mubr.msk.bf16.gmra.mrb[120].mxu0 %vm1199_vm0, %v6677_v5  ;;  %3934 = vrot.lane.b32.xlu1 %v3528_v55, %s6712_s30  ;;  %v3557_v21 = vpop.f32.mrb[61].mxu0 }
 0x1ac   : > { %6185 = vmatprep.mubr.msk.bf16.mxu0 %vm1199_vm0, %v6678_v42  ;;  %3932 = vrot.lane.b32.xlu0 %v3525_v35, %s6712_s30  ;;  %v6124_v30 = vpop.f32.mrb[62].mxu0 }
 0x1ad   : > { %6026 = vmatmul.mubr.msk.bf16.gmra.mrb[72].mxu1 %vm1199_vm0, %v2162_v49  ;;  %v3560_v63 = vpop.f32.mrb[63].mxu0 }
 0x1ae   : > { %6029 = vmatprep.mubr.msk.bf16.mxu1 %vm1199_vm0, %v2163_v61  ;;  %v6127_v57 = vpop.f32.mrb[64].mxu0 }
 0x1af   : > { %3946 = vrot.lane.b32.xlu1 %v6120_v46, %s6712_s30  ;;  %v3573_v27 = vpop.f32.mrb[65].mxu0 }
 0x1b0   : > { %3944 = vrot.lane.b32.xlu0 %v6119_v48, %s6712_s30  ;;  %v6128_v49 = vpop.f32.mrb[66].mxu0 }
 0x1b1   : > { %v3576_v51 = vpop.f32.mrb[67].mxu0 }
 0x1b2   : > { %v6131_v19 = vpop.f32.mrb[68].mxu0 }
 0x1b3   : > { %6186 = vmatmul.mubr.msk.bf16.gmra.mrb[124].mxu0 %vm1199_vm0, %v6679_v60  ;;  %3942 = vrot.lane.b32.xlu1 %v3544_v53, %s6712_s30  ;;  %v3589_v39 = vpop.f32.mrb[69].mxu0 }
 0x1b4   : > { %6189 = vmatprep.mubr.msk.bf16.mxu0 %vm1199_vm0, %v6680_v20  ;;  %3940 = vrot.lane.b32.xlu0 %v3541_v34, %s6712_s30  ;;  %v6132_v33 = vpop.f32.mrb[70].mxu0 }
 0x1b5   : > { %6030 = vmatmul.mubr.msk.bf16.gmra.mrb[76].mxu1 %vm1199_vm0, %v2164_v26  ;;  %v3592_v29 = vpop.f32.mrb[71].mxu0 }
 0x1b6   : > { %6037 = vmatprep.mubr.msk.bf16.mxu1 %vm1199_vm0, %v6326_v9  ;;  %v6135_v3 = vpop.f32.mrb[72].mxu0 }
 0x1b7   : > { %3954 = vrot.lane.b32.xlu1 %v6124_v30, %s6712_s30  ;;  %v3605_v1 = vpop.f32.mrb[73].mxu0 }
 0x1b8   : > { %3952 = vrot.lane.b32.xlu0 %v6123_v32, %s6712_s30  ;;  %v6136_v15 = vpop.f32.mrb[74].mxu0 }
 0x1b9   : > { %v3608_v16 = vpop.f32.mrb[75].mxu0 }
 0x1ba   : > { %v6139_v23 = vpop.f32.mrb[76].mxu0 }
 0x1bb   : > { %6190 = vmatmul.mubr.msk.bf16.gmra.mrb[128].mxu0 %vm1199_vm0, %v6681_v4  ;;  %3950 = vrot.lane.b32.xlu1 %v3560_v63, %s6712_s30  ;;  %v3621_v61 = vpop.f32.mrb[77].mxu0 }
 0x1bc   : > { %6193 = vmatprep.mubr.msk.bf16.mxu0 %vm1199_vm0, %v6682_v11  ;;  %3948 = vrot.lane.b32.xlu0 %v3557_v21, %s6712_s30  ;;  %v6140_v59 = vpop.f32.mrb[78].mxu0 }
 0x1bd   : > { %6038 = vmatmul.mubr.msk.bf16.vlgmr.msra.gmra.mrb[48].mxu1 %vm1199_vm0, %v6327_v13  ;;  %v3624_v43 = vpop.f32.mrb[79].mxu0 }
 0x1be   : > { %6041 = vmatprep.mubr.msk.bf16.mxu1 %vm1199_vm0, %v6328_v24  ;;  %6070 = vmatpush3.bf16.msra.mxu1 %v7655_v10  ;;  %v6685_v10 = vld [vmem:[%s6924_s23 + $0x168] sm:$0xff]   ;;  %v6143_v45 = vpop.f32.mrb[80].mxu0  ;;  %s8913_s23 = scalar_lea.vmem [#allocation3], %s6243_s28 }
 0x1bf   : > { %6071 = vmatprep.subr.bf16.mxu1 %v6343_v12  ;;  %3962 = vrot.lane.b32.xlu1 %v6128_v49, %s6712_s30  ;;  %v3637_v7 = vpop.f32.mrb[81].mxu0 }
 0x1c0   : > { %3960 = vrot.lane.b32.xlu0 %v6127_v57, %s6712_s30  ;;  %v6144_v40 = vpop.f32.mrb[82].mxu0 }
 0x1c1   : > { %v3640_v26 = vpop.f32.mrb[83].mxu0 }
 0x1c2   : > { %6072 = vmatpush3.bf16.msra.mxu1 %v6343_v12  ;;  %v6147_v5 = vpop.f32.mrb[84].mxu0 }
 0x1c3   : > { %6194 = vmatmul.mubr.msk.bf16.gmra.mrb[132].mxu0 %vm1199_vm0, %v6683_v37  ;;  %3958 = vrot.lane.b32.xlu1 %v3576_v51, %s6712_s30  ;;  %v3653_v42 = vpop.f32.mrb[85].mxu0 }
 0x1c4   : > { %6197 = vmatprep.mubr.msk.bf16.mxu0 %vm1199_vm0, %v6684_v31  ;;  %3956 = vrot.lane.b32.xlu0 %v3573_v27, %s6712_s30  ;;  %v6148_v9 = vpop.f32.mrb[86].mxu0 }
 0x1c5   : > { %6042 = vmatmul.mubr.msk.bf16.gmra.mrb[52].mxu1 %vm1199_vm0, %v6329_v22  ;;  %v3656_v60 = vpop.f32.mrb[87].mxu0 }
 0x1c6   : > { %6045 = vmatprep.mubr.msk.bf16.mxu1 %vm1199_vm0, %v6330_v2 }
 0x1c7   : > { %3970 = vrot.lane.b32.xlu1 %v6132_v33, %s6712_s30 }
 0x1c8   : > { %3968 = vrot.lane.b32.xlu0 %v6131_v19, %s6712_s30 }
 0x1cb   : > { %6198 = vmatmul.mubr.msk.bf16.gmra.mrb[136].mxu0 %vm1199_vm0, %v6685_v10  ;;  %3966 = vrot.lane.b32.xlu1 %v3592_v29, %s6712_s30 }
 0x1cc   : > { %6201 = vmatprep.mubr.msk.bf16.mxu0 %vm1199_vm0, %v6686_v54  ;;  %3964 = vrot.lane.b32.xlu0 %v3589_v39, %s6712_s30 }
 0x1cd   : > { %6046 = vmatmul.mubr.msk.bf16.gmra.mrb[56].mxu1 %vm1199_vm0, %v6331_v38 }
 0x1ce   : > { %6049 = vmatprep.mubr.msk.bf16.mxu1 %vm1199_vm0, %v6332_v62 }
 0x1cf   : > { %3978 = vrot.lane.b32.xlu1 %v6136_v15, %s6712_s30 }
 0x1d0   : > { %3976 = vrot.lane.b32.xlu0 %v6135_v3, %s6712_s30 }
 0x1d3   : > { %6202 = vmatmul.mubr.msk.bf16.gmra.mrb[140].mxu0 %vm1199_vm0, %v6687_v47  ;;  %3974 = vrot.lane.b32.xlu1 %v3608_v16, %s6712_s30 }
 0x1d4   : > { %3972 = vrot.lane.b32.xlu0 %v3605_v1, %s6712_s30 }
 0x1d5   : > { %6050 = vmatmul.mubr.msk.bf16.gmra.mrb[60].mxu1 %vm1199_vm0, %v6333_v41 }
 0x1d6   : > { %6053 = vmatprep.mubr.msk.bf16.mxu1 %vm1199_vm0, %v6334_v44 }
 0x1d7   : > { %3986 = vrot.lane.b32.xlu1 %v6140_v59, %s6712_s30 }
 0x1d8   : > { %3984 = vrot.lane.b32.xlu0 %v6139_v23, %s6712_s30 }
 0x1db   : > { %3982 = vrot.lane.b32.xlu1 %v3624_v43, %s6712_s30 }
 0x1dc   : > { %3980 = vrot.lane.b32.xlu0 %v3621_v61, %s6712_s30 }
 0x1dd   : > { %6054 = vmatmul.mubr.msk.bf16.gmra.mrb[64].mxu1 %vm1199_vm0, %v6335_v6 }
 0x1de   : > { %6057 = vmatprep.mubr.msk.bf16.mxu1 %vm1199_vm0, %v6336_v25 }
 0x1df   : > { %4250 = vrot.lane.b32.xlu1 %v6144_v40, %s6712_s30 }
 0x1e0   : > { %4248 = vrot.lane.b32.xlu0 %v6143_v45, %s6712_s30 }
 0x1e3   : > { %4246 = vrot.lane.b32.xlu1 %v3640_v26, %s6712_s30 }
 0x1e4   : > { %4244 = vrot.lane.b32.xlu0 %v3637_v7, %s6712_s30 }
 0x1e5   : > { %6058 = vmatmul.mubr.msk.bf16.gmra.mrb[68].mxu1 %vm1199_vm0, %v6337_v17 }
 0x1e6   : > { %6061 = vmatprep.mubr.msk.bf16.mxu1 %vm1199_vm0, %v6338_v14 }
 0x1e7   : > { %4258 = vrot.lane.b32.xlu1 %v6148_v9, %s6712_s30 }
 0x1e8   : > { %4256 = vrot.lane.b32.xlu0 %v6147_v5, %s6712_s30 }
 0x1eb   : > { %4254 = vrot.lane.b32.xlu1 %v3656_v60, %s6712_s30 }
 0x1ec   : > { %4252 = vrot.lane.b32.xlu0 %v3653_v42, %s6712_s30 }
 0x1ed   : > { %6062 = vmatmul.mubr.msk.bf16.gmra.mrb[72].mxu1 %vm1199_vm0, %v6339_v36 }
 0x1ee   : > { %6065 = vmatprep.mubr.msk.bf16.mxu1 %vm1199_vm0, %v6340_v56  ;;  %v7967_v56 = vld [vmem:[%s9433_s6] ss:$0 sm:$0xff] }
 0x1f5   : > { %6066 = vmatmul.mubr.msk.bf16.gmra.mrb[76].mxu1 %vm1199_vm0, %v6341_v18 }
 0x23e   : > { %v6151_v20 = vpop.f32.mrb[88].mxu0 }
 0x23f   : > { %v3669_v13 = vpop.f32.mrb[89].mxu0  ;;  %4264 = vrot.lane.b32.xlu0 %v6151_v20, %s6712_s30 }
 0x240   : > { %v6152_v24 = vpop.f32.mrb[90].mxu0 }
 0x241   : > { %v3672_v4 = vpop.f32.mrb[91].mxu0  ;;  %4266 = vrot.lane.b32.xlu1 %v6152_v24, %s6712_s30 }
 0x243   : > { %4260 = vrot.lane.b32.xlu0 %v3669_v13, %s6712_s30 }
 0x245   : > { %4262 = vrot.lane.b32.xlu1 %v3672_v4, %s6712_s30 }
 0x246   : > { %v6155_v11 = vpop.f32.mrb[92].mxu0 }
 0x247   : > { %v3685_v22 = vpop.f32.mrb[93].mxu0  ;;  %4272 = vrot.lane.b32.xlu0 %v6155_v11, %s6712_s30 }
 0x248   : > { %v6156_v2 = vpop.f32.mrb[94].mxu0 }
 0x249   : > { %v3688_v37 = vpop.f32.mrb[95].mxu0  ;;  %4274 = vrot.lane.b32.xlu1 %v6156_v2, %s6712_s30 }
 0x24b   : > { %4268 = vrot.lane.b32.xlu0 %v3685_v22, %s6712_s30 }
 0x24d   : > { %4270 = vrot.lane.b32.xlu1 %v3688_v37, %s6712_s30 }
 0x24e   : > { %v6159_v31 = vpop.f32.mrb[96].mxu0 }
 0x24f   : > { %v3701_v38 = vpop.f32.mrb[97].mxu0  ;;  %4280 = vrot.lane.b32.xlu0 %v6159_v31, %s6712_s30 }
 0x250   : > { %v6160_v62 = vpop.f32.mrb[98].mxu0 }
 0x251   : > { %v7939_v10 = vpop.f32.mrb[99].mxu0  ;;  %4282 = vrot.lane.b32.xlu1 %v6160_v62, %s6712_s30 }
 0x253   : > { %4276 = vrot.lane.b32.xlu0 %v3701_v38, %s6712_s30 }
 0x255   : > { %4278 = vrot.lane.b32.xlu1 %v7939_v10, %s6712_s30 }
 0x256   : > { %v7942_v54 = vpop.f32.mrb[100].mxu0 }
 0x257   : > { %v7945_v41 = vpop.f32.mrb[101].mxu0  ;;  %4288 = vrot.lane.b32.xlu0 %v7942_v54, %s6712_s30 }
 0x258   : > { %v7947_v44 = vpop.f32.mrb[102].mxu0 }
 0x259   : > { %v7949_v47 = vpop.f32.mrb[103].mxu0  ;;  %4290 = vrot.lane.b32.xlu1 %v7947_v44, %s6712_s30 }
 0x25b   : > { %4284 = vrot.lane.b32.xlu0 %v7945_v41, %s6712_s30 }
 0x25d   : > { %4286 = vrot.lane.b32.xlu1 %v7949_v47, %s6712_s30 }
 0x25e   : > { %v7952_v6 = vpop.f32.mrb[104].mxu0 }
 0x25f   : > { %v7955_v25 = vpop.f32.mrb[105].mxu0  ;;  %4296 = vrot.lane.b32.xlu0 %v7952_v6, %s6712_s30  ;;  %v8093_v6 = vpop.permute.xlu0 %3924 }
 0x260   : > { %v7957_v17 = vpop.f32.mrb[106].mxu0  ;;  %9465 = vst [vmem:[#allocation4_spill] sm:$0xff] %v8093_v6 }
 0x261   : > { %v7959_v14 = vpop.f32.mrb[107].mxu0  ;;  %4298 = vrot.lane.b32.xlu1 %v7957_v17, %s6712_s30 }
 0x263   : > { %4292 = vrot.lane.b32.xlu0 %v7955_v25, %s6712_s30 }
 0x265   : > { %4294 = vrot.lane.b32.xlu1 %v7959_v14, %s6712_s30 }
 0x266   : > { %v7962_v36 = vpop.f32.mrb[108].mxu0 }
 0x267   : > { %v7970_v18 = vpop.f32.mrb[109].mxu0  ;;  %4304 = vrot.lane.b32.xlu0 %v7962_v36, %s6712_s30 }
 0x268   : > { %v7972_v58 = vpop.f32.mrb[110].mxu0 }
 0x269   : > { %v7974_v52 = vpop.f32.mrb[111].mxu0  ;;  %4306 = vrot.lane.b32.xlu1 %v7972_v58, %s6712_s30 }
 0x26b   : > { %4300 = vrot.lane.b32.xlu0 %v7970_v18, %s6712_s30 }
 0x26d   : > { %4302 = vrot.lane.b32.xlu1 %v7974_v52, %s6712_s30 }
 0x26e   : > { %v7980_v50 = vpop.f32.mrb[112].mxu0 }
 0x26f   : > { %v7986_v55 = vpop.f32.mrb[113].mxu0  ;;  %4569 = vrot.lane.b32.xlu0 %v7980_v50, %s6712_s30 }
 0x270   : > { %v7992_v53 = vpop.f32.mrb[114].mxu0 }
 0x271   : > { %v7998_v30 = vpop.f32.mrb[115].mxu0  ;;  %4571 = vrot.lane.b32.xlu1 %v7992_v53, %s6712_s30 }
 0x273   : > { %4565 = vrot.lane.b32.xlu0 %v7986_v55, %s6712_s30 }
 0x275   : > { %4567 = vrot.lane.b32.xlu1 %v7998_v30, %s6712_s30 }
 0x276   : > { %v8002_v57 = vpop.f32.mrb[116].mxu0 }
 0x277   : > { %v8006_v49 = vpop.f32.mrb[117].mxu0  ;;  %4577 = vrot.lane.b32.xlu0 %v8002_v57, %s6712_s30 }
 0x278   : > { %v8008_v51 = vpop.f32.mrb[118].mxu0 }
 0x279   : > { %v8010_v39 = vpop.f32.mrb[119].mxu0  ;;  %4579 = vrot.lane.b32.xlu1 %v8008_v51, %s6712_s30 }
 0x27b   : > { %4573 = vrot.lane.b32.xlu0 %v8006_v49, %s6712_s30 }
 0x27d   : > { %4575 = vrot.lane.b32.xlu1 %v8010_v39, %s6712_s30 }
 0x27e   : > { %v8016_v3 = vpop.f32.mrb[120].mxu0 }
 0x27f   : > { %v8022_v16 = vpop.f32.mrb[121].mxu0  ;;  %4585 = vrot.lane.b32.xlu0 %v8016_v3, %s6712_s30 }
 0x280   : > { %v8028_v43 = vpop.f32.mrb[122].mxu0 }
 0x281   : > { %v8034_v40 = vpop.f32.mrb[123].mxu0  ;;  %4587 = vrot.lane.b32.xlu1 %v8028_v43, %s6712_s30 }
 0x283   : > { %4581 = vrot.lane.b32.xlu0 %v8022_v16, %s6712_s30 }
 0x285   : > { %4583 = vrot.lane.b32.xlu1 %v8034_v40, %s6712_s30 }
 0x286   : > { %v8039_v5 = vpop.f32.mrb[124].mxu0 }
 0x287   : > { %v8044_v9 = vpop.f32.mrb[125].mxu0  ;;  %4593 = vrot.lane.b32.xlu0 %v8039_v5, %s6712_s30 }
 0x288   : > { %v8046_v20 = vpop.f32.mrb[126].mxu0 }
 0x289   : > { %v8048_v11 = vpop.f32.mrb[127].mxu0  ;;  %4595 = vrot.lane.b32.xlu1 %v8046_v20, %s6712_s30 }
 0x28b   : > { %4589 = vrot.lane.b32.xlu0 %v8044_v9, %s6712_s30 }
 0x28d   : > { %4591 = vrot.lane.b32.xlu1 %v8048_v11, %s6712_s30 }
 0x28e   : > { %v8055_v38 = vpop.f32.mrb[128].mxu0 }
 0x28f   : > { %4601 = vrot.lane.b32.xlu0 %v8055_v38, %s6712_s30 }
 0x290   : > { %v6039_v12 = vpop.f32.mrb[48].mxu1 }
 0x291   : > { %v7977_v8 = vadd.f32 %v6039_v12, %v7967_v56  ;;  %v2564_v28 = vpop.f32.mrb[49].mxu1 }
 0x292   : > { %v7983_v35 = vadd.f32 %v7967_v56, %v2564_v28  ;;  %v6040_v0 = vpop.f32.mrb[50].mxu1  ;;  %v8062_v28 = vpop.f32.mrb[129].mxu0 }
 0x293   : > { %v5542_v48 = vmul.f32 -1.442695, %v7977_v8  ;;  %v7990_v34 = vadd.f32 %v6040_v0, %v7967_v56  ;;  %v2567_v46 = vpop.f32.mrb[51].mxu1  ;;  %4597 = vrot.lane.b32.xlu0 %v8062_v28, %s6712_s30 }
 0x294   : > { %v5540_v32 = vmul.f32 -1.442695, %v7983_v35  ;;  %v7996_v21 = vadd.f32 %v7967_v56, %v2567_v46 }
 0x295   : > { %6408 = vpow2.f32 %v5542_v48  ;;  %v5543_v63 = vmul.f32 -1.442695, %v7990_v34 }
 0x296   : > { %6410 = vpow2.f32 %v5540_v32  ;;  %v5541_v27 = vmul.f32 -1.442695, %v7996_v21  ;;  %v8068_v32 = vpop.f32.mrb[130].mxu0 }
 0x297   : > { %6412 = vpow2.f32 %v5543_v63  ;;  %4603 = vrot.lane.b32.xlu1 %v8068_v32, %s6712_s30 }
 0x298   : > { %6414 = vpow2.f32 %v5541_v27  ;;  %v6043_v19 = vpop.f32.mrb[52].mxu1 }
 0x299   : > { %v8013_v33 = vadd.f32 %v6043_v19, %v7967_v56  ;;  %v2580_v29 = vpop.f32.mrb[53].mxu1  ;;  %v8074_v19 = vpop.f32.mrb[131].mxu0 }
 0x29a   : > { %v8019_v1 = vadd.f32 %v7967_v56, %v2580_v29  ;;  %v6044_v15 = vpop.f32.mrb[54].mxu1  ;;  %v8079_v29 = vpop.f32.mrb[132].mxu0 }
 0x29b   : > { %v5546_v23 = vmul.f32 -1.442695, %v8013_v33  ;;  %v8026_v61 = vadd.f32 %v6044_v15, %v7967_v56  ;;  %v2583_v59 = vpop.f32.mrb[55].mxu1  ;;  %4599 = vrot.lane.b32.xlu1 %v8074_v19, %s6712_s30  ;;  %4609 = vrot.lane.b32.xlu0 %v8079_v29, %s6712_s30 }
 0x29c   : > { %v5544_v45 = vmul.f32 -1.442695, %v8019_v1  ;;  %v8032_v7 = vadd.f32 %v7967_v56, %v2583_v59 }
 0x29d   : > { %6416 = vpow2.f32 %v5546_v23  ;;  %v5547_v26 = vmul.f32 -1.442695, %v8026_v61  ;;  %v8084_v23 = vpop.f32.mrb[133].mxu0 }
 0x29e   : > { %6418 = vpow2.f32 %v5544_v45  ;;  %v5545_v42 = vmul.f32 -1.442695, %v8032_v7  ;;  %v8086_v45 = vpop.f32.mrb[134].mxu0 }
 0x29f   : > { %v6409_v60 = vpop.eup %6408  ;;  %6420 = vpow2.f32 %v5547_v26  ;;  %4611 = vrot.lane.b32.xlu1 %v8086_v45, %s6712_s30  ;;  %4605 = vrot.lane.b32.xlu0 %v8084_v23, %s6712_s30 }
 0x2a0   : > { %v6411_v13 = vpop.eup %6410  ;;  %v2828_v24 = vadd.f32 1.0, %v6409_v60  ;;  %6422 = vpow2.f32 %v5545_v42  ;;  %v6047_v4 = vpop.f32.mrb[56].mxu1 }
 0x2a1   : > { %v6413_v22 = vpop.eup %6412  ;;  %v2826_v2 = vadd.f32 1.0, %v6411_v13  ;;  %v8051_v37 = vadd.f32 %v6047_v4, %v7967_v56  ;;  %v2596_v31 = vpop.f32.mrb[57].mxu1 }
 0x2a2   : > { %v6415_v62 = vpop.eup %6414  ;;  %6424 = vrcp.f32 %v2828_v24  ;;  %v2829_v10 = vadd.f32 1.0, %v6413_v22  ;;  %v8058_v54 = vadd.f32 %v7967_v56, %v2596_v31  ;;  %v6048_v12 = vpop.f32.mrb[58].mxu1 }
 0x2a3   : > { %6426 = vrcp.f32 %v2826_v2  ;;  %v2827_v0 = vadd.f32 1.0, %v6415_v62  ;;  %v5550_v48 = vmul.f32 -1.442695, %v8051_v37  ;;  %v8066_v44 = vadd.f32 %v6048_v12, %v7967_v56  ;;  %v2599_v46 = vpop.f32.mrb[59].mxu1  ;;  %v8088_v13 = vpop.f32.mrb[135].mxu0 }
 0x2a4   : > { %6428 = vrcp.f32 %v2829_v10  ;;  %v5548_v63 = vmul.f32 -1.442695, %v8058_v54  ;;  %v8072_v27 = vadd.f32 %v7967_v56, %v2599_v46  ;;  %4607 = vrot.lane.b32.xlu1 %v8088_v13, %s6712_s30 }
 0x2a5   : > { %6430 = vrcp.f32 %v2827_v0  ;;  %v5551_v41 = vmul.f32 -1.442695, %v8066_v44 }
 0x2a6   : > { %6432 = vpow2.f32 %v5550_v48  ;;  %v5549_v15 = vmul.f32 -1.442695, %v8072_v27 }
 0x2a7   : > { %v6417_v59 = vpop.eup %6416  ;;  %6434 = vpow2.f32 %v5548_v63  ;;  %v8106_v63 = vpop.f32.mrb[136].mxu0 }
 0x2a8   : > { %v6419_v26 = vpop.eup %6418  ;;  %v2832_v42 = vadd.f32 1.0, %v6417_v59  ;;  %6436 = vpow2.f32 %v5551_v41  ;;  %v6051_v60 = vpop.f32.mrb[60].mxu1  ;;  %4617 = vrot.lane.b32.xlu0 %v8106_v63, %s6712_s30 }
 0x2a9   : > { %v6421_v47 = vpop.eup %6420  ;;  %v2830_v24 = vadd.f32 1.0, %v6419_v26  ;;  %6438 = vpow2.f32 %v5549_v15  ;;  %v8091_v4 = vadd.f32 %v6051_v60, %v7967_v56  ;;  %v2612_v22 = vpop.f32.mrb[61].mxu1 }
 0x2aa   : > { %v6423_v2 = vpop.eup %6422  ;;  %6440 = vrcp.f32 %v2832_v42  ;;  %v2833_v31 = vadd.f32 1.0, %v6421_v47  ;;  %v8098_v62 = vadd.f32 %v7967_v56, %v2612_v22  ;;  %v6052_v10 = vpop.f32.mrb[62].mxu1 }
 0x2ab   : > { %6442 = vrcp.f32 %v2830_v24  ;;  %v2831_v12 = vadd.f32 1.0, %v6423_v2  ;;  %v5554_v0 = vmul.f32 -1.442695, %v8091_v4  ;;  %v8104_v48 = vadd.f32 %v6052_v10, %v7967_v56  ;;  %v2615_v46 = vpop.f32.mrb[63].mxu1  ;;  %v8112_v59 = vpop.permute.xlu1 %3928 }
 0x2ac   : > { %v6425_v17 = vpop.eup %6424  ;;  %6444 = vrcp.f32 %v2833_v31  ;;  %v5552_v41 = vmul.f32 -1.442695, %v8098_v62  ;;  %v8110_v15 = vadd.f32 %v7967_v56, %v2615_v46  ;;  %9466 = vst [vmem:[#allocation5_spill] sm:$0xff] %v8112_v59  ;;  %v8114_v25 = vpop.f32.mrb[137].mxu0 }
 0x2ad   : > { %9467 = vst [vmem:[#allocation8_spill] sm:$0xff] %v8114_v25  ;;  %v6427_v26 = vpop.eup %6426  ;;  %6446 = vrcp.f32 %v2831_v12  ;;  %v5555_v42 = vmul.f32 -1.442695, %v8104_v48  ;;  %v8119_v60 = vpop.f32.mrb[138].mxu0  ;;  %v2924_v31 = vmul.f32 %v6425_v17, %v7977_v8 }
 0x2ae   : > { %9468 = vst [vmem:[#allocation12_spill] sm:$0xff] %v8119_v60  ;;  %v6429_v47 = vpop.eup %6428  ;;  %6448 = vpow2.f32 %v5554_v0  ;;  %v5553_v24 = vmul.f32 -1.442695, %v8110_v15  ;;  %v8124_v22 = vpop.f32.mrb[139].mxu0  ;;  %v2922_v0 = vmul.f32 %v6427_v26, %v7983_v35 }
 0x2af   : > { %9469 = vst [vmem:[#allocation9_spill] sm:$0xff] %v8124_v22  ;;  %v6431_v2 = vpop.eup %6430  ;;  %v2925_v10 = vmul.f32 %v6429_v47, %v7990_v34  ;;  %6450 = vpow2.f32 %v5552_v41  ;;  %v8128_v12 = vpop.permute.xlu0 %3926 }
 0x2b0   : > { %9470 = vst [vmem:[#allocation13_spill] sm:$0xff] %v8128_v12  ;;  %v8130_v14 = vpop.f32.mrb[140].mxu0  ;;  %v6433_v46 = vpop.eup %6432  ;;  %v2923_v6 = vmul.f32 %v6431_v2, %v7996_v21  ;;  %6452 = vpow2.f32 %v5555_v42 }
 0x2b1   : > { %v6055_v59 = vpop.f32.mrb[64].mxu1  ;;  %v8134_v36 = vpop.f32.mrb[141].mxu0  ;;  %v2955_v25 = vpack.c.bf16 %v2925_v10, %v2924_v31  ;;  %v2836_v60 = vadd.f32 1.0, %v6433_v46  ;;  %6454 = vpow2.f32 %v5553_v24 }
 0x2b2   : > { %v6435_v22 = vpop.eup %6434  ;;  %v8137_v8 = vadd.f32 %v6055_v59, %v7967_v56  ;;  %v2628_v34 = vpop.f32.mrb[65].mxu1  ;;  %v2954_v41 = vpack.c.bf16 %v2923_v6, %v2922_v0 }
 0x2b3   : > { %v8141_v17 = vpop.f32.mrb[142].mxu0  ;;  %v6437_v35 = vpop.eup %6436  ;;  %v2834_v21 = vadd.f32 1.0, %v6435_v22  ;;  %v8144_v26 = vadd.f32 %v7967_v56, %v2628_v34  ;;  %6456 = vrcp.f32 %v2836_v60 }
 0x2b4   : > { %v6056_v42 = vpop.f32.mrb[66].mxu1  ;;  %v8146_v47 = vpop.permute.xlu1 %3930  ;;  %v2837_v24 = vadd.f32 1.0, %v6437_v35  ;;  %v5558_v2 = vmul.f32 -1.442695, %v8137_v8  ;;  %6073 = vmatprep.mubr.msk.bf16.mxu1 %vm1199_vm0, %v2954_v41 }
 0x2b5   : > { %9471 = vst [vmem:[#allocation10_spill] sm:$0xff] %v8146_v47  ;;  %v6439_v59 = vpop.eup %6438  ;;  %v8152_v58 = vadd.f32 %v6056_v42, %v7967_v56  ;;  %v2631_v31 = vpop.f32.mrb[67].mxu1  ;;  %6458 = vrcp.f32 %v2834_v21  ;;  %v5556_v46 = vmul.f32 -1.442695, %v8144_v26  ;;  %6074 = vmatmul.mubr.msk.bf16.vlgmr.msra.gmra.mrb[80].mxu1 %vm1199_vm0, %v2955_v25 }
 0x2b6   : > { %v8154_v6 = vpop.f32.mrb[143].mxu0  ;;  %v6441_v22 = vpop.eup %6440  ;;  %v2835_v10 = vadd.f32 1.0, %v6439_v59  ;;  %v8158_v0 = vadd.f32 %v7967_v56, %v2631_v31  ;;  %6460 = vrcp.f32 %v2837_v24 }
 0x2b7   : > { %9472 = vst [vmem:[#allocation6_spill] sm:$0xff] %v8154_v6  ;;  %v6443_v18 = vpop.eup %6442  ;;  %v5559_v60 = vmul.f32 -1.442695, %v8152_v58  ;;  %v8166_v21 = vpop.permute.xlu0 %3936  ;;  %v2928_v41 = vmul.f32 %v6441_v22, %v8013_v33 }
 0x2b8   : > { %v6445_v34 = vpop.eup %6444  ;;  %6462 = vrcp.f32 %v2835_v10  ;;  %v5557_v35 = vmul.f32 -1.442695, %v8158_v0  ;;  %9473 = vst [vmem:[#allocation14_spill] sm:$0xff] %v8166_v21  ;;  %v2926_v25 = vmul.f32 %v6443_v18, %v8019_v1  ;;  %v6059_v31 = vpop.f32.mrb[68].mxu1 }
 0x2b9   : > { %v6447_v42 = vpop.eup %6446  ;;  %v2929_v59 = vmul.f32 %v6445_v34, %v8026_v61  ;;  %6464 = vpow2.f32 %v5558_v2  ;;  %v8175_v21 = vadd.f32 %v6059_v31, %v7967_v56  ;;  %v2644_v50 = vpop.f32.mrb[69].mxu1 }
 0x2ba   : > { %v6449_v24 = vpop.eup %6448  ;;  %v2927_v52 = vmul.f32 %v6447_v42, %v8032_v7  ;;  %6466 = vpow2.f32 %v5556_v46  ;;  %v8177_v6 = vpop.permute.xlu1 %3938  ;;  %v8182_v7 = vadd.f32 %v7967_v56, %v2644_v50 }
 0x2bb   : > { %v6451_v10 = vpop.eup %6450  ;;  %v2957_v12 = vpack.c.bf16 %v2929_v59, %v2928_v41  ;;  %v2840_v47 = vadd.f32 1.0, %v6449_v24  ;;  %6468 = vpow2.f32 %v5559_v60  ;;  %v6060_v2 = vpop.f32.mrb[70].mxu1  ;;  %v5562_v18 = vmul.f32 -1.442695, %v8175_v21 }
 0x2bc   : > { %v6453_v33 = vpop.eup %6452  ;;  %v2956_v61 = vpack.c.bf16 %v2927_v52, %v2926_v25  ;;  %v2838_v1 = vadd.f32 1.0, %v6451_v10  ;;  %6470 = vpow2.f32 %v5557_v35  ;;  %v8188_v60 = vadd.f32 %v6060_v2, %v7967_v56  ;;  %v2647_v53 = vpop.f32.mrb[71].mxu1 }
 0x2bd   : > { %v6455_v22 = vpop.eup %6454  ;;  %6472 = vrcp.f32 %v2840_v47  ;;  %v2841_v46 = vadd.f32 1.0, %v6453_v33  ;;  %v5560_v35 = vmul.f32 -1.442695, %v8182_v7  ;;  %v8192_v42 = vadd.f32 %v7967_v56, %v2647_v53  ;;  %v8195_v41 = vpop.permute.xlu0 %3932 }
 0x2be   : > { %6474 = vrcp.f32 %v2838_v1  ;;  %v2839_v34 = vadd.f32 1.0, %v6455_v22  ;;  %6077 = vmatprep.mubr.msk.bf16.mxu1 %vm1199_vm0, %v2956_v61  ;;  %v6457_v55 = vpop.eup %6456  ;;  %v5563_v47 = vmul.f32 -1.442695, %v8188_v60  ;;  %v8204_v52 = vpop.permute.xlu1 %3934 }
 0x2bf   : > { %6476 = vrcp.f32 %v2841_v46  ;;  %6078 = vmatmul.mubr.msk.bf16.gmra.mrb[84].mxu1 %vm1199_vm0, %v2957_v12  ;;  %v6459_v59 = vpop.eup %6458  ;;  %v5561_v24 = vmul.f32 -1.442695, %v8192_v42  ;;  %v2932_v10 = vmul.f32 %v6457_v55, %v8051_v37 }
 0x2c0   : > { %6478 = vrcp.f32 %v2839_v34  ;;  %v6461_v25 = vpop.eup %6460  ;;  %v6063_v12 = vpop.f32.mrb[72].mxu1  ;;  %v2930_v30 = vmul.f32 %v6459_v59, %v8058_v54 }
 0x2c1   : > { %6480 = vpow2.f32 %v5562_v18  ;;  %v2933_v50 = vmul.f32 %v6461_v25, %v8066_v44  ;;  %v8211_v1 = vadd.f32 %v6063_v12, %v7967_v56  ;;  %v2660_v57 = vpop.f32.mrb[73].mxu1  ;;  %v8218_v18 = vpop.permute.xlu0 %3944 }
 0x2c2   : > { %v6463_v31 = vpop.eup %6462  ;;  %6482 = vpow2.f32 %v5560_v35  ;;  %v8216_v44 = vadd.f32 %v7967_v56, %v2660_v57  ;;  %v6064_v46 = vpop.f32.mrb[74].mxu1 }
 0x2c3   : > { %v6465_v33 = vpop.eup %6464  ;;  %v2931_v61 = vmul.f32 %v6463_v31, %v8072_v27  ;;  %6484 = vpow2.f32 %v5563_v47  ;;  %v2959_v22 = vpack.c.bf16 %v2933_v50, %v2932_v10  ;;  %v8223_v34 = vadd.f32 %v6064_v46, %v7967_v56  ;;  %v2663_v51 = vpop.f32.mrb[75].mxu1 }
 0x2c4   : > { %v6467_v2 = vpop.eup %6466  ;;  %v2844_v37 = vadd.f32 1.0, %v6465_v33  ;;  %6486 = vpow2.f32 %v5561_v24  ;;  %v5566_v47 = vmul.f32 -1.442695, %v8211_v1  ;;  %v8227_v59 = vadd.f32 %v7967_v56, %v2663_v51  ;;  %v8231_v31 = vpop.permute.xlu1 %3946 }
 0x2c5   : > { %v6469_v54 = vpop.eup %6468  ;;  %v2958_v27 = vpack.c.bf16 %v2931_v61, %v2930_v30  ;;  %v2842_v53 = vadd.f32 1.0, %v6467_v2  ;;  %v5564_v49 = vmul.f32 -1.442695, %v8216_v44  ;;  %v5567_v50 = vmul.f32 -1.442695, %v8223_v34  ;;  %v8242_v2 = vpop.permute.xlu0 %3940 }
 0x2c6   : > { %v6471_v35 = vpop.eup %6470  ;;  %6488 = vrcp.f32 %v2844_v37  ;;  %v2845_v55 = vadd.f32 1.0, %v6469_v54  ;;  %v5565_v33 = vmul.f32 -1.442695, %v8227_v59 }
 0x2c7   : > { %v6473_v24 = vpop.eup %6472  ;;  %6490 = vrcp.f32 %v2842_v53  ;;  %v2843_v25 = vadd.f32 1.0, %v6471_v35  ;;  %6081 = vmatprep.mubr.msk.bf16.mxu1 %vm1199_vm0, %v2958_v27 }
 0x2c8   : > { %v6475_v10 = vpop.eup %6474  ;;  %6492 = vrcp.f32 %v2845_v55  ;;  %6082 = vmatmul.mubr.msk.bf16.gmra.mrb[88].mxu1 %vm1199_vm0, %v2959_v22  ;;  %v2936_v61 = vmul.f32 %v6473_v24, %v8091_v4  ;;  %v6067_v39 = vpop.f32.mrb[76].mxu1 }
 0x2c9   : > { %v6477_v12 = vpop.eup %6476  ;;  %6494 = vrcp.f32 %v2843_v25  ;;  %v2934_v46 = vmul.f32 %v6475_v10, %v8098_v62  ;;  %v8247_v3 = vadd.f32 %v6067_v39, %v7967_v56  ;;  %v2676_v54 = vpop.f32.mrb[77].mxu1 }
 0x2ca   : > { %v6479_v30 = vpop.eup %6478  ;;  %v2937_v57 = vmul.f32 %v6477_v12, %v8104_v48  ;;  %6496 = vpow2.f32 %v5566_v47  ;;  %v8252_v53 = vadd.f32 %v7967_v56, %v2676_v54  ;;  %v6068_v51 = vpop.f32.mrb[78].mxu1 }
 0x2cb   : > { %v6481_v37 = vpop.eup %6480  ;;  %v2935_v22 = vmul.f32 %v6479_v30, %v8110_v15  ;;  %6498 = vpow2.f32 %v5564_v49  ;;  %v2679_v55 = vpop.f32.mrb[79].mxu1  ;;  %v5570_v25 = vmul.f32 -1.442695, %v8247_v3  ;;  %v8260_v49 = vadd.f32 %v6068_v51, %v7967_v56 }
 0x2cc   : > { %v6483_v4 = vpop.eup %6482  ;;  %v2961_v27 = vpack.c.bf16 %v2937_v57, %v2936_v61  ;;  %v2848_v48 = vadd.f32 1.0, %v6481_v37  ;;  %6500 = vpow2.f32 %v5567_v50  ;;  %v8256_v47 = vpop.permute.xlu1 %3942  ;;  %v5568_v50 = vmul.f32 -1.442695, %v8252_v53 }
 0x2cd   : > { %v6485_v62 = vpop.eup %6484  ;;  %v2960_v15 = vpack.c.bf16 %v2935_v22, %v2934_v46  ;;  %v2846_v35 = vadd.f32 1.0, %v6483_v4  ;;  %6502 = vpow2.f32 %v5565_v33  ;;  %v8264_v16 = vadd.f32 %v7967_v56, %v2679_v55  ;;  %v8271_v30 = vpop.permute.xlu0 %3952 }
 0x2ce   : > { %v6487_v24 = vpop.eup %6486  ;;  %6504 = vrcp.f32 %v2848_v48  ;;  %v2849_v43 = vadd.f32 1.0, %v6485_v62  ;;  %v5571_v33 = vmul.f32 -1.442695, %v8260_v49 }
 0x2cf   : > { %6506 = vrcp.f32 %v2846_v35  ;;  %v2847_v10 = vadd.f32 1.0, %v6487_v24  ;;  %6085 = vmatprep.mubr.msk.bf16.mxu1 %vm1199_vm0, %v2960_v15  ;;  %v5569_v56 = vmul.f32 -1.442695, %v8264_v16 }
 0x2d0   : > { %v6489_v12 = vpop.eup %6488  ;;  %6508 = vrcp.f32 %v2849_v43  ;;  %6086 = vmatmul.mubr.msk.bf16.gmra.mrb[92].mxu1 %vm1199_vm0, %v2961_v27  ;;  %v8278_v46 = vpop.permute.xlu1 %3954 }
 0x2d1   : > { %v6491_v61 = vpop.eup %6490  ;;  %6510 = vrcp.f32 %v2847_v10  ;;  %v2940_v40 = vmul.f32 %v6489_v12, %v8137_v8  ;;  %v8286_v62 = vpop.permute.xlu0 %3948 }
 0x2d2   : > { %v6493_v57 = vpop.eup %6492  ;;  %6512 = vpow2.f32 %v5570_v25  ;;  %v2938_v5 = vmul.f32 %v6491_v61, %v8144_v26 }
 0x2d3   : > { %v6495_v39 = vpop.eup %6494  ;;  %v2941_v37 = vmul.f32 %v6493_v57, %v8152_v58  ;;  %6514 = vpow2.f32 %v5568_v50 }
 0x2d4   : > { %v6497_v22 = vpop.eup %6496  ;;  %v2939_v54 = vmul.f32 %v6495_v39, %v8158_v0  ;;  %6516 = vpow2.f32 %v5571_v33  ;;  %v8294_v35 = vpop.permute.xlu1 %3950 }
 0x2d5   : > { %v6499_v4 = vpop.eup %6498  ;;  %v2963_v27 = vpack.c.bf16 %v2941_v37, %v2940_v40  ;;  %v2852_v8 = vadd.f32 1.0, %v6497_v22  ;;  %6518 = vpow2.f32 %v5569_v56  ;;  %v8302_v50 = vpop.permute.xlu0 %3960 }
 0x2d6   : > { %v6501_v58 = vpop.eup %6500  ;;  %v2962_v48 = vpack.c.bf16 %v2939_v54, %v2938_v5  ;;  %v2850_v51 = vadd.f32 1.0, %v6499_v4  ;;  %9474 = vst [vmem:[#allocation11_spill] sm:$0xff] %v8302_v50 }
 0x2d7   : > { %v6503_v15 = vpop.eup %6502  ;;  %6520 = vrcp.f32 %v2852_v8  ;;  %v2853_v20 = vadd.f32 1.0, %v6501_v58 }
 0x2d8   : > { %v6505_v26 = vpop.eup %6504  ;;  %6522 = vrcp.f32 %v2850_v51  ;;  %v2851_v0 = vadd.f32 1.0, %v6503_v15  ;;  %6089 = vmatprep.mubr.msk.bf16.mxu1 %vm1199_vm0, %v2962_v48  ;;  %v8306_v32 = vpop.permute.xlu1 %3962  ;;  %v9481_v51 = vld [vmem:[#allocation8_spill] sm:$0xff] }
 0x2d9   : > { %v6507_v9 = vpop.eup %6506  ;;  %6524 = vrcp.f32 %v2853_v20  ;;  %6090 = vmatmul.mubr.msk.bf16.gmra.mrb[96].mxu1 %vm1199_vm0, %v2963_v27  ;;  %v2944_v43 = vmul.f32 %v6505_v26, %v8175_v21  ;;  %9475 = vst [vmem:[#allocation7_spill] sm:$0xff] %v8306_v32  ;;  %v8314_v40 = vpop.permute.xlu0 %3956  ;;  %4613 = vrot.lane.b32.xlu0 %v9481_v51, %s6712_s30 }
 0x2da   : > { %v6509_v55 = vpop.eup %6508  ;;  %6526 = vrcp.f32 %v2851_v0  ;;  %v2942_v10 = vmul.f32 %v6507_v9, %v8182_v7  ;;  %9476 = vst [vmem:[#allocation15_spill] sm:$0xff] %v8314_v40  ;;  %v9483_v9 = vld [vmem:[#allocation9_spill] sm:$0xff] }
 0x2db   : > { %v6511_v24 = vpop.eup %6510  ;;  %v2945_v11 = vmul.f32 %v6509_v55, %v8188_v60 }
 0x2dc   : > { %v6513_v25 = vpop.eup %6512  ;;  %v2943_v38 = vmul.f32 %v6511_v24, %v8192_v42  ;;  %v8324_v4 = vpop.permute.xlu1 %3958 }
 0x2dd   : > { %v6515_v12 = vpop.eup %6514  ;;  %v2965_v33 = vpack.c.bf16 %v2945_v11, %v2944_v43  ;;  %v2856_v61 = vadd.f32 1.0, %v6513_v25  ;;  %9477 = vst [vmem:[#allocation16_spill] sm:$0xff] %v8324_v4  ;;  %v8328_v45 = vpop.permute.xlu0 %3968  ;;  %4625 = vrot.lane.b32.xlu0 %v8130_v14, %s6712_s30 }
 0x2de   : > { %v6517_v56 = vpop.eup %6516  ;;  %v2964_v21 = vpack.c.bf16 %v2943_v38, %v2942_v10  ;;  %v2854_v57 = vadd.f32 1.0, %v6515_v12  ;;  %9478 = vst [vmem:[#allocation17_spill] sm:$0xff] %v8328_v45 }
 0x2df   : > { %v6519_v60 = vpop.eup %6518  ;;  %6528 = vrcp.f32 %v2856_v61  ;;  %v2857_v39 = vadd.f32 1.0, %v6517_v56 }
 0x2e0   : > { %6530 = vrcp.f32 %v2854_v57  ;;  %v2855_v7 = vadd.f32 1.0, %v6519_v60  ;;  %6093 = vmatprep.mubr.msk.bf16.mxu1 %vm1199_vm0, %v2964_v21 }
 0x2e1   : > { %v6521_v28 = vpop.eup %6520  ;;  %6532 = vrcp.f32 %v2857_v39  ;;  %6094 = vmatmul.mubr.msk.bf16.gmra.mrb[100].mxu1 %vm1199_vm0, %v2965_v33  ;;  %v8344_v26 = vpop.permute.xlu0 %3964  ;;  %4621 = vrot.lane.b32.xlu0 %v8134_v36, %s6712_s30 }
 0x2e2   : > { %v6523_v42 = vpop.eup %6522  ;;  %6534 = vrcp.f32 %v2855_v7  ;;  %v2948_v22 = vmul.f32 %v6521_v28, %v8211_v1 }
 0x2e3   : > { %v6525_v37 = vpop.eup %6524  ;;  %v2946_v29 = vmul.f32 %v6523_v42, %v8216_v44 }
 0x2e4   : > { %v6527_v19 = vpop.eup %6526  ;;  %v2949_v5 = vmul.f32 %v6525_v37, %v8223_v34  ;;  %v8334_v34 = vpop.permute.xlu1 %3970 }
 0x2e5   : > { %v2947_v54 = vmul.f32 %v6527_v19, %v8227_v59  ;;  %9479 = vst [vmem:[#allocation18_spill] sm:$0xff] %v8334_v34  ;;  %v9480_v59 = vld [vmem:[#allocation12_spill] sm:$0xff] }
 0x2e6   : > { %v2967_v27 = vpack.c.bf16 %v2949_v5, %v2948_v22  ;;  %4619 = vrot.lane.b32.xlu1 %v9480_v59, %s6712_s30  ;;  %9482 = vst [vmem:[#allocation12_spill] sm:$0xff] %v8344_v26 }
 0x2e7   : > { %v2966_v8 = vpack.c.bf16 %v2947_v54, %v2946_v29 }
 0x2e9   : > { %v6529_v1 = vpop.eup %6528  ;;  %6097 = vmatprep.mubr.msk.bf16.mxu1 %vm1199_vm0, %v2966_v8 }
 0x2ea   : > { %v6531_v23 = vpop.eup %6530  ;;  %6098 = vmatmul.mubr.msk.bf16.gmra.mrb[104].mxu1 %vm1199_vm0, %v2967_v27  ;;  %v2952_v13 = vmul.f32 %v6529_v1, %v8247_v3  ;;  %4615 = vrot.lane.b32.xlu1 %v9483_v9, %s6712_s30  ;;  %v8351_v3 = vpop.permute.xlu1 %3966 }
 0x2eb   : > { %v6533_v44 = vpop.eup %6532  ;;  %v2950_v63 = vmul.f32 %v6531_v23, %v8252_v53  ;;  %9484 = vst [vmem:[#allocation8_spill] sm:$0xff] %v8351_v3  ;;  %v8356_v53 = vpop.permute.xlu0 %3976 }
 0x2ec   : > { %v6535_v58 = vpop.eup %6534  ;;  %v2953_v48 = vmul.f32 %v6533_v44, %v8260_v49  ;;  %9485 = vst [vmem:[#allocation9_spill] sm:$0xff] %v8356_v53  ;;  %v9510_v53 = vld [vmem:[#allocation5_spill] sm:$0xff] }
 0x2ed   : > { %v2951_v15 = vmul.f32 %v6535_v58, %v8264_v16  ;;  %v9487_v16 = vld [vmem:[#allocation6_spill] sm:$0xff] }
 0x2ee   : > { %v2969_v20 = vpack.c.bf16 %v2953_v48, %v2952_v13  ;;  %4627 = vrot.lane.b32.xlu1 %v8141_v17, %s6712_s30  ;;  %v8360_v49 = vpop.permute.xlu1 %3978 }
 0x2ef   : > { %v2968_v0 = vpack.c.bf16 %v2951_v15, %v2950_v63  ;;  %9486 = vst [vmem:[#allocation19_spill] sm:$0xff] %v8360_v49  ;;  %v8364_v14 = vpop.permute.xlu0 %3972 }
 0x2f0   : > { %9488 = vst [vmem:[#allocation6_spill] sm:$0xff] %v8364_v14 }
 0x2f1   : > { %6101 = vmatprep.mubr.msk.bf16.mxu1 %vm1199_vm0, %v2968_v0 }
 0x2f2   : > { %6102 = vmatmul.mubr.msk.bf16.gmra.mrb[108].mxu1 %vm1199_vm0, %v2969_v20  ;;  %4623 = vrot.lane.b32.xlu1 %v9487_v16, %s6712_s30  ;;  %v8366_v55 = vpop.permute.xlu1 %3974  ;;  %vm3426_vm0 = vcmask 130048   ;;  %s9226_s30 = scalar_lea.vmem (%p6800_p5), %s9437_s10, %s5742_s13 }
 0x2f3   : > { %9489 = vst [vmem:[#allocation20_spill] sm:$0xff] %v8366_v55  ;;  %v8368_v24 = vpop.permute.xlu0 %3984 }
 0x2f4   : > { %9490 = vst [vmem:[#allocation21_spill] sm:$0xff] %v8368_v24 }
 0x2f6   : > { %v8370_v43 = vpop.permute.xlu1 %3986 }
 0x2f7   : > { %9491 = vst [vmem:[#allocation22_spill] sm:$0xff] %v8370_v43  ;;  %v8372_v11 = vpop.permute.xlu0 %3980 }
 0x2f8   : > { %9492 = vst [vmem:[#allocation23_spill] sm:$0xff] %v8372_v11 }
 0x2fa   : > { %v8374_v17 = vpop.permute.xlu1 %3982 }
 0x2fb   : > { %9493 = vst [vmem:[#allocation24_spill] sm:$0xff] %v8374_v17  ;;  %v8376_v25 = vpop.permute.xlu0 %4248 }
 0x2fe   : > { %v8378_v36 = vpop.permute.xlu1 %4250 }
 0x2ff   : > { %v8380_v10 = vpop.permute.xlu0 %4244 }
 0x302   : > { %v8382_v38 = vpop.permute.xlu1 %4246 }
 0x303   : > { %v8384_v12 = vpop.permute.xlu0 %4256 }
 0x306   : > { %v8386_v33 = vpop.permute.xlu1 %4258 }
 0x307   : > { %v8388_v61 = vpop.permute.xlu0 %4252 }
 0x30a   : > { %v8390_v56 = vpop.permute.xlu1 %4254 }
 0x30b   : > { %v8392_v21 = vpop.permute.xlu0 %4264 }
 0x30e   : > { %v8394_v57 = vpop.permute.xlu1 %4266 }
 0x30f   : > { %v8396_v60 = vpop.permute.xlu0 %4260 }
 0x312   : > { %v8398_v39 = vpop.permute.xlu1 %4262 }
 0x313   : > { %v8400_v7 = vpop.permute.xlu0 %4272 }
 0x316   : > { %v8402_v28 = vpop.permute.xlu1 %4274 }
 0x317   : > { %v8404_v42 = vpop.permute.xlu0 %4268 }
 0x31a   : > { %v8406_v37 = vpop.permute.xlu1 %4270 }
 0x31b   : > { %v8408_v19 = vpop.permute.xlu0 %4280 }
 0x31c   : > { %9494 = vst [vmem:[#allocation25_spill] sm:$0xff] %v8408_v19 }
 0x31e   : > { %v8410_v22 = vpop.permute.xlu1 %4282 }
 0x31f   : > { %9495 = vst [vmem:[#allocation26_spill] sm:$0xff] %v8410_v22  ;;  %v8412_v5 = vpop.permute.xlu0 %4276 }
 0x320   : > { %9496 = vst [vmem:[#allocation27_spill] sm:$0xff] %v8412_v5 }
 0x322   : > { %v8414_v29 = vpop.permute.xlu1 %4278 }
 0x323   : > { %9497 = vst [vmem:[#allocation28_spill] sm:$0xff] %v8414_v29  ;;  %v8416_v54 = vpop.permute.xlu0 %4288 }
 0x324   : > { %9498 = vst [vmem:[#allocation29_spill] sm:$0xff] %v8416_v54 }
 0x326   : > { %v8418_v27 = vpop.permute.xlu1 %4290 }
 0x327   : > { %9499 = vst [vmem:[#allocation30_spill] sm:$0xff] %v8418_v27  ;;  %v8420_v8 = vpop.permute.xlu0 %4284 }
 0x328   : > { %9500 = vst [vmem:[#allocation31_spill] sm:$0xff] %v8420_v8 }
 0x32a   : > { %v8422_v1 = vpop.permute.xlu1 %4286 }
 0x32b   : > { %9501 = vst [vmem:[#allocation32_spill] sm:$0xff] %v8422_v1  ;;  %v8424_v23 = vpop.permute.xlu0 %4296 }
 0x32c   : > { %9502 = vst [vmem:[#allocation33_spill] sm:$0xff] %v8424_v23 }
 0x32e   : > { %v8426_v44 = vpop.permute.xlu1 %4298 }
 0x32f   : > { %9503 = vst [vmem:[#allocation34_spill] sm:$0xff] %v8426_v44  ;;  %v8428_v59 = vpop.permute.xlu0 %4292 }
 0x330   : > { %9504 = vst [vmem:[#allocation35_spill] sm:$0xff] %v8428_v59 }
 0x332   : > { %v8430_v58 = vpop.permute.xlu1 %4294 }
 0x333   : > { %9505 = vst [vmem:[#allocation36_spill] sm:$0xff] %v8430_v58  ;;  %v8432_v13 = vpop.permute.xlu0 %4304 }
 0x334   : > { %9506 = vst [vmem:[#allocation37_spill] sm:$0xff] %v8432_v13 }
 0x336   : > { %v8434_v48 = vpop.permute.xlu1 %4306 }
 0x337   : > { %9507 = vst [vmem:[#allocation38_spill] sm:$0xff] %v8434_v48  ;;  %v8436_v51 = vpop.permute.xlu0 %4300 }
 0x338   : > { %9508 = vst [vmem:[#allocation39_spill] sm:$0xff] %v8436_v51 }
 0x33a   : > { %v8438_v63 = vpop.permute.xlu1 %4302 }
 0x33b   : > { %9509 = vst [vmem:[#allocation40_spill] sm:$0xff] %v8438_v63  ;;  %v4570_v15 = vpop.permute.xlu0 %4569  ;;  %v8459_v63 = vld [vmem:[%s9435_s8] ss:$0 sm:$0xff] }
 0x33e   : > { %v4572_v20 = vpop.permute.xlu1 %4571 }
 0x33f   : > { %v8440_v0 = vpop.permute.xlu0 %4565 }
 0x342   : > { %v8442_v9 = vpop.permute.xlu1 %4567 }
 0x343   : > { %v8444_v16 = vpop.permute.xlu0 %4577 }
 0x346   : > { %v8446_v17 = vpop.permute.xlu1 %4579 }
 0x347   : > { %v8448_v11 = vpop.permute.xlu0 %4573 }
 0x34a   : > { %v8450_v43 = vpop.permute.xlu1 %4575 }
 0x34b   : > { %v8452_v13 = vpop.permute.xlu0 %4585 }
 0x34e   : > { %v8454_v48 = vpop.permute.xlu1 %4587 }
 0x34f   : > { %v8461_v24 = vpop.permute.xlu0 %4581 }
 0x352   : > { %v8475_v8 = vpop.permute.xlu1 %4583 }
 0x388   : > { %v6075_v51 = vpop.f32.mrb[80].mxu1 }
 0x389   : > { %v8464_v58 = vadd.f32 %v6075_v51, %v8459_v63  ;;  %v3075_v59 = vpop.f32.mrb[81].mxu1 }
 0x38a   : > { %v8467_v55 = vadd.f32 %v8459_v63, %v3075_v59  ;;  %v6076_v14 = vpop.f32.mrb[82].mxu1 }
 0x38b   : > { %v5593_v44 = vmul.f32 -1.442695, %v8464_v58  ;;  %v8471_v23 = vadd.f32 %v6076_v14, %v8459_v63  ;;  %v3078_v49 = vpop.f32.mrb[83].mxu1  ;;  %v4022_v1 = vmul.f32 %v9510_v53, %v8464_v58  ;;  %v9511_v14 = vld [vmem:[#allocation10_spill] sm:$0xff]  ;;  %v8486_v53 = vpop.permute.xlu0 %4593 }
 0x38c   : > { %v5591_v3 = vmul.f32 -1.442695, %v8467_v55  ;;  %v8479_v51 = vadd.f32 %v8459_v63, %v3078_v49  ;;  %v4342_v49 = vmul.f32 %v8376_v25, %v8464_v58 }
 0x38d   : > { %6536 = vpow2.f32 %v5593_v44  ;;  %v5594_v59 = vmul.f32 -1.442695, %v8471_v23  ;;  %4088 = vrot.lane.b32.xlu0 %v4022_v1, %s6713_s24  ;;  %v4023_v26 = vmul.f32 %v9511_v14, %v8471_v23  ;;  %v8497_v14 = vpop.permute.xlu1 %4595 }
 0x38e   : > { %6538 = vpow2.f32 %v5591_v3  ;;  %v5592_v27 = vmul.f32 -1.442695, %v8479_v51  ;;  %v4343_v3 = vmul.f32 %v8378_v36, %v8471_v23 }
 0x38f   : > { %6540 = vpow2.f32 %v5594_v59  ;;  %4090 = vrot.lane.b32.xlu1 %v4023_v26, %s6713_s24  ;;  %v8512_v45 = vpop.permute.xlu0 %4589 }
 0x390   : > { %6542 = vpow2.f32 %v5592_v27 }
 0x391   : > { %4408 = vrot.lane.b32.xlu0 %v4342_v49, %s6713_s24  ;;  %v4663_v49 = vmul.f32 %v4570_v15, %v8464_v58  ;;  %v9512_v15 = vld [vmem:[#allocation4_spill] sm:$0xff]  ;;  %v8521_v5 = vpop.permute.xlu1 %4591 }
 0x392   : > { %v6079_v44 = vpop.f32.mrb[84].mxu1 }
 0x393   : > { %v8492_v54 = vadd.f32 %v6079_v44, %v8459_v63  ;;  %v3091_v1 = vpop.f32.mrb[85].mxu1  ;;  %4410 = vrot.lane.b32.xlu1 %v4343_v3, %s6713_s24  ;;  %v8529_v32 = vpop.permute.xlu0 %4601 }
 0x394   : > { %v8500_v59 = vadd.f32 %v8459_v63, %v3091_v1  ;;  %v6080_v26 = vpop.f32.mrb[86].mxu1  ;;  %9514 = vst [vmem:[#allocation5_spill] sm:$0xff] %v8529_v32 }
 0x395   : > { %v5597_v34 = vmul.f32 -1.442695, %v8492_v54  ;;  %v8504_v25 = vadd.f32 %v6080_v26, %v8459_v63  ;;  %v3094_v27 = vpop.f32.mrb[87].mxu1  ;;  %4729 = vrot.lane.b32.xlu0 %v4663_v49, %s6713_s24  ;;  %v4664_v26 = vmul.f32 %v4572_v20, %v8471_v23  ;;  %v9513_v20 = vld [vmem:[#allocation13_spill] sm:$0xff] }
 0x396   : > { %v5595_v44 = vmul.f32 -1.442695, %v8500_v59  ;;  %v8510_v36 = vadd.f32 %v8459_v63, %v3094_v27  ;;  %v4020_v27 = vmul.f32 %v9512_v15, %v8467_v55 }
 0x397   : > { %6544 = vpow2.f32 %v5597_v34  ;;  %v5598_v1 = vmul.f32 -1.442695, %v8504_v25  ;;  %v6537_v29 = vpop.eup %6536  ;;  %4731 = vrot.lane.b32.xlu1 %v4664_v26, %s6713_s24 }
 0x398   : > { %6546 = vpow2.f32 %v5595_v44  ;;  %v5596_v3 = vmul.f32 -1.442695, %v8510_v36  ;;  %v6539_v4 = vpop.eup %6538  ;;  %v3300_v34 = vadd.f32 1.0, %v6537_v29  ;;  %v4021_v44 = vmul.f32 %v9513_v20, %v8479_v51 }
 0x399   : > { %6548 = vpow2.f32 %v5598_v1  ;;  %v6541_v40 = vpop.eup %6540  ;;  %v3298_v22 = vadd.f32 1.0, %v6539_v4  ;;  %4084 = vrot.lane.b32.xlu0 %v4020_v27, %s6713_s24  ;;  %v4340_v27 = vmul.f32 %v8380_v10, %v8467_v55  ;;  %v4341_v20 = vmul.f32 %v8382_v38, %v8479_v51  ;;  %v8548_v10 = vpop.permute.xlu1 %4603 }
 0x39a   : > { %6550 = vpow2.f32 %v5596_v3  ;;  %v6543_v19 = vpop.eup %6542  ;;  %v3301_v1 = vadd.f32 1.0, %v6541_v40  ;;  %9515 = vst [vmem:[#allocation10_spill] sm:$0xff] %v8548_v10 }
 0x39b   : > { %v6083_v49 = vpop.f32.mrb[88].mxu1  ;;  %6552 = vrcp.f32 %v3300_v34  ;;  %v3299_v29 = vadd.f32 1.0, %v6543_v19  ;;  %4086 = vrot.lane.b32.xlu1 %v4021_v44, %s6713_s24 }
 0x39c   : > { %v8527_v26 = vadd.f32 %v6083_v49, %v8459_v63  ;;  %v3107_v15 = vpop.f32.mrb[89].mxu1  ;;  %6554 = vrcp.f32 %v3298_v22 }
 0x39d   : > { %v8532_v3 = vadd.f32 %v8459_v63, %v3107_v15  ;;  %v6084_v4 = vpop.f32.mrb[90].mxu1  ;;  %6556 = vrcp.f32 %v3301_v1  ;;  %4404 = vrot.lane.b32.xlu0 %v4340_v27, %s6713_s24  ;;  %v4661_v15 = vmul.f32 %v8440_v0, %v8467_v55  ;;  %v8555_v27 = vpop.permute.xlu0 %4597 }
 0x39e   : > { %v5601_v40 = vmul.f32 -1.442695, %v8527_v26  ;;  %v8539_v34 = vadd.f32 %v6084_v4, %v8459_v63  ;;  %v3110_v49 = vpop.f32.mrb[91].mxu1  ;;  %6558 = vrcp.f32 %v3299_v29  ;;  %9516 = vst [vmem:[#allocation4_spill] sm:$0xff] %v8555_v27 }
 0x39f   : > { %v5599_v22 = vmul.f32 -1.442695, %v8532_v3  ;;  %v8543_v19 = vadd.f32 %v8459_v63, %v3110_v49  ;;  %4406 = vrot.lane.b32.xlu1 %v4341_v20, %s6713_s24 }
 0x3a0   : > { %6560 = vpow2.f32 %v5601_v40  ;;  %v5602_v44 = vmul.f32 -1.442695, %v8539_v34  ;;  %v4662_v40 = vmul.f32 %v8442_v9, %v8479_v51  ;;  %v9517_v9 = vld [vmem:[#allocation14_spill] sm:$0xff] }
 0x3a1   : > { %v6545_v1 = vpop.eup %6544  ;;  %6562 = vpow2.f32 %v5599_v22  ;;  %v5600_v29 = vmul.f32 -1.442695, %v8543_v19  ;;  %4725 = vrot.lane.b32.xlu0 %v4661_v15, %s6713_s24 }
 0x3a2   : > { %v6547_v4 = vpop.eup %6546  ;;  %v3304_v49 = vadd.f32 1.0, %v6545_v1  ;;  %6564 = vpow2.f32 %v5602_v44 }
 0x3a3   : > { %v6549_v38 = vpop.eup %6548  ;;  %v3302_v10 = vadd.f32 1.0, %v6547_v4  ;;  %6566 = vpow2.f32 %v5600_v29  ;;  %v6087_v32 = vpop.f32.mrb[92].mxu1  ;;  %4727 = vrot.lane.b32.xlu1 %v4662_v40, %s6713_s24  ;;  %v4026_v29 = vmul.f32 %v9517_v9, %v8492_v54 }
 0x3a4   : > { %v6551_v0 = vpop.eup %6550  ;;  %6568 = vrcp.f32 %v3304_v49  ;;  %v3305_v22 = vadd.f32 1.0, %v6549_v38  ;;  %v8562_v20 = vadd.f32 %v6087_v32, %v8459_v63  ;;  %v3123_v1 = vpop.f32.mrb[93].mxu1 }
 0x3a5   : > { %6570 = vrcp.f32 %v3302_v10  ;;  %v3303_v44 = vadd.f32 1.0, %v6551_v0  ;;  %v8565_v27 = vadd.f32 %v8459_v63, %v3123_v1  ;;  %v6088_v50 = vpop.f32.mrb[94].mxu1  ;;  %v8570_v4 = vpop.permute.xlu1 %4599  ;;  %4096 = vrot.lane.b32.xlu0 %v4026_v29, %s6713_s24  ;;  %v4027_v1 = vmul.f32 %v8177_v6, %v8504_v25 }
 0x3a6   : > { %9518 = vst [vmem:[#allocation13_spill] sm:$0xff] %v8570_v4  ;;  %v6553_v15 = vpop.eup %6552  ;;  %6572 = vrcp.f32 %v3305_v22  ;;  %v5605_v32 = vmul.f32 -1.442695, %v8562_v20  ;;  %v8579_v10 = vadd.f32 %v6088_v50, %v8459_v63  ;;  %v3126_v49 = vpop.f32.mrb[95].mxu1  ;;  %v4346_v6 = vmul.f32 %v8384_v12, %v8492_v54 }
 0x3a7   : > { %v6555_v38 = vpop.eup %6554  ;;  %v3396_v40 = vmul.f32 %v6553_v15, %v8464_v58  ;;  %6574 = vrcp.f32 %v3303_v44  ;;  %v5603_v0 = vmul.f32 -1.442695, %v8565_v27  ;;  %v8589_v4 = vadd.f32 %v8459_v63, %v3126_v49  ;;  %v8591_v58 = vpop.permute.xlu0 %4609  ;;  %4098 = vrot.lane.b32.xlu1 %v4027_v1, %s6713_s24 }
 0x3a8   : > { %v6557_v22 = vpop.eup %6556  ;;  %v3394_v9 = vmul.f32 %v6555_v38, %v8467_v55  ;;  %6576 = vpow2.f32 %v5605_v32  ;;  %v5606_v50 = vmul.f32 -1.442695, %v8579_v10 }
 0x3a9   : > { %v6559_v44 = vpop.eup %6558  ;;  %3429 = vst.msk [vmem:[%s8575_s27 + $0x10] sm:$0xff] %vm3426_vm0, %v3396_v40  ;;  %v3397_v29 = vmul.f32 %v6557_v22, %v8471_v23  ;;  %6578 = vpow2.f32 %v5603_v0  ;;  %v5604_v32 = vmul.f32 -1.442695, %v8589_v4  ;;  %4416 = vrot.lane.b32.xlu0 %v4346_v6, %s6713_s24  ;;  %v4347_v23 = vmul.f32 %v8386_v33, %v8504_v25  ;;  %v8608_v40 = vpop.permute.xlu1 %4611 }
 0x3aa   : > { %v6561_v55 = vpop.eup %6560  ;;  %3427 = vst.msk [vmem:[%s8575_s27] sm:$0xff] %vm3426_vm0, %v3394_v9  ;;  %v3395_v15 = vmul.f32 %v6559_v44, %v8479_v51  ;;  %6580 = vpow2.f32 %v5606_v50  ;;  %v4667_v33 = vmul.f32 %v8444_v16, %v8492_v54 }
 0x3ab   : > { %v6563_v49 = vpop.eup %6562  ;;  %3430 = vst.msk [vmem:[%s8575_s27 + $0x18] sm:$0xff] %vm3426_vm0, %v3397_v29  ;;  %v3308_v38 = vadd.f32 1.0, %v6561_v55  ;;  %6582 = vpow2.f32 %v5604_v32  ;;  %4418 = vrot.lane.b32.xlu1 %v4347_v23, %s6713_s24  ;;  %v8623_v32 = vpop.permute.xlu0 %4605 }
 0x3ac   : > { %v6565_v12 = vpop.eup %6564  ;;  %3428 = vst.msk [vmem:[%s8575_s27 + $0x8] sm:$0xff] %vm3426_vm0, %v3395_v15  ;;  %v3306_v0 = vadd.f32 1.0, %v6563_v49  ;;  %v6091_v51 = vpop.f32.mrb[96].mxu1  ;;  %v4668_v15 = vmul.f32 %v8446_v17, %v8504_v25 }
 0x3ad   : > { %v6567_v1 = vpop.eup %6566  ;;  %6584 = vrcp.f32 %v3308_v38  ;;  %v3309_v22 = vadd.f32 1.0, %v6565_v12  ;;  %v8613_v9 = vadd.f32 %v6091_v51, %v8459_v63  ;;  %v3139_v50 = vpop.f32.mrb[97].mxu1  ;;  %4737 = vrot.lane.b32.xlu0 %v4667_v33, %s6713_s24 }
 0x3ae   : > { %v6569_v44 = vpop.eup %6568  ;;  %6586 = vrcp.f32 %v3306_v0  ;;  %v3307_v29 = vadd.f32 1.0, %v6567_v1  ;;  %v8619_v6 = vadd.f32 %v8459_v63, %v3139_v50  ;;  %v6092_v55 = vpop.f32.mrb[98].mxu1 }
 0x3af   : > { %v6571_v49 = vpop.eup %6570  ;;  %v3400_v38 = vmul.f32 %v6569_v44, %v8492_v54  ;;  %6588 = vrcp.f32 %v3309_v22  ;;  %v5609_v23 = vmul.f32 -1.442695, %v8613_v9  ;;  %v8628_v16 = vadd.f32 %v6092_v55, %v8459_v63  ;;  %v3142_v12 = vpop.f32.mrb[99].mxu1  ;;  %4739 = vrot.lane.b32.xlu1 %v4668_v15, %s6713_s24 }
 0x3b0   : > { %v6573_v0 = vpop.eup %6572  ;;  %v3398_v51 = vmul.f32 %v6571_v49, %v8500_v59  ;;  %6590 = vrcp.f32 %v3307_v29  ;;  %v5607_v17 = vmul.f32 -1.442695, %v8619_v6  ;;  %v4024_v54 = vmul.f32 %v8195_v41, %v8500_v59  ;;  %v8643_v44 = vpop.permute.xlu1 %4607 }
 0x3b1   : > { %v6575_v1 = vpop.eup %6574  ;;  %3433 = vst.msk [vmem:[%s8575_s27 + $0x30] sm:$0xff] %vm3426_vm0, %v3400_v38  ;;  %v3401_v22 = vmul.f32 %v6573_v0, %v8504_v25  ;;  %6592 = vpow2.f32 %v5609_v23  ;;  %v5610_v50 = vmul.f32 -1.442695, %v8628_v16  ;;  %v8640_v33 = vadd.f32 %v8459_v63, %v3142_v12  ;;  %v8656_v0 = vpop.permute.xlu0 %4617 }
 0x3b2   : > { %v6577_v29 = vpop.eup %6576  ;;  %3431 = vst.msk [vmem:[%s8575_s27 + $0x20] sm:$0xff] %vm3426_vm0, %v3398_v51  ;;  %v3399_v41 = vmul.f32 %v6575_v1, %v8510_v36  ;;  %6594 = vpow2.f32 %v5607_v17  ;;  %4092 = vrot.lane.b32.xlu0 %v4024_v54, %s6713_s24  ;;  %v4025_v49 = vmul.f32 %v8204_v52, %v8510_v36  ;;  %v4344_v52 = vmul.f32 %v8388_v61, %v8500_v59 }
 0x3b3   : > { %v6579_v55 = vpop.eup %6578  ;;  %3434 = vst.msk [vmem:[%s8575_s27 + $0x38] sm:$0xff] %vm3426_vm0, %v3401_v22  ;;  %v3312_v25 = vadd.f32 1.0, %v6577_v29  ;;  %6596 = vpow2.f32 %v5610_v50  ;;  %v5608_v23 = vmul.f32 -1.442695, %v8640_v33  ;;  %v4345_v29 = vmul.f32 %v8390_v56, %v8510_v36 }
 0x3b4   : > { %v6581_v38 = vpop.eup %6580  ;;  %3432 = vst.msk [vmem:[%s8575_s27 + $0x28] sm:$0xff] %vm3426_vm0, %v3399_v41  ;;  %v3310_v15 = vadd.f32 1.0, %v6579_v55  ;;  %v6095_v12 = vpop.f32.mrb[100].mxu1  ;;  %4094 = vrot.lane.b32.xlu1 %v4025_v49, %s6713_s24 }
 0x3b5   : > { %6598 = vrcp.f32 %v3312_v25  ;;  %v3313_v51 = vadd.f32 1.0, %v6581_v38  ;;  %v8659_v17 = vadd.f32 %v6095_v12, %v8459_v63  ;;  %v3155_v1 = vpop.f32.mrb[101].mxu1  ;;  %v6583_v54 = vpop.eup %6582  ;;  %v4665_v12 = vmul.f32 %v8448_v11, %v8500_v59 }
 0x3b6   : > { %6600 = vrcp.f32 %v3310_v15  ;;  %v8665_v22 = vadd.f32 %v8459_v63, %v3155_v1  ;;  %v6096_v50 = vpop.f32.mrb[102].mxu1  ;;  %v3311_v55 = vadd.f32 1.0, %v6583_v54  ;;  %4412 = vrot.lane.b32.xlu0 %v4344_v52, %s6713_s24  ;;  %v8674_v61 = vpop.permute.xlu1 %4619 }
 0x3b7   : > { %v6585_v41 = vpop.eup %6584  ;;  %6602 = vrcp.f32 %v3313_v51  ;;  %v5613_v25 = vmul.f32 -1.442695, %v8659_v17  ;;  %v8671_v38 = vadd.f32 %v6096_v50, %v8459_v63  ;;  %v3158_v49 = vpop.f32.mrb[103].mxu1  ;;  %9519 = vst [vmem:[#allocation14_spill] sm:$0xff] %v8674_v61 }
 0x3b8   : > { %v6587_v15 = vpop.eup %6586  ;;  %v3404_v56 = vmul.f32 %v6585_v41, %v8527_v26  ;;  %6604 = vpow2.f32 %v5608_v23  ;;  %v5611_v51 = vmul.f32 -1.442695, %v8665_v22  ;;  %v8683_v52 = vadd.f32 %v8459_v63, %v3158_v49  ;;  %4414 = vrot.lane.b32.xlu1 %v4345_v29, %s6713_s24  ;;  %v8689_v59 = vpop.permute.xlu0 %4613 }
 0x3b9   : > { %v6589_v1 = vpop.eup %6588  ;;  %v3402_v54 = vmul.f32 %v6587_v15, %v8532_v3  ;;  %6606 = vrcp.f32 %v3311_v55  ;;  %v5614_v50 = vmul.f32 -1.442695, %v8671_v38  ;;  %v4666_v41 = vmul.f32 %v8450_v43, %v8510_v36 }
 0x3ba   : > { %v6591_v61 = vpop.eup %6590  ;;  %3437 = vst.msk [vmem:[%s8575_s27 + $0x50] sm:$0xff] %vm3426_vm0, %v3404_v56  ;;  %v3405_v11 = vmul.f32 %v6589_v1, %v8539_v34  ;;  %6608 = vpow2.f32 %v5613_v25  ;;  %v5612_v29 = vmul.f32 -1.442695, %v8683_v52  ;;  %4733 = vrot.lane.b32.xlu0 %v4665_v12, %s6713_s24  ;;  %v8703_v36 = vpop.permute.xlu1 %4615 }
 0x3bb   : > { %v6593_v23 = vpop.eup %6592  ;;  %3435 = vst.msk [vmem:[%s8575_s27 + $0x40] sm:$0xff] %vm3426_vm0, %v3402_v54  ;;  %v3403_v55 = vmul.f32 %v6591_v61, %v8543_v19  ;;  %6610 = vpow2.f32 %v5611_v51  ;;  %v4030_v61 = vmul.f32 %v8218_v18, %v8527_v26 }
 0x3bc   : > { %v6595_v49 = vpop.eup %6594  ;;  %3438 = vst.msk [vmem:[%s8575_s27 + $0x58] sm:$0xff] %vm3426_vm0, %v3405_v11  ;;  %v3316_v15 = vadd.f32 1.0, %v6593_v23  ;;  %6612 = vpow2.f32 %v5614_v50  ;;  %4735 = vrot.lane.b32.xlu1 %v4666_v41, %s6713_s24  ;;  %v4031_v23 = vmul.f32 %v8231_v31, %v8539_v34 }
 0x3bd   : > { %v6597_v25 = vpop.eup %6596  ;;  %3436 = vst.msk [vmem:[%s8575_s27 + $0x48] sm:$0xff] %vm3426_vm0, %v3403_v55  ;;  %v3314_v56 = vadd.f32 1.0, %v6595_v49  ;;  %6614 = vpow2.f32 %v5612_v29  ;;  %v6099_v43 = vpop.f32.mrb[104].mxu1 }
 0x3be   : > { %6616 = vrcp.f32 %v3316_v15  ;;  %v3317_v12 = vadd.f32 1.0, %v6597_v25  ;;  %v8708_v51 = vadd.f32 %v6099_v43, %v8459_v63  ;;  %v3171_v1 = vpop.f32.mrb[105].mxu1  ;;  %4104 = vrot.lane.b32.xlu0 %v4030_v61, %s6713_s24  ;;  %v8721_v15 = vpop.permute.xlu0 %4625  ;;  %v4350_v61 = vmul.f32 %v8392_v21, %v8527_v26 }
 0x3bf   : > { %v6599_v54 = vpop.eup %6598  ;;  %6618 = vrcp.f32 %v3314_v56  ;;  %v8711_v50 = vadd.f32 %v8459_v63, %v3171_v1  ;;  %v6100_v11 = vpop.f32.mrb[106].mxu1  ;;  %v4351_v21 = vmul.f32 %v8394_v57, %v8539_v34 }
 0x3c0   : > { %v6601_v41 = vpop.eup %6600  ;;  %v3408_v18 = vmul.f32 %v6599_v54, %v8562_v20  ;;  %6620 = vrcp.f32 %v3317_v12  ;;  %v5617_v55 = vmul.f32 -1.442695, %v8708_v51  ;;  %v8719_v29 = vadd.f32 %v6100_v11, %v8459_v63  ;;  %v3174_v49 = vpop.f32.mrb[107].mxu1  ;;  %4106 = vrot.lane.b32.xlu1 %v4031_v23, %s6713_s24 }
 0x3c1   : > { %v6603_v25 = vpop.eup %6602  ;;  %v3406_v56 = vmul.f32 %v6601_v41, %v8565_v27  ;;  %v5615_v43 = vmul.f32 -1.442695, %v8711_v50  ;;  %v8726_v31 = vadd.f32 %v8459_v63, %v3174_v49  ;;  %v8738_v49 = vpop.permute.xlu1 %4627 }
 0x3c2   : > { %v6605_v12 = vpop.eup %6604  ;;  %3441 = vst.msk [vmem:[%s8575_s27 + $0x70] sm:$0xff] %vm3426_vm0, %v3408_v18  ;;  %v3409_v1 = vmul.f32 %v6603_v25, %v8579_v10  ;;  %6622 = vpow2.f32 %v5617_v55  ;;  %v5618_v54 = vmul.f32 -1.442695, %v8719_v29  ;;  %9520 = vst [vmem:[#allocation41_spill] sm:$0xff] %v8738_v49  ;;  %4424 = vrot.lane.b32.xlu0 %v4350_v61, %s6713_s24 }
 0x3c3   : > { %v6607_v11 = vpop.eup %6606  ;;  %3439 = vst.msk [vmem:[%s8575_s27 + $0x60] sm:$0xff] %vm3426_vm0, %v3406_v56  ;;  %v3315_v41 = vadd.f32 1.0, %v6605_v12  ;;  %6624 = vpow2.f32 %v5615_v43  ;;  %v5616_v23 = vmul.f32 -1.442695, %v8726_v31  ;;  %v4671_v12 = vmul.f32 %v8452_v13, %v8527_v26 }
 0x3c4   : > { %v6609_v18 = vpop.eup %6608  ;;  %3442 = vst.msk [vmem:[%s8575_s27 + $0x78] sm:$0xff] %vm3426_vm0, %v3409_v1  ;;  %v3407_v55 = vmul.f32 %v6607_v11, %v8589_v4  ;;  %6626 = vpow2.f32 %v5618_v54  ;;  %4426 = vrot.lane.b32.xlu1 %v4351_v21, %s6713_s24  ;;  %v4622_v11 = vpop.permute.xlu0 %4621  ;;  %v4672_v54 = vmul.f32 %v8454_v48, %v8539_v34  ;;  %v4028_v26 = vmul.f32 %v8242_v2, %v8532_v3 }
 0x3c5   : > { %v6611_v25 = vpop.eup %6610  ;;  %6628 = vrcp.f32 %v3315_v41  ;;  %v3320_v56 = vadd.f32 1.0, %v6609_v18  ;;  %v6103_v43 = vpop.f32.mrb[108].mxu1 }
 0x3c6   : > { %v6613_v49 = vpop.eup %6612  ;;  %3440 = vst.msk [vmem:[%s8575_s27 + $0x68] sm:$0xff] %vm3426_vm0, %v3407_v55  ;;  %v3318_v61 = vadd.f32 1.0, %v6611_v25  ;;  %6630 = vpow2.f32 %v5616_v23  ;;  %v8752_v57 = vadd.f32 %v6103_v43, %v8459_v63  ;;  %v3187_v1 = vpop.f32.mrb[109].mxu1  ;;  %4745 = vrot.lane.b32.xlu0 %v4671_v12, %s6713_s24 }
 0x3c7   : > { %v6615_v41 = vpop.eup %6614  ;;  %6632 = vrcp.f32 %v3320_v56  ;;  %v3321_v18 = vadd.f32 1.0, %v6613_v49  ;;  %v8757_v21 = vadd.f32 %v8459_v63, %v3187_v1  ;;  %v6104_v13 = vpop.f32.mrb[110].mxu1 }
 0x3c8   : > { %v6617_v23 = vpop.eup %6616  ;;  %6634 = vrcp.f32 %v3318_v61  ;;  %v3319_v55 = vadd.f32 1.0, %v6615_v41  ;;  %v5621_v25 = vmul.f32 -1.442695, %v8752_v57  ;;  %v8764_v48 = vadd.f32 %v6104_v13, %v8459_v63  ;;  %v3190_v34 = vpop.f32.mrb[111].mxu1  ;;  %4747 = vrot.lane.b32.xlu1 %v4672_v54, %s6713_s24 }
 0x3c9   : > { %v6619_v49 = vpop.eup %6618  ;;  %v3412_v56 = vmul.f32 %v6617_v23, %v8613_v9  ;;  %6636 = vrcp.f32 %v3321_v18  ;;  %v5619_v43 = vmul.f32 -1.442695, %v8757_v21  ;;  %v8769_v12 = vmul.f32 %v4622_v11, %v8757_v21  ;;  %v4624_v2 = vpop.permute.xlu1 %4623 }
 0x3ca   : > { %v6621_v61 = vpop.eup %6620  ;;  %v3410_v1 = vmul.f32 %v6619_v49, %v8619_v6  ;;  %6638 = vrcp.f32 %v3319_v55  ;;  %v5622_v41 = vmul.f32 -1.442695, %v8764_v48  ;;  %v8775_v13 = vadd.f32 %v8459_v63, %v3190_v34  ;;  %4100 = vrot.lane.b32.xlu0 %v4028_v26, %s6713_s24 }
 0x3cb   : > { %3445 = vst.msk [vmem:[%s8575_s27 + $0x90] sm:$0xff] %vm3426_vm0, %v3412_v56  ;;  %v3413_v18 = vmul.f32 %v6621_v61, %v8628_v16  ;;  %6640 = vpow2.f32 %v5621_v25  ;;  %v4029_v11 = vmul.f32 %v8256_v47, %v8543_v19  ;;  %v4348_v26 = vmul.f32 %v8396_v60, %v8532_v3 }
 0x3cc   : > { %v6623_v54 = vpop.eup %6622  ;;  %3443 = vst.msk [vmem:[%s8575_s27 + $0x80] sm:$0xff] %vm3426_vm0, %v3410_v1  ;;  %6642 = vpow2.f32 %v5619_v43  ;;  %v5620_v23 = vmul.f32 -1.442695, %v8775_v13  ;;  %v8787_v55 = vmul.f32 %v4624_v2, %v8775_v13  ;;  %v4349_v43 = vmul.f32 %v8398_v39, %v8543_v19 }
 0x3cd   : > { %v6625_v63 = vpop.eup %6624  ;;  %3446 = vst.msk [vmem:[%s8575_s27 + $0x98] sm:$0xff] %vm3426_vm0, %v3413_v18  ;;  %v3324_v34 = vadd.f32 1.0, %v6623_v54  ;;  %6644 = vpow2.f32 %v5622_v41  ;;  %4102 = vrot.lane.b32.xlu1 %v4029_v11, %s6713_s24  ;;  %v4669_v60 = vmul.f32 %v8461_v24, %v8532_v3  ;;  %v4670_v54 = vmul.f32 %v8475_v8, %v8543_v19 }
 0x3ce   : > { %v6627_v47 = vpop.eup %6626  ;;  %v3322_v25 = vadd.f32 1.0, %v6625_v63  ;;  %6646 = vpow2.f32 %v5620_v23  ;;  %4420 = vrot.lane.b32.xlu0 %v4348_v26, %s6713_s24  ;;  %v4034_v8 = vmul.f32 %v8271_v30, %v8562_v20 }
 0x3cf   : > { %v6629_v49 = vpop.eup %6628  ;;  %6648 = vrcp.f32 %v3324_v34  ;;  %v3325_v56 = vadd.f32 1.0, %v6627_v47 }
 0x3d0   : > { %v6631_v2 = vpop.eup %6630  ;;  %v3411_v61 = vmul.f32 %v6629_v49, %v8640_v33  ;;  %6650 = vrcp.f32 %v3322_v25  ;;  %v4035_v49 = vmul.f32 %v8278_v46, %v8579_v10 }
 0x3d1   : > { %v6633_v1 = vpop.eup %6632  ;;  %6652 = vrcp.f32 %v3325_v56  ;;  %v3323_v41 = vadd.f32 1.0, %v6631_v2  ;;  %4422 = vrot.lane.b32.xlu1 %v4349_v43, %s6713_s24 }
 0x3d2   : > { %v6635_v18 = vpop.eup %6634  ;;  %3444 = vst.msk [vmem:[%s8575_s27 + $0x88] sm:$0xff] %vm3426_vm0, %v3411_v61  ;;  %v3416_v39 = vmul.f32 %v6633_v1, %v8659_v17  ;;  %4741 = vrot.lane.b32.xlu0 %v4669_v60, %s6713_s24  ;;  %v4354_v61 = vmul.f32 %v8400_v7, %v8562_v20  ;;  %v4675_v7 = vmul.f32 %v8486_v53, %v8562_v20 }
 0x3d3   : > { %v6637_v11 = vpop.eup %6636  ;;  %v3414_v23 = vmul.f32 %v6635_v18, %v8665_v22  ;;  %6654 = vrcp.f32 %v3323_v41  ;;  %v4355_v18 = vmul.f32 %v8402_v28, %v8579_v10  ;;  %v4676_v28 = vmul.f32 %v8497_v14, %v8579_v10 }
 0x3d4   : > { %v6639_v24 = vpop.eup %6638  ;;  %3449 = vst.msk [vmem:[%s8575_s27 + $0xb0] sm:$0xff] %vm3426_vm0, %v3416_v39  ;;  %v3417_v3 = vmul.f32 %v6637_v11, %v8671_v38 }
 0x3d5   : > { %v6641_v63 = vpop.eup %6640  ;;  %3447 = vst.msk [vmem:[%s8575_s27 + $0xa0] sm:$0xff] %vm3426_vm0, %v3414_v23  ;;  %v3415_v34 = vmul.f32 %v6639_v24, %v8683_v52  ;;  %4743 = vrot.lane.b32.xlu1 %v4670_v54, %s6713_s24  ;;  %v4032_v23 = vmul.f32 %v8286_v62, %v8565_v27  ;;  %v4352_v62 = vmul.f32 %v8404_v42, %v8565_v27 }
 0x3d6   : > { %v6643_v19 = vpop.eup %6642  ;;  %3450 = vst.msk [vmem:[%s8575_s27 + $0xb8] sm:$0xff] %vm3426_vm0, %v3417_v3  ;;  %v3328_v26 = vadd.f32 1.0, %v6641_v63  ;;  %4112 = vrot.lane.b32.xlu0 %v4034_v8, %s6713_s24  ;;  %v4033_v3 = vmul.f32 %v8294_v35, %v8589_v4  ;;  %v4353_v35 = vmul.f32 %v8406_v37, %v8589_v4  ;;  %v4674_v42 = vmul.f32 %v8521_v5, %v8589_v4  ;;  %v9522_v37 = vld [vmem:[#allocation7_spill] sm:$0xff]  ;;  %v9524_v5 = vld [vmem:[#allocation26_spill] sm:$0xff] }
 0x3d7   : > { %v6645_v47 = vpop.eup %6644  ;;  %3448 = vst.msk [vmem:[%s8575_s27 + $0xa8] sm:$0xff] %vm3426_vm0, %v3415_v34  ;;  %v3326_v25 = vadd.f32 1.0, %v6643_v19  ;;  %v4673_v19 = vmul.f32 %v8512_v45, %v8565_v27  ;;  %v9523_v45 = vld [vmem:[#allocation25_spill] sm:$0xff]  ;;  %v4359_v4 = vmul.f32 %v9524_v5, %v8628_v16  ;;  %v9540_v5 = vld [vmem:[#allocation32_spill] sm:$0xff] }
 0x3d8   : > { %v6647_v56 = vpop.eup %6646  ;;  %6656 = vrcp.f32 %v3328_v26  ;;  %v3329_v43 = vadd.f32 1.0, %v6645_v47  ;;  %v9521_v26 = vld [vmem:[#allocation11_spill] sm:$0xff]  ;;  %v4358_v27 = vmul.f32 %v9523_v45, %v8613_v9 }
 0x3d9   : > { %v6649_v2 = vpop.eup %6648  ;;  %6658 = vrcp.f32 %v3326_v25  ;;  %v3327_v30 = vadd.f32 1.0, %v6647_v56  ;;  %4114 = vrot.lane.b32.xlu1 %v4035_v49, %s6713_s24  ;;  %v4038_v47 = vmul.f32 %v9521_v26, %v8613_v9  ;;  %v4039_v25 = vmul.f32 %v9522_v37, %v8628_v16  ;;  %v9525_v49 = vld [vmem:[#allocation5_spill] sm:$0xff] }
 0x3da   : > { %v6651_v1 = vpop.eup %6650  ;;  %v3420_v60 = vmul.f32 %v6649_v2, %v8708_v51  ;;  %6660 = vrcp.f32 %v3329_v43  ;;  %4432 = vrot.lane.b32.xlu0 %v4354_v61, %s6713_s24  ;;  %v4679_v56 = vmul.f32 %v9525_v49, %v8613_v9  ;;  %v9526_v43 = vld [vmem:[#allocation10_spill] sm:$0xff]  ;;  %v9529_v9 = vld [vmem:[#allocation27_spill] sm:$0xff]  ;;  %v4681_v49 = vmul.f32 %v8623_v32, %v8665_v22  ;;  %v9541_v32 = vld [vmem:[#allocation9_spill] sm:$0xff] }
 0x3db   : > { %v6653_v46 = vpop.eup %6652  ;;  %v3418_v41 = vmul.f32 %v6651_v1, %v8711_v50  ;;  %6662 = vrcp.f32 %v3327_v30  ;;  %v4680_v2 = vmul.f32 %v9526_v43, %v8628_v16  ;;  %v9527_v30 = vld [vmem:[#allocation15_spill] sm:$0xff]  ;;  %v9528_v1 = vld [vmem:[#allocation16_spill] sm:$0xff]  ;;  %v4682_v43 = vmul.f32 %v8643_v44, %v8683_v52 }
 0x3dc   : > { %3453 = vst.msk [vmem:[%s8575_s27 + $0xd0] sm:$0xff] %vm3426_vm0, %v3420_v60  ;;  %v3421_v39 = vmul.f32 %v6653_v46, %v8719_v29  ;;  %v4036_v61 = vmul.f32 %v9527_v30, %v8619_v6  ;;  %v4037_v60 = vmul.f32 %v9528_v1, %v8640_v33  ;;  %v4356_v46 = vmul.f32 %v9529_v9, %v8619_v6  ;;  %v9530_v16 = vld [vmem:[#allocation28_spill] sm:$0xff]  ;;  %v9542_v44 = vld [vmem:[#allocation19_spill] sm:$0xff] }
 0x3dd   : > { %v6655_v11 = vpop.eup %6654  ;;  %3451 = vst.msk [vmem:[%s8575_s27 + $0xc0] sm:$0xff] %vm3426_vm0, %v3418_v41  ;;  %4434 = vrot.lane.b32.xlu1 %v4355_v18, %s6713_s24  ;;  %v4357_v41 = vmul.f32 %v9530_v16, %v8640_v33  ;;  %v9531_v18 = vld [vmem:[#allocation4_spill] sm:$0xff]  ;;  %v9544_v16 = vld [vmem:[#allocation34_spill] sm:$0xff] }
 0x3de   : > { %3454 = vst.msk [vmem:[%s8575_s27 + $0xd8] sm:$0xff] %vm3426_vm0, %v3421_v39  ;;  %v3419_v54 = vmul.f32 %v6655_v11, %v8726_v31  ;;  %4753 = vrot.lane.b32.xlu0 %v4675_v7, %s6713_s24  ;;  %v4677_v39 = vmul.f32 %v9531_v18, %v8619_v6  ;;  %v9532_v7 = vld [vmem:[#allocation13_spill] sm:$0xff] }
 0x3e0   : > { %3452 = vst.msk [vmem:[%s8575_s27 + $0xc8] sm:$0xff] %vm3426_vm0, %v3419_v54  ;;  %v4678_v54 = vmul.f32 %v9532_v7, %v8640_v33  ;;  %v9534_v33 = vld [vmem:[#allocation18_spill] sm:$0xff] }
 0x3e1   : > { %4755 = vrot.lane.b32.xlu1 %v4676_v28, %s6713_s24  ;;  %v9545_v7 = vld [vmem:[#allocation14_spill] sm:$0xff] }
 0x3e2   : > { %v6657_v53 = vpop.eup %6656  ;;  %4108 = vrot.lane.b32.xlu0 %v4032_v23, %s6713_s24  ;;  %v9533_v23 = vld [vmem:[#allocation17_spill] sm:$0xff] }
 0x3e3   : > { %v6659_v20 = vpop.eup %6658  ;;  %v3424_v24 = vmul.f32 %v6657_v53, %v8752_v57  ;;  %v4042_v53 = vmul.f32 %v9533_v23, %v8659_v17 }
 0x3e4   : > { %v6661_v14 = vpop.eup %6660  ;;  %v3422_v10 = vmul.f32 %v6659_v20, %v8757_v21 }
 0x3e5   : > { %v6663_v63 = vpop.eup %6662  ;;  %3457 = vst.msk [vmem:[%s8575_s27 + $0xf0] sm:$0xff] %vm3426_vm0, %v3424_v24  ;;  %v3425_v34 = vmul.f32 %v6661_v14, %v8764_v48  ;;  %4110 = vrot.lane.b32.xlu1 %v4033_v3, %s6713_s24  ;;  %v4043_v24 = vmul.f32 %v9534_v33, %v8671_v38  ;;  %v9535_v14 = vld [vmem:[#allocation29_spill] sm:$0xff] }
 0x3e6   : > { %3455 = vst.msk [vmem:[%s8575_s27 + $0xe0] sm:$0xff] %vm3426_vm0, %v3422_v10  ;;  %v3423_v8 = vmul.f32 %v6663_v63, %v8775_v13  ;;  %4428 = vrot.lane.b32.xlu0 %v4352_v62, %s6713_s24  ;;  %v4362_v10 = vmul.f32 %v9535_v14, %v8659_v17 }
 0x3e7   : > { %3458 = vst.msk [vmem:[%s8575_s27 + $0xf8] sm:$0xff] %vm3426_vm0, %v3425_v34  ;;  %v9536_v34 = vld [vmem:[#allocation30_spill] sm:$0xff] }
 0x3e8   : > { %3456 = vst.msk [vmem:[%s8575_s27 + $0xe8] sm:$0xff] %vm3426_vm0, %v3423_v8  ;;  %v4363_v62 = vmul.f32 %v9536_v34, %v8671_v38  ;;  %v4686_v34 = vmul.f32 %v8703_v36, %v8726_v31  ;;  %v9551_v36 = vld [vmem:[#allocation22_spill] sm:$0xff] }
 0x3e9   : > { %4430 = vrot.lane.b32.xlu1 %v4353_v35, %s6713_s24  ;;  %v4683_v35 = vmul.f32 %v8591_v58, %v8659_v17  ;;  %v9538_v17 = vld [vmem:[#allocation8_spill] sm:$0xff] }
 0x3ea   : > { %4749 = vrot.lane.b32.xlu0 %v4673_v19, %s6713_s24 }
 0x3ed   : > { %4751 = vrot.lane.b32.xlu1 %v4674_v42, %s6713_s24  ;;  %v4684_v42 = vmul.f32 %v8608_v40, %v8671_v38  ;;  %v9539_v38 = vld [vmem:[#allocation31_spill] sm:$0xff] }
 0x3ee   : > { %4120 = vrot.lane.b32.xlu0 %v4038_v47, %s6713_s24  ;;  %v9537_v47 = vld [vmem:[#allocation12_spill] sm:$0xff]  ;;  %v4360_v45 = vmul.f32 %v9539_v38, %v8665_v22 }
 0x3ef   : > { %v4040_v37 = vmul.f32 %v9537_v47, %v8665_v22  ;;  %v4046_v22 = vmul.f32 %v9541_v32, %v8708_v51 }
 0x3f1   : > { %4122 = vrot.lane.b32.xlu1 %v4039_v25, %s6713_s24  ;;  %v4041_v25 = vmul.f32 %v9538_v17, %v8683_v52 }
 0x3f2   : > { %4440 = vrot.lane.b32.xlu0 %v4358_v27, %s6713_s24 }
 0x3f5   : > { %4442 = vrot.lane.b32.xlu1 %v4359_v4, %s6713_s24  ;;  %v4361_v4 = vmul.f32 %v9540_v5, %v8683_v52  ;;  %v4047_v52 = vmul.f32 %v9542_v44, %v8719_v29 }
 0x3f6   : > { %4761 = vrot.lane.b32.xlu0 %v4679_v56, %s6713_s24 }
 0x3f9   : > { %4763 = vrot.lane.b32.xlu1 %v4680_v2, %s6713_s24 }
 0x3fa   : > { %4116 = vrot.lane.b32.xlu0 %v4036_v61, %s6713_s24 }
 0x3fd   : > { %4118 = vrot.lane.b32.xlu1 %v4037_v60, %s6713_s24  ;;  %v9543_v60 = vld [vmem:[#allocation33_spill] sm:$0xff] }
 0x3fe   : > { %4436 = vrot.lane.b32.xlu0 %v4356_v46, %s6713_s24  ;;  %v4366_v9 = vmul.f32 %v9543_v60, %v8708_v51 }
 0x3ff   : > { %v4089_v11 = vpop.permute.xlu0 %4088 }
 0x400   : > { %4182 = vst.msk [vmem:[%s8913_s23 + $0x10] sm:$0xff] %vm3426_vm0, %v4089_v11 }
 0x401   : > { %4438 = vrot.lane.b32.xlu1 %v4357_v41, %s6713_s24  ;;  %v4091_v28 = vpop.permute.xlu1 %4090  ;;  %v4367_v41 = vmul.f32 %v9544_v16, %v8719_v29 }
 0x402   : > { %4757 = vrot.lane.b32.xlu0 %v4677_v39, %s6713_s24  ;;  %4183 = vst.msk [vmem:[%s8913_s23 + $0x18] sm:$0xff] %vm3426_vm0, %v4091_v28  ;;  %v4687_v39 = vmul.f32 %v8656_v0, %v8708_v51  ;;  %v9547_v51 = vld [vmem:[#allocation20_spill] sm:$0xff] }
 0x403   : > { %v4409_v6 = vpop.permute.xlu0 %4408 }
 0x404   : > { %5675 = vst.msk [vmem:[%s8913_s23 + $0x110] sm:$0xff] %vm3426_vm0, %v4409_v6  ;;  %v9546_v6 = vld [vmem:[#allocation6_spill] sm:$0xff] }
 0x405   : > { %4759 = vrot.lane.b32.xlu1 %v4678_v54, %s6713_s24  ;;  %v4411_v20 = vpop.permute.xlu1 %4410  ;;  %v4688_v54 = vmul.f32 %v9545_v7, %v8719_v29  ;;  %v4044_v23 = vmul.f32 %v9546_v6, %v8711_v50 }
 0x406   : > { %4128 = vrot.lane.b32.xlu0 %v4042_v53, %s6713_s24  ;;  %5676 = vst.msk [vmem:[%s8913_s23 + $0x118] sm:$0xff] %vm3426_vm0, %v4411_v20  ;;  %v4045_v53 = vmul.f32 %v9547_v51, %v8726_v31  ;;  %v9548_v20 = vld [vmem:[#allocation35_spill] sm:$0xff] }
 0x407   : > { %v4730_v3 = vpop.permute.xlu0 %4729  ;;  %v4364_v33 = vmul.f32 %v9548_v20, %v8711_v50 }
 0x408   : > { %5707 = vst.msk [vmem:[%s8913_s23 + $0x210] sm:$0xff] %vm3426_vm0, %v4730_v3  ;;  %v9549_v3 = vld [vmem:[#allocation36_spill] sm:$0xff] }
 0x409   : > { %4130 = vrot.lane.b32.xlu1 %v4043_v24, %s6713_s24  ;;  %v4732_v63 = vpop.permute.xlu1 %4731  ;;  %v4365_v14 = vmul.f32 %v9549_v3, %v8726_v31  ;;  %v4051_v31 = vmul.f32 %v9551_v36, %v8764_v48 }
 0x40a   : > { %4448 = vrot.lane.b32.xlu0 %v4362_v10, %s6713_s24  ;;  %5708 = vst.msk [vmem:[%s8913_s23 + $0x218] sm:$0xff] %vm3426_vm0, %v4732_v63  ;;  %v4685_v10 = vmul.f32 %v8689_v59, %v8711_v50  ;;  %v9550_v59 = vld [vmem:[#allocation21_spill] sm:$0xff] }
 0x40b   : > { %v4085_v8 = vpop.permute.xlu0 %4084  ;;  %v4050_v50 = vmul.f32 %v9550_v59, %v8752_v57 }
 0x40c   : > { %4180 = vst.msk [vmem:[%s8913_s23] sm:$0xff] %vm3426_vm0, %v4085_v8 }
 0x40d   : > { %4450 = vrot.lane.b32.xlu1 %v4363_v62, %s6713_s24  ;;  %v4087_v19 = vpop.permute.xlu1 %4086 }
 0x40e   : > { %4769 = vrot.lane.b32.xlu0 %v4683_v35, %s6713_s24  ;;  %4181 = vst.msk [vmem:[%s8913_s23 + $0x8] sm:$0xff] %vm3426_vm0, %v4087_v19 }
 0x40f   : > { %v4405_v26 = vpop.permute.xlu0 %4404 }
 0x410   : > { %5673 = vst.msk [vmem:[%s8913_s23 + $0x100] sm:$0xff] %vm3426_vm0, %v4405_v26 }
 0x411   : > { %4771 = vrot.lane.b32.xlu1 %v4684_v42, %s6713_s24  ;;  %v4407_v58 = vpop.permute.xlu1 %4406  ;;  %v9552_v42 = vld [vmem:[#allocation37_spill] sm:$0xff] }
 0x412   : > { %4124 = vrot.lane.b32.xlu0 %v4040_v37, %s6713_s24  ;;  %5674 = vst.msk [vmem:[%s8913_s23 + $0x108] sm:$0xff] %vm3426_vm0, %v4407_v58  ;;  %v4370_v26 = vmul.f32 %v9552_v42, %v8752_v57  ;;  %v9553_v37 = vld [vmem:[#allocation38_spill] sm:$0xff] }
 0x413   : > { %v4726_v40 = vpop.permute.xlu0 %4725  ;;  %v4371_v58 = vmul.f32 %v9553_v37, %v8764_v48 }
 0x414   : > { %5705 = vst.msk [vmem:[%s8913_s23 + $0x200] sm:$0xff] %vm3426_vm0, %v4726_v40 }
 0x415   : > { %4126 = vrot.lane.b32.xlu1 %v4041_v25, %s6713_s24  ;;  %v4728_v27 = vpop.permute.xlu1 %4727  ;;  %v9554_v25 = vld [vmem:[#allocation23_spill] sm:$0xff] }
 0x416   : > { %4444 = vrot.lane.b32.xlu0 %v4360_v45, %s6713_s24  ;;  %5706 = vst.msk [vmem:[%s8913_s23 + $0x208] sm:$0xff] %vm3426_vm0, %v4728_v27  ;;  %v4048_v40 = vmul.f32 %v9554_v25, %v8757_v21  ;;  %v9555_v45 = vld [vmem:[#allocation24_spill] sm:$0xff] }
 0x417   : > { %v4097_v56 = vpop.permute.xlu0 %4096  ;;  %v4049_v27 = vmul.f32 %v9555_v45, %v8775_v13 }
 0x418   : > { %4186 = vst.msk [vmem:[%s8913_s23 + $0x30] sm:$0xff] %vm3426_vm0, %v4097_v56 }
 0x419   : > { %4446 = vrot.lane.b32.xlu1 %v4361_v4, %s6713_s24  ;;  %v4099_v2 = vpop.permute.xlu1 %4098  ;;  %v9556_v4 = vld [vmem:[#allocation39_spill] sm:$0xff] }
 0x41a   : > { %4765 = vrot.lane.b32.xlu0 %v4681_v49, %s6713_s24  ;;  %4187 = vst.msk [vmem:[%s8913_s23 + $0x38] sm:$0xff] %vm3426_vm0, %v4099_v2  ;;  %v4368_v49 = vmul.f32 %v9556_v4, %v8757_v21 }
 0x41b   : > { %v4417_v30 = vpop.permute.xlu0 %4416 }
 0x41c   : > { %5679 = vst.msk [vmem:[%s8913_s23 + $0x130] sm:$0xff] %vm3426_vm0, %v4417_v30 }
 0x41d   : > { %4767 = vrot.lane.b32.xlu1 %v4682_v43, %s6713_s24  ;;  %v4419_v61 = vpop.permute.xlu1 %4418  ;;  %v9557_v43 = vld [vmem:[#allocation40_spill] sm:$0xff] }
 0x41e   : > { %4136 = vrot.lane.b32.xlu0 %v4046_v22, %s6713_s24  ;;  %5680 = vst.msk [vmem:[%s8913_s23 + $0x138] sm:$0xff] %vm3426_vm0, %v4419_v61  ;;  %v4369_v2 = vmul.f32 %v9557_v43, %v8775_v13  ;;  %v4691_v13 = vmul.f32 %v8721_v15, %v8752_v57 }
 0x41f   : > { %v4738_v1 = vpop.permute.xlu0 %4737 }
 0x420   : > { %5711 = vst.msk [vmem:[%s8913_s23 + $0x230] sm:$0xff] %vm3426_vm0, %v4738_v1 }
 0x421   : > { %4138 = vrot.lane.b32.xlu1 %v4047_v52, %s6713_s24  ;;  %v4740_v46 = vpop.permute.xlu1 %4739 }
 0x422   : > { %4456 = vrot.lane.b32.xlu0 %v4366_v9, %s6713_s24  ;;  %5712 = vst.msk [vmem:[%s8913_s23 + $0x238] sm:$0xff] %vm3426_vm0, %v4740_v46 }
 0x424   : > { %v4093_v18 = vpop.permute.xlu0 %4092 }
 0x425   : > { %4458 = vrot.lane.b32.xlu1 %v4367_v41, %s6713_s24  ;;  %4184 = vst.msk [vmem:[%s8913_s23 + $0x20] sm:$0xff] %vm3426_vm0, %v4093_v18 }
 0x426   : > { %v4095_v11 = vpop.permute.xlu1 %4094  ;;  %4777 = vrot.lane.b32.xlu0 %v4687_v39, %s6713_s24 }
 0x427   : > { %4185 = vst.msk [vmem:[%s8913_s23 + $0x28] sm:$0xff] %vm3426_vm0, %v4095_v11 }
 0x428   : > { %v4413_v28 = vpop.permute.xlu0 %4412 }
 0x429   : > { %4779 = vrot.lane.b32.xlu1 %v4688_v54, %s6713_s24  ;;  %5677 = vst.msk [vmem:[%s8913_s23 + $0x120] sm:$0xff] %vm3426_vm0, %v4413_v28 }
 0x42a   : > { %v4415_v0 = vpop.permute.xlu1 %4414  ;;  %4132 = vrot.lane.b32.xlu0 %v4044_v23, %s6713_s24 }
 0x42b   : > { %5678 = vst.msk [vmem:[%s8913_s23 + $0x128] sm:$0xff] %vm3426_vm0, %v4415_v0 }
 0x42c   : > { %v4734_v29 = vpop.permute.xlu0 %4733 }
 0x42d   : > { %4134 = vrot.lane.b32.xlu1 %v4045_v53, %s6713_s24  ;;  %5709 = vst.msk [vmem:[%s8913_s23 + $0x220] sm:$0xff] %vm3426_vm0, %v4734_v29 }
 0x42e   : > { %v4736_v24 = vpop.permute.xlu1 %4735  ;;  %4452 = vrot.lane.b32.xlu0 %v4364_v33, %s6713_s24 }
 0x42f   : > { %5710 = vst.msk [vmem:[%s8913_s23 + $0x228] sm:$0xff] %vm3426_vm0, %v4736_v24 }
 0x430   : > { %v4105_v63 = vpop.permute.xlu0 %4104 }
 0x431   : > { %4454 = vrot.lane.b32.xlu1 %v4365_v14, %s6713_s24  ;;  %4190 = vst.msk [vmem:[%s8913_s23 + $0x50] sm:$0xff] %vm3426_vm0, %v4105_v63 }
 0x432   : > { %v4107_v62 = vpop.permute.xlu1 %4106  ;;  %4773 = vrot.lane.b32.xlu0 %v4685_v10, %s6713_s24 }
 0x433   : > { %4191 = vst.msk [vmem:[%s8913_s23 + $0x58] sm:$0xff] %vm3426_vm0, %v4107_v62 }
 0x434   : > { %v4425_v8 = vpop.permute.xlu0 %4424 }
 0x435   : > { %4775 = vrot.lane.b32.xlu1 %v4686_v34, %s6713_s24  ;;  %5683 = vst.msk [vmem:[%s8913_s23 + $0x150] sm:$0xff] %vm3426_vm0, %v4425_v8 }
 0x436   : > { %v4427_v35 = vpop.permute.xlu1 %4426  ;;  %4144 = vrot.lane.b32.xlu0 %v4050_v50, %s6713_s24 }
 0x437   : > { %5684 = vst.msk [vmem:[%s8913_s23 + $0x158] sm:$0xff] %vm3426_vm0, %v4427_v35 }
 0x438   : > { %v4746_v19 = vpop.permute.xlu0 %4745 }
 0x439   : > { %4146 = vrot.lane.b32.xlu1 %v4051_v31, %s6713_s24  ;;  %5715 = vst.msk [vmem:[%s8913_s23 + $0x250] sm:$0xff] %vm3426_vm0, %v4746_v19 }
 0x43a   : > { %v4748_v47 = vpop.permute.xlu1 %4747  ;;  %4464 = vrot.lane.b32.xlu0 %v4370_v26, %s6713_s24 }
 0x43b   : > { %5716 = vst.msk [vmem:[%s8913_s23 + $0x258] sm:$0xff] %vm3426_vm0, %v4748_v47 }
 0x43c   : > { %v4101_v17 = vpop.permute.xlu0 %4100 }
 0x43d   : > { %4466 = vrot.lane.b32.xlu1 %v4371_v58, %s6713_s24  ;;  %4188 = vst.msk [vmem:[%s8913_s23 + $0x40] sm:$0xff] %vm3426_vm0, %v4101_v17 }
 0x43e   : > { %4140 = vrot.lane.b32.xlu0 %v4048_v40, %s6713_s24 }
 0x43f   : > { %v4103_v38 = vpop.permute.xlu1 %4102 }
 0x440   : > { %4189 = vst.msk [vmem:[%s8913_s23 + $0x48] sm:$0xff] %vm3426_vm0, %v4103_v38  ;;  %v4421_v5 = vpop.permute.xlu0 %4420 }
 0x441   : > { %4142 = vrot.lane.b32.xlu1 %v4049_v27, %s6713_s24  ;;  %5681 = vst.msk [vmem:[%s8913_s23 + $0x140] sm:$0xff] %vm3426_vm0, %v4421_v5 }
 0x442   : > { %4460 = vrot.lane.b32.xlu0 %v4368_v49, %s6713_s24 }
 0x443   : > { %v4423_v56 = vpop.permute.xlu1 %4422 }
 0x444   : > { %5682 = vst.msk [vmem:[%s8913_s23 + $0x148] sm:$0xff] %vm3426_vm0, %v4423_v56  ;;  %v4742_v30 = vpop.permute.xlu0 %4741 }
 0x445   : > { %4462 = vrot.lane.b32.xlu1 %v4369_v2, %s6713_s24  ;;  %5713 = vst.msk [vmem:[%s8913_s23 + $0x240] sm:$0xff] %vm3426_vm0, %v4742_v30 }
 0x446   : > { %4781 = vrot.lane.b32.xlu0 %v8769_v12, %s6713_s24  ;;  %v9558_v12 = vld [vmem:[#allocation41_spill] sm:$0xff] }
 0x447   : > { %v4744_v32 = vpop.permute.xlu1 %4743  ;;  %v4692_v61 = vmul.f32 %v9558_v12, %v8764_v48  ;;  %v5098_v12 = vld [vmem:[%s8913_s23 + $0x20] sm:$0xff] (%p6800_p5) }
 0x448   : > { %5714 = vst.msk [vmem:[%s8913_s23 + $0x248] sm:$0xff] %vm3426_vm0, %v4744_v32  ;;  %v4113_v21 = vpop.permute.xlu0 %4112  ;;  %v5090_v32 = vld [vmem:[%s8913_s23] sm:$0xff] (%p6800_p5)  ;;  %5099 = vst [vmem:[%s9226_s30 + $0x20] sm:$0xff] (%p6800_p5), %v5098_v12 }
 0x449   : > { %4783 = vrot.lane.b32.xlu1 %v8787_v55, %s6713_s24  ;;  %4194 = vst.msk [vmem:[%s8913_s23 + $0x70] sm:$0xff] %vm3426_vm0, %v4113_v21  ;;  %v5092_v21 = vld [vmem:[%s8913_s23 + $0x8] sm:$0xff] (%p6800_p5)  ;;  %5091 = vst [vmem:[%s9226_s30] sm:$0xff] (%p6800_p5), %v5090_v32 }
 0x44a   : > { %4785 = vrot.lane.b32.xlu0 %v4691_v13, %s6713_s24  ;;  %v5094_v13 = vld [vmem:[%s8913_s23 + $0x10] sm:$0xff] (%p6800_p5)  ;;  %5093 = vst [vmem:[%s9226_s30 + $0x8] sm:$0xff] (%p6800_p5), %v5092_v21  ;;  %v5218_v32 = vld [vmem:[%s8913_s23 + $0x200] sm:$0xff] (%p6800_p5) }
 0x44b   : > { %v4115_v22 = vpop.permute.xlu1 %4114  ;;  %5095 = vst [vmem:[%s9226_s30 + $0x10] sm:$0xff] (%p6800_p5), %v5094_v13  ;;  %v5220_v21 = vld [vmem:[%s8913_s23 + $0x208] sm:$0xff] (%p6800_p5)  ;;  %5219 = vst [vmem:[%s9226_s30 + $0x400] sm:$0xff] (%p6800_p5), %v5218_v32  ;;  %v5222_v13 = vld [vmem:[%s8913_s23 + $0x210] sm:$0xff] (%p6800_p5) }
 0x44c   : > { %4195 = vst.msk [vmem:[%s8913_s23 + $0x78] sm:$0xff] %vm3426_vm0, %v4115_v22  ;;  %v4433_v44 = vpop.permute.xlu0 %4432  ;;  %v5096_v22 = vld [vmem:[%s8913_s23 + $0x18] sm:$0xff] (%p6800_p5)  ;;  %5221 = vst [vmem:[%s9226_s30 + $0x408] sm:$0xff] (%p6800_p5), %v5220_v21  ;;  %v5226_v12 = vld [vmem:[%s8913_s23 + $0x220] sm:$0xff] (%p6800_p5) }
 0x44d   : > { %4787 = vrot.lane.b32.xlu1 %v4692_v61, %s6713_s24  ;;  %5687 = vst.msk [vmem:[%s8913_s23 + $0x170] sm:$0xff] %vm3426_vm0, %v4433_v44  ;;  %v5100_v61 = vld [vmem:[%s8913_s23 + $0x28] sm:$0xff] (%p6800_p5)  ;;  %5097 = vst [vmem:[%s9226_s30 + $0x18] sm:$0xff] (%p6800_p5), %v5096_v22 }
 0x44e   : > { %5101 = vst [vmem:[%s9226_s30 + $0x28] sm:$0xff] (%p6800_p5), %v5100_v61  ;;  %v5102_v44 = vld [vmem:[%s8913_s23 + $0x30] sm:$0xff] (%p6800_p5)  ;;  %v5224_v22 = vld [vmem:[%s8913_s23 + $0x218] sm:$0xff] (%p6800_p5)  ;;  %5223 = vst [vmem:[%s9226_s30 + $0x410] sm:$0xff] (%p6800_p5), %v5222_v13 }
 0x44f   : > { %v4435_v15 = vpop.permute.xlu1 %4434  ;;  %5103 = vst [vmem:[%s9226_s30 + $0x30] sm:$0xff] (%p6800_p5), %v5102_v44  ;;  %5225 = vst [vmem:[%s9226_s30 + $0x418] sm:$0xff] (%p6800_p5), %v5224_v22  ;;  %v5228_v61 = vld [vmem:[%s8913_s23 + $0x228] sm:$0xff] (%p6800_p5)  ;;  %v5230_v44 = vld [vmem:[%s8913_s23 + $0x230] sm:$0xff] (%p6800_p5) }
 0x450   : > { %5688 = vst.msk [vmem:[%s8913_s23 + $0x178] sm:$0xff] %vm3426_vm0, %v4435_v15  ;;  %v4754_v57 = vpop.permute.xlu0 %4753  ;;  %v5104_v15 = vld [vmem:[%s8913_s23 + $0x38] sm:$0xff] (%p6800_p5)  ;;  %5227 = vst [vmem:[%s9226_s30 + $0x420] sm:$0xff] (%p6800_p5), %v5226_v12 }
 0x451   : > { %5719 = vst.msk [vmem:[%s8913_s23 + $0x270] sm:$0xff] %vm3426_vm0, %v4754_v57  ;;  %v5106_v57 = vld [vmem:[%s8913_s23 + $0x40] sm:$0xff] (%p6800_p5)  ;;  %5105 = vst [vmem:[%s9226_s30 + $0x38] sm:$0xff] (%p6800_p5), %v5104_v15  ;;  %v5232_v15 = vld [vmem:[%s8913_s23 + $0x238] sm:$0xff] (%p6800_p5) }
 0x452   : > { %5107 = vst [vmem:[%s9226_s30 + $0x40] sm:$0xff] (%p6800_p5), %v5106_v57  ;;  %5229 = vst [vmem:[%s9226_s30 + $0x428] sm:$0xff] (%p6800_p5), %v5228_v61  ;;  %v5234_v57 = vld [vmem:[%s8913_s23 + $0x240] sm:$0xff] (%p6800_p5) }
 0x453   : > { %v4756_v55 = vpop.permute.xlu1 %4755  ;;  %5231 = vst [vmem:[%s9226_s30 + $0x430] sm:$0xff] (%p6800_p5), %v5230_v44  ;;  %5233 = vst [vmem:[%s9226_s30 + $0x438] sm:$0xff] (%p6800_p5), %v5232_v15 }
 0x454   : > { %5720 = vst.msk [vmem:[%s8913_s23 + $0x278] sm:$0xff] %vm3426_vm0, %v4756_v55  ;;  %v4109_v48 = vpop.permute.xlu0 %4108  ;;  %v5108_v55 = vld [vmem:[%s8913_s23 + $0x48] sm:$0xff] (%p6800_p5)  ;;  %5235 = vst [vmem:[%s9226_s30 + $0x440] sm:$0xff] (%p6800_p5), %v5234_v57 }
 0x455   : > { %4192 = vst.msk [vmem:[%s8913_s23 + $0x60] sm:$0xff] %vm3426_vm0, %v4109_v48  ;;  %v5110_v48 = vld [vmem:[%s8913_s23 + $0x50] sm:$0xff] (%p6800_p5)  ;;  %5109 = vst [vmem:[%s9226_s30 + $0x48] sm:$0xff] (%p6800_p5), %v5108_v55  ;;  %v5236_v55 = vld [vmem:[%s8913_s23 + $0x248] sm:$0xff] (%p6800_p5) }
 0x456   : > { %5111 = vst [vmem:[%s9226_s30 + $0x50] sm:$0xff] (%p6800_p5), %v5110_v48  ;;  %v5238_v48 = vld [vmem:[%s8913_s23 + $0x250] sm:$0xff] (%p6800_p5)  ;;  %5237 = vst [vmem:[%s9226_s30 + $0x448] sm:$0xff] (%p6800_p5), %v5236_v55 }
 0x457   : > { %v4111_v52 = vpop.permute.xlu1 %4110  ;;  %5239 = vst [vmem:[%s9226_s30 + $0x450] sm:$0xff] (%p6800_p5), %v5238_v48 }
 0x458   : > { %4193 = vst.msk [vmem:[%s8913_s23 + $0x68] sm:$0xff] %vm3426_vm0, %v4111_v52  ;;  %v4429_v1 = vpop.permute.xlu0 %4428  ;;  %v5112_v52 = vld [vmem:[%s8913_s23 + $0x58] sm:$0xff] (%p6800_p5) }
 0x459   : > { %5685 = vst.msk [vmem:[%s8913_s23 + $0x160] sm:$0xff] %vm3426_vm0, %v4429_v1  ;;  %5113 = vst [vmem:[%s9226_s30 + $0x58] sm:$0xff] (%p6800_p5), %v5112_v52  ;;  %v5240_v52 = vld [vmem:[%s8913_s23 + $0x258] sm:$0xff] (%p6800_p5) }
 0x45a   : > { %5241 = vst [vmem:[%s9226_s30 + $0x458] sm:$0xff] (%p6800_p5), %v5240_v52 }
 0x45b   : > { %v4431_v60 = vpop.permute.xlu1 %4430 }
 0x45c   : > { %5686 = vst.msk [vmem:[%s8913_s23 + $0x168] sm:$0xff] %vm3426_vm0, %v4431_v60  ;;  %v4750_v9 = vpop.permute.xlu0 %4749  ;;  %v5114_v1 = vld [vmem:[%s8913_s23 + $0x60] sm:$0xff] (%p6800_p5) }
 0x45d   : > { %5717 = vst.msk [vmem:[%s8913_s23 + $0x260] sm:$0xff] %vm3426_vm0, %v4750_v9  ;;  %v5118_v9 = vld [vmem:[%s8913_s23 + $0x70] sm:$0xff] (%p6800_p5)  ;;  %5115 = vst [vmem:[%s9226_s30 + $0x60] sm:$0xff] (%p6800_p5), %v5114_v1 }
 0x45e   : > { %5119 = vst [vmem:[%s9226_s30 + $0x70] sm:$0xff] (%p6800_p5), %v5118_v9  ;;  %v5246_v9 = vld [vmem:[%s8913_s23 + $0x270] sm:$0xff] (%p6800_p5) }
 0x45f   : > { %v4752_v46 = vpop.permute.xlu1 %4751  ;;  %v5116_v60 = vld [vmem:[%s8913_s23 + $0x68] sm:$0xff] (%p6800_p5)  ;;  %5247 = vst [vmem:[%s9226_s30 + $0x470] sm:$0xff] (%p6800_p5), %v5246_v9 }
 0x460   : > { %5718 = vst.msk [vmem:[%s8913_s23 + $0x268] sm:$0xff] %vm3426_vm0, %v4752_v46  ;;  %v4121_v16 = vpop.permute.xlu0 %4120  ;;  %5117 = vst [vmem:[%s9226_s30 + $0x68] sm:$0xff] (%p6800_p5), %v5116_v60  ;;  %v5120_v46 = vld [vmem:[%s8913_s23 + $0x78] sm:$0xff] (%p6800_p5) }
 0x461   : > { %4198 = vst.msk [vmem:[%s8913_s23 + $0x90] sm:$0xff] %vm3426_vm0, %v4121_v16  ;;  %5121 = vst [vmem:[%s9226_s30 + $0x78] sm:$0xff] (%p6800_p5), %v5120_v46  ;;  %v5248_v46 = vld [vmem:[%s8913_s23 + $0x278] sm:$0xff] (%p6800_p5) }
 0x462   : > { %5249 = vst [vmem:[%s9226_s30 + $0x478] sm:$0xff] (%p6800_p5), %v5248_v46 }
 0x463   : > { %v4123_v41 = vpop.permute.xlu1 %4122 }
 0x464   : > { %4199 = vst.msk [vmem:[%s8913_s23 + $0x98] sm:$0xff] %vm3426_vm0, %v4123_v41  ;;  %v4441_v18 = vpop.permute.xlu0 %4440  ;;  %v5242_v1 = vld [vmem:[%s8913_s23 + $0x260] sm:$0xff] (%p6800_p5) }
 0x465   : > { %5691 = vst.msk [vmem:[%s8913_s23 + $0x190] sm:$0xff] %vm3426_vm0, %v4441_v18  ;;  %5243 = vst [vmem:[%s9226_s30 + $0x460] sm:$0xff] (%p6800_p5), %v5242_v1 }
 0x467   : > { %v4443_v39 = vpop.permute.xlu1 %4442  ;;  %v5244_v60 = vld [vmem:[%s8913_s23 + $0x268] sm:$0xff] (%p6800_p5) }
 0x468   : > { %5692 = vst.msk [vmem:[%s8913_s23 + $0x198] sm:$0xff] %vm3426_vm0, %v4443_v39  ;;  %v4762_v11 = vpop.permute.xlu0 %4761  ;;  %v5126_v18 = vld [vmem:[%s8913_s23 + $0x90] sm:$0xff] (%p6800_p5)  ;;  %5245 = vst [vmem:[%s9226_s30 + $0x468] sm:$0xff] (%p6800_p5), %v5244_v60 }
 0x469   : > { %5723 = vst.msk [vmem:[%s8913_s23 + $0x290] sm:$0xff] %vm3426_vm0, %v4762_v11  ;;  %5127 = vst [vmem:[%s9226_s30 + $0x90] sm:$0xff] (%p6800_p5), %v5126_v18 }
 0x46b   : > { %v4764_v7 = vpop.permute.xlu1 %4763  ;;  %v5128_v39 = vld [vmem:[%s8913_s23 + $0x98] sm:$0xff] (%p6800_p5) }
 0x46c   : > { %5724 = vst.msk [vmem:[%s8913_s23 + $0x298] sm:$0xff] %vm3426_vm0, %v4764_v7  ;;  %v4117_v54 = vpop.permute.xlu0 %4116  ;;  %5129 = vst [vmem:[%s9226_s30 + $0x98] sm:$0xff] (%p6800_p5), %v5128_v39 }
 0x46d   : > { %4196 = vst.msk [vmem:[%s8913_s23 + $0x80] sm:$0xff] %vm3426_vm0, %v4117_v54 }
 0x46f   : > { %v4119_v28 = vpop.permute.xlu1 %4118 }
 0x470   : > { %4197 = vst.msk [vmem:[%s8913_s23 + $0x88] sm:$0xff] %vm3426_vm0, %v4119_v28  ;;  %v4437_v6 = vpop.permute.xlu0 %4436  ;;  %v5254_v18 = vld [vmem:[%s8913_s23 + $0x290] sm:$0xff] (%p6800_p5) }
 0x471   : > { %5689 = vst.msk [vmem:[%s8913_s23 + $0x180] sm:$0xff] %vm3426_vm0, %v4437_v6  ;;  %5255 = vst [vmem:[%s9226_s30 + $0x490] sm:$0xff] (%p6800_p5), %v5254_v18 }
 0x473   : > { %v4439_v23 = vpop.permute.xlu1 %4438  ;;  %v5256_v39 = vld [vmem:[%s8913_s23 + $0x298] sm:$0xff] (%p6800_p5) }
 0x474   : > { %5690 = vst.msk [vmem:[%s8913_s23 + $0x188] sm:$0xff] %vm3426_vm0, %v4439_v23  ;;  %v4758_v0 = vpop.permute.xlu0 %4757  ;;  %v5122_v16 = vld [vmem:[%s8913_s23 + $0x80] sm:$0xff] (%p6800_p5)  ;;  %5257 = vst [vmem:[%s9226_s30 + $0x498] sm:$0xff] (%p6800_p5), %v5256_v39 }
 0x475   : > { %5721 = vst.msk [vmem:[%s8913_s23 + $0x280] sm:$0xff] %vm3426_vm0, %v4758_v0  ;;  %5123 = vst [vmem:[%s9226_s30 + $0x80] sm:$0xff] (%p6800_p5), %v5122_v16 }
 0x477   : > { %v4760_v51 = vpop.permute.xlu1 %4759  ;;  %v5124_v41 = vld [vmem:[%s8913_s23 + $0x88] sm:$0xff] (%p6800_p5) }
 0x478   : > { %5722 = vst.msk [vmem:[%s8913_s23 + $0x288] sm:$0xff] %vm3426_vm0, %v4760_v51  ;;  %v4129_v53 = vpop.permute.xlu0 %4128  ;;  %5125 = vst [vmem:[%s9226_s30 + $0x88] sm:$0xff] (%p6800_p5), %v5124_v41 }
 0x479   : > { %4202 = vst.msk [vmem:[%s8913_s23 + $0xb0] sm:$0xff] %vm3426_vm0, %v4129_v53 }
 0x47b   : > { %v4131_v29 = vpop.permute.xlu1 %4130 }
 0x47c   : > { %4203 = vst.msk [vmem:[%s8913_s23 + $0xb8] sm:$0xff] %vm3426_vm0, %v4131_v29  ;;  %v4449_v20 = vpop.permute.xlu0 %4448  ;;  %v5250_v16 = vld [vmem:[%s8913_s23 + $0x280] sm:$0xff] (%p6800_p5) }
 0x47d   : > { %5695 = vst.msk [vmem:[%s8913_s23 + $0x1b0] sm:$0xff] %vm3426_vm0, %v4449_v20  ;;  %5251 = vst [vmem:[%s9226_s30 + $0x480] sm:$0xff] (%p6800_p5), %v5250_v16 }
 0x47f   : > { %v4451_v33 = vpop.permute.xlu1 %4450  ;;  %v5252_v41 = vld [vmem:[%s8913_s23 + $0x288] sm:$0xff] (%p6800_p5) }
 0x480   : > { %5696 = vst.msk [vmem:[%s8913_s23 + $0x1b8] sm:$0xff] %vm3426_vm0, %v4451_v33  ;;  %v4770_v24 = vpop.permute.xlu0 %4769  ;;  %v5134_v54 = vld [vmem:[%s8913_s23 + $0xb0] sm:$0xff] (%p6800_p5)  ;;  %5253 = vst [vmem:[%s9226_s30 + $0x488] sm:$0xff] (%p6800_p5), %v5252_v41 }
 0x481   : > { %5727 = vst.msk [vmem:[%s8913_s23 + $0x2b0] sm:$0xff] %vm3426_vm0, %v4770_v24  ;;  %5135 = vst [vmem:[%s9226_s30 + $0xb0] sm:$0xff] (%p6800_p5), %v5134_v54  ;;  %v5154_v24 = vld [vmem:[%s8913_s23 + $0x100] sm:$0xff] (%p6800_p5) }
 0x482   : > { %5155 = vst [vmem:[%s9226_s30 + $0x200] sm:$0xff] (%p6800_p5), %v5154_v24 }
 0x483   : > { %v4772_v3 = vpop.permute.xlu1 %4771  ;;  %v5136_v28 = vld [vmem:[%s8913_s23 + $0xb8] sm:$0xff] (%p6800_p5) }
 0x484   : > { %5728 = vst.msk [vmem:[%s8913_s23 + $0x2b8] sm:$0xff] %vm3426_vm0, %v4772_v3  ;;  %v4125_v14 = vpop.permute.xlu0 %4124  ;;  %5137 = vst [vmem:[%s9226_s30 + $0xb8] sm:$0xff] (%p6800_p5), %v5136_v28  ;;  %v5156_v3 = vld [vmem:[%s8913_s23 + $0x108] sm:$0xff] (%p6800_p5) }
 0x485   : > { %4200 = vst.msk [vmem:[%s8913_s23 + $0xa0] sm:$0xff] %vm3426_vm0, %v4125_v14  ;;  %v5158_v14 = vld [vmem:[%s8913_s23 + $0x110] sm:$0xff] (%p6800_p5)  ;;  %5157 = vst [vmem:[%s9226_s30 + $0x208] sm:$0xff] (%p6800_p5), %v5156_v3 }
 0x486   : > { %5159 = vst [vmem:[%s9226_s30 + $0x210] sm:$0xff] (%p6800_p5), %v5158_v14 }
 0x487   : > { %v4127_v10 = vpop.permute.xlu1 %4126 }
 0x488   : > { %4201 = vst.msk [vmem:[%s8913_s23 + $0xa8] sm:$0xff] %vm3426_vm0, %v4127_v10  ;;  %v4445_v63 = vpop.permute.xlu0 %4444  ;;  %v5160_v10 = vld [vmem:[%s8913_s23 + $0x118] sm:$0xff] (%p6800_p5)  ;;  %v5262_v54 = vld [vmem:[%s8913_s23 + $0x2b0] sm:$0xff] (%p6800_p5) }
 0x489   : > { %5693 = vst.msk [vmem:[%s8913_s23 + $0x1a0] sm:$0xff] %vm3426_vm0, %v4445_v63  ;;  %5161 = vst [vmem:[%s9226_s30 + $0x218] sm:$0xff] (%p6800_p5), %v5160_v10  ;;  %v5162_v63 = vld [vmem:[%s8913_s23 + $0x120] sm:$0xff] (%p6800_p5) }
 0x48a   : > { %5163 = vst [vmem:[%s9226_s30 + $0x220] sm:$0xff] (%p6800_p5), %v5162_v63  ;;  %5263 = vst [vmem:[%s9226_s30 + $0x4b0] sm:$0xff] (%p6800_p5), %v5262_v54 }
 0x48b   : > { %v4447_v34 = vpop.permute.xlu1 %4446  ;;  %v5264_v28 = vld [vmem:[%s8913_s23 + $0x2b8] sm:$0xff] (%p6800_p5) }
 0x48c   : > { %5694 = vst.msk [vmem:[%s8913_s23 + $0x1a8] sm:$0xff] %vm3426_vm0, %v4447_v34  ;;  %v4766_v62 = vpop.permute.xlu0 %4765  ;;  %v5130_v11 = vld [vmem:[%s8913_s23 + $0xa0] sm:$0xff] (%p6800_p5)  ;;  %v5164_v34 = vld [vmem:[%s8913_s23 + $0x128] sm:$0xff] (%p6800_p5)  ;;  %5265 = vst [vmem:[%s9226_s30 + $0x4b8] sm:$0xff] (%p6800_p5), %v5264_v28 }
 0x48d   : > { %5725 = vst.msk [vmem:[%s8913_s23 + $0x2a0] sm:$0xff] %vm3426_vm0, %v4766_v62  ;;  %5131 = vst [vmem:[%s9226_s30 + $0xa0] sm:$0xff] (%p6800_p5), %v5130_v11  ;;  %v5166_v62 = vld [vmem:[%s8913_s23 + $0x130] sm:$0xff] (%p6800_p5) }
 0x48e   : > { %5165 = vst [vmem:[%s9226_s30 + $0x228] sm:$0xff] (%p6800_p5), %v5164_v34  ;;  %5167 = vst [vmem:[%s9226_s30 + $0x230] sm:$0xff] (%p6800_p5), %v5166_v62 }
 0x48f   : > { %v4768_v8 = vpop.permute.xlu1 %4767  ;;  %v5132_v7 = vld [vmem:[%s8913_s23 + $0xa8] sm:$0xff] (%p6800_p5) }
 0x490   : > { %5726 = vst.msk [vmem:[%s8913_s23 + $0x2a8] sm:$0xff] %vm3426_vm0, %v4768_v8  ;;  %v4137_v59 = vpop.permute.xlu0 %4136  ;;  %5133 = vst [vmem:[%s9226_s30 + $0xa8] sm:$0xff] (%p6800_p5), %v5132_v7  ;;  %v5168_v8 = vld [vmem:[%s8913_s23 + $0x138] sm:$0xff] (%p6800_p5) }
 0x491   : > { %4206 = vst.msk [vmem:[%s8913_s23 + $0xd0] sm:$0xff] %vm3426_vm0, %v4137_v59  ;;  %v5170_v59 = vld [vmem:[%s8913_s23 + $0x140] sm:$0xff] (%p6800_p5)  ;;  %5169 = vst [vmem:[%s9226_s30 + $0x238] sm:$0xff] (%p6800_p5), %v5168_v8 }
 0x492   : > { %5171 = vst [vmem:[%s9226_s30 + $0x240] sm:$0xff] (%p6800_p5), %v5170_v59 }
 0x493   : > { %v4139_v50 = vpop.permute.xlu1 %4138 }
 0x494   : > { %4207 = vst.msk [vmem:[%s8913_s23 + $0xd8] sm:$0xff] %vm3426_vm0, %v4139_v50  ;;  %v4457_v35 = vpop.permute.xlu0 %4456  ;;  %v5172_v50 = vld [vmem:[%s8913_s23 + $0x148] sm:$0xff] (%p6800_p5)  ;;  %v5258_v11 = vld [vmem:[%s8913_s23 + $0x2a0] sm:$0xff] (%p6800_p5) }
 0x495   : > { %5699 = vst.msk [vmem:[%s8913_s23 + $0x1d0] sm:$0xff] %vm3426_vm0, %v4457_v35  ;;  %5173 = vst [vmem:[%s9226_s30 + $0x248] sm:$0xff] (%p6800_p5), %v5172_v50  ;;  %v5174_v35 = vld [vmem:[%s8913_s23 + $0x150] sm:$0xff] (%p6800_p5) }
 0x496   : > { %5175 = vst [vmem:[%s9226_s30 + $0x250] sm:$0xff] (%p6800_p5), %v5174_v35  ;;  %5259 = vst [vmem:[%s9226_s30 + $0x4a0] sm:$0xff] (%p6800_p5), %v5258_v11 }
 0x497   : > { %v4459_v36 = vpop.permute.xlu1 %4458  ;;  %v5260_v7 = vld [vmem:[%s8913_s23 + $0x2a8] sm:$0xff] (%p6800_p5) }
 0x498   : > { %5700 = vst.msk [vmem:[%s8913_s23 + $0x1d8] sm:$0xff] %vm3426_vm0, %v4459_v36  ;;  %v4778_v31 = vpop.permute.xlu0 %4777  ;;  %v5142_v0 = vld [vmem:[%s8913_s23 + $0xd0] sm:$0xff] (%p6800_p5)  ;;  %v5176_v36 = vld [vmem:[%s8913_s23 + $0x158] sm:$0xff] (%p6800_p5)  ;;  %5261 = vst [vmem:[%s9226_s30 + $0x4a8] sm:$0xff] (%p6800_p5), %v5260_v7 }
 0x499   : > { %5731 = vst.msk [vmem:[%s8913_s23 + $0x2d0] sm:$0xff] %vm3426_vm0, %v4778_v31  ;;  %5143 = vst [vmem:[%s9226_s30 + $0xd0] sm:$0xff] (%p6800_p5), %v5142_v0  ;;  %v5178_v31 = vld [vmem:[%s8913_s23 + $0x160] sm:$0xff] (%p6800_p5) }
 0x49a   : > { %5177 = vst [vmem:[%s9226_s30 + $0x258] sm:$0xff] (%p6800_p5), %v5176_v36  ;;  %5179 = vst [vmem:[%s9226_s30 + $0x260] sm:$0xff] (%p6800_p5), %v5178_v31 }
 0x49b   : > { %v4780_v19 = vpop.permute.xlu1 %4779  ;;  %v5144_v51 = vld [vmem:[%s8913_s23 + $0xd8] sm:$0xff] (%p6800_p5) }
 0x49c   : > { %5732 = vst.msk [vmem:[%s8913_s23 + $0x2d8] sm:$0xff] %vm3426_vm0, %v4780_v19  ;;  %v4133_v42 = vpop.permute.xlu0 %4132  ;;  %5145 = vst [vmem:[%s9226_s30 + $0xd8] sm:$0xff] (%p6800_p5), %v5144_v51  ;;  %v5180_v19 = vld [vmem:[%s8913_s23 + $0x168] sm:$0xff] (%p6800_p5) }
 0x49d   : > { %4204 = vst.msk [vmem:[%s8913_s23 + $0xc0] sm:$0xff] %vm3426_vm0, %v4133_v42  ;;  %v5182_v42 = vld [vmem:[%s8913_s23 + $0x170] sm:$0xff] (%p6800_p5)  ;;  %5181 = vst [vmem:[%s9226_s30 + $0x268] sm:$0xff] (%p6800_p5), %v5180_v19 }
 0x49e   : > { %5183 = vst [vmem:[%s9226_s30 + $0x270] sm:$0xff] (%p6800_p5), %v5182_v42 }
 0x49f   : > { %v4135_v26 = vpop.permute.xlu1 %4134 }
 0x4a0   : > { %4205 = vst.msk [vmem:[%s8913_s23 + $0xc8] sm:$0xff] %vm3426_vm0, %v4135_v26  ;;  %v4453_v47 = vpop.permute.xlu0 %4452  ;;  %v5184_v26 = vld [vmem:[%s8913_s23 + $0x178] sm:$0xff] (%p6800_p5)  ;;  %v5270_v0 = vld [vmem:[%s8913_s23 + $0x2d0] sm:$0xff] (%p6800_p5) }
 0x4a1   : > { %5697 = vst.msk [vmem:[%s8913_s23 + $0x1c0] sm:$0xff] %vm3426_vm0, %v4453_v47  ;;  %5185 = vst [vmem:[%s9226_s30 + $0x278] sm:$0xff] (%p6800_p5), %v5184_v26  ;;  %v5186_v47 = vld [vmem:[%s8913_s23 + $0x180] sm:$0xff] (%p6800_p5) }
 0x4a2   : > { %5187 = vst [vmem:[%s9226_s30 + $0x280] sm:$0xff] (%p6800_p5), %v5186_v47  ;;  %5271 = vst [vmem:[%s9226_s30 + $0x4d0] sm:$0xff] (%p6800_p5), %v5270_v0 }
 0x4a3   : > { %v4455_v37 = vpop.permute.xlu1 %4454  ;;  %v5272_v51 = vld [vmem:[%s8913_s23 + $0x2d8] sm:$0xff] (%p6800_p5) }
 0x4a4   : > { %5698 = vst.msk [vmem:[%s8913_s23 + $0x1c8] sm:$0xff] %vm3426_vm0, %v4455_v37  ;;  %v4774_v58 = vpop.permute.xlu0 %4773  ;;  %v5138_v6 = vld [vmem:[%s8913_s23 + $0xc0] sm:$0xff] (%p6800_p5)  ;;  %v5188_v37 = vld [vmem:[%s8913_s23 + $0x188] sm:$0xff] (%p6800_p5)  ;;  %5273 = vst [vmem:[%s9226_s30 + $0x4d8] sm:$0xff] (%p6800_p5), %v5272_v51 }
 0x4a5   : > { %5729 = vst.msk [vmem:[%s8913_s23 + $0x2c0] sm:$0xff] %vm3426_vm0, %v4774_v58  ;;  %5139 = vst [vmem:[%s9226_s30 + $0xc0] sm:$0xff] (%p6800_p5), %v5138_v6  ;;  %v5190_v58 = vld [vmem:[%s8913_s23 + $0x190] sm:$0xff] (%p6800_p5) }
 0x4a6   : > { %5189 = vst [vmem:[%s9226_s30 + $0x288] sm:$0xff] (%p6800_p5), %v5188_v37  ;;  %5191 = vst [vmem:[%s9226_s30 + $0x290] sm:$0xff] (%p6800_p5), %v5190_v58 }
 0x4a7   : > { %v4776_v17 = vpop.permute.xlu1 %4775  ;;  %v5140_v23 = vld [vmem:[%s8913_s23 + $0xc8] sm:$0xff] (%p6800_p5) }
 0x4a8   : > { %5730 = vst.msk [vmem:[%s8913_s23 + $0x2c8] sm:$0xff] %vm3426_vm0, %v4776_v17  ;;  %v4145_v25 = vpop.permute.xlu0 %4144  ;;  %5141 = vst [vmem:[%s9226_s30 + $0xc8] sm:$0xff] (%p6800_p5), %v5140_v23  ;;  %v5192_v17 = vld [vmem:[%s8913_s23 + $0x198] sm:$0xff] (%p6800_p5) }
 0x4a9   : > { %4210 = vst.msk [vmem:[%s8913_s23 + $0xf0] sm:$0xff] %vm3426_vm0, %v4145_v25  ;;  %v5194_v25 = vld [vmem:[%s8913_s23 + $0x1a0] sm:$0xff] (%p6800_p5)  ;;  %5193 = vst [vmem:[%s9226_s30 + $0x298] sm:$0xff] (%p6800_p5), %v5192_v17 }
 0x4aa   : > { %5195 = vst [vmem:[%s9226_s30 + $0x2a0] sm:$0xff] (%p6800_p5), %v5194_v25 }
 0x4ab   : > { %v4147_v40 = vpop.permute.xlu1 %4146 }
 0x4ac   : > { %4211 = vst.msk [vmem:[%s8913_s23 + $0xf8] sm:$0xff] %vm3426_vm0, %v4147_v40  ;;  %v4465_v38 = vpop.permute.xlu0 %4464  ;;  %v5196_v40 = vld [vmem:[%s8913_s23 + $0x1a8] sm:$0xff] (%p6800_p5)  ;;  %v5266_v6 = vld [vmem:[%s8913_s23 + $0x2c0] sm:$0xff] (%p6800_p5) }
 0x4ad   : > { %5703 = vst.msk [vmem:[%s8913_s23 + $0x1f0] sm:$0xff] %vm3426_vm0, %v4465_v38  ;;  %5197 = vst [vmem:[%s9226_s30 + $0x2a8] sm:$0xff] (%p6800_p5), %v5196_v40  ;;  %v5198_v38 = vld [vmem:[%s8913_s23 + $0x1b0] sm:$0xff] (%p6800_p5) }
 0x4ae   : > { %5199 = vst [vmem:[%s9226_s30 + $0x2b0] sm:$0xff] (%p6800_p5), %v5198_v38  ;;  %5267 = vst [vmem:[%s9226_s30 + $0x4c0] sm:$0xff] (%p6800_p5), %v5266_v6 }
 0x4af   : > { %v4467_v45 = vpop.permute.xlu1 %4466  ;;  %v5268_v23 = vld [vmem:[%s8913_s23 + $0x2c8] sm:$0xff] (%p6800_p5) }
 0x4b0   : > { %5704 = vst.msk [vmem:[%s8913_s23 + $0x1f8] sm:$0xff] %vm3426_vm0, %v4467_v45  ;;  %v4141_v27 = vpop.permute.xlu0 %4140  ;;  %v5150_v20 = vld [vmem:[%s8913_s23 + $0xf0] sm:$0xff] (%p6800_p5)  ;;  %v5200_v45 = vld [vmem:[%s8913_s23 + $0x1b8] sm:$0xff] (%p6800_p5)  ;;  %5269 = vst [vmem:[%s9226_s30 + $0x4c8] sm:$0xff] (%p6800_p5), %v5268_v23 }
 0x4b1   : > { %4208 = vst.msk [vmem:[%s8913_s23 + $0xe0] sm:$0xff] %vm3426_vm0, %v4141_v27  ;;  %5151 = vst [vmem:[%s9226_s30 + $0xf0] sm:$0xff] (%p6800_p5), %v5150_v20  ;;  %v5202_v27 = vld [vmem:[%s8913_s23 + $0x1c0] sm:$0xff] (%p6800_p5) }
 0x4b2   : > { %5201 = vst [vmem:[%s9226_s30 + $0x2b8] sm:$0xff] (%p6800_p5), %v5200_v45  ;;  %5203 = vst [vmem:[%s9226_s30 + $0x2c0] sm:$0xff] (%p6800_p5), %v5202_v27 }
 0x4b3   : > { %v4143_v5 = vpop.permute.xlu1 %4142  ;;  %v5152_v33 = vld [vmem:[%s8913_s23 + $0xf8] sm:$0xff] (%p6800_p5) }
 0x4b4   : > { %4209 = vst.msk [vmem:[%s8913_s23 + $0xe8] sm:$0xff] %vm3426_vm0, %v4143_v5  ;;  %v4461_v4 = vpop.permute.xlu0 %4460  ;;  %5153 = vst [vmem:[%s9226_s30 + $0xf8] sm:$0xff] (%p6800_p5), %v5152_v33  ;;  %v5204_v5 = vld [vmem:[%s8913_s23 + $0x1c8] sm:$0xff] (%p6800_p5) }
 0x4b5   : > { %5701 = vst.msk [vmem:[%s8913_s23 + $0x1e0] sm:$0xff] %vm3426_vm0, %v4461_v4  ;;  %v5206_v4 = vld [vmem:[%s8913_s23 + $0x1d0] sm:$0xff] (%p6800_p5)  ;;  %5205 = vst [vmem:[%s9226_s30 + $0x2c8] sm:$0xff] (%p6800_p5), %v5204_v5 }
 0x4b6   : > { %5207 = vst [vmem:[%s9226_s30 + $0x2d0] sm:$0xff] (%p6800_p5), %v5206_v4 }
 0x4b7   : > { %v4463_v49 = vpop.permute.xlu1 %4462 }
 0x4b8   : > { %5702 = vst.msk [vmem:[%s8913_s23 + $0x1e8] sm:$0xff] %vm3426_vm0, %v4463_v49  ;;  %v4782_v56 = vpop.permute.xlu0 %4781  ;;  %v5146_v53 = vld [vmem:[%s8913_s23 + $0xe0] sm:$0xff] (%p6800_p5)  ;;  %v5208_v49 = vld [vmem:[%s8913_s23 + $0x1d8] sm:$0xff] (%p6800_p5) }
 0x4b9   : > { %5733 = vst.msk [vmem:[%s8913_s23 + $0x2e0] sm:$0xff] %vm3426_vm0, %v4782_v56  ;;  %5147 = vst [vmem:[%s9226_s30 + $0xe0] sm:$0xff] (%p6800_p5), %v5146_v53 }
 0x4ba   : > { %4869 = sbr.rel (!%p6800_p5) target bundleno = 1225 (0x4c9), region = 105  ;;  %5209 = vst [vmem:[%s9226_s30 + $0x2d8] sm:$0xff] (%p6800_p5), %v5208_v49 }
 0x4bb   : > { %v4784_v43 = vpop.permute.xlu1 %4783  ;;  %v5148_v29 = vld [vmem:[%s8913_s23 + $0xe8] sm:$0xff] (%p6800_p5) }
 0x4bc   : > { %5734 = vst.msk [vmem:[%s8913_s23 + $0x2e8] sm:$0xff] %vm3426_vm0, %v4784_v43  ;;  %v4786_v2 = vpop.permute.xlu0 %4785  ;;  %5149 = vst [vmem:[%s9226_s30 + $0xe8] sm:$0xff] (%p6800_p5), %v5148_v29  ;;  %v5210_v56 = vld [vmem:[%s8913_s23 + $0x1e0] sm:$0xff] (%p6800_p5) }
 0x4bd   : > { %5735 = vst.msk [vmem:[%s8913_s23 + $0x2f0] sm:$0xff] %vm3426_vm0, %v4786_v2  ;;  %v5214_v2 = vld [vmem:[%s8913_s23 + $0x1f0] sm:$0xff] (%p6800_p5)  ;;  %5211 = vst [vmem:[%s9226_s30 + $0x2e0] sm:$0xff] (%p6800_p5), %v5210_v56 }
 0x4be   : > { %5215 = vst [vmem:[%s9226_s30 + $0x2f0] sm:$0xff] (%p6800_p5), %v5214_v2 }
 0x4bf   : > { %v4788_v30 = vpop.permute.xlu1 %4787  ;;  %v5212_v43 = vld [vmem:[%s8913_s23 + $0x1e8] sm:$0xff] (%p6800_p5) }
 0x4c0   : > { %5736 = vst.msk [vmem:[%s8913_s23 + $0x2f8] sm:$0xff] %vm3426_vm0, %v4788_v30  ;;  %5213 = vst [vmem:[%s9226_s30 + $0x2e8] sm:$0xff] (%p6800_p5), %v5212_v43  ;;  %v5216_v30 = vld [vmem:[%s8913_s23 + $0x1f8] sm:$0xff] (%p6800_p5)  ;;  %v5274_v53 = vld [vmem:[%s8913_s23 + $0x2e0] sm:$0xff] (%p6800_p5) }
 0x4c1   : > { %5217 = vst [vmem:[%s9226_s30 + $0x2f8] sm:$0xff] %v5216_v30  ;;  %5275 = vst [vmem:[%s9226_s30 + $0x4e0] sm:$0xff] %v5274_v53 }
 0x4c3   : > { %v5276_v29 = vld [vmem:[%s8913_s23 + $0x2e8] sm:$0xff] }
 0x4c4   : > { %v5278_v20 = vld [vmem:[%s8913_s23 + $0x2f0] sm:$0xff]  ;;  %5277 = vst [vmem:[%s9226_s30 + $0x4e8] sm:$0xff] %v5276_v29 }
 0x4c5   : > { %5279 = vst [vmem:[%s9226_s30 + $0x4f0] sm:$0xff] %v5278_v20 }
 0x4c7   : > { %v5280_v33 = vld [vmem:[%s8913_s23 + $0x2f8] sm:$0xff] }
 0x4c8   : > { %5281 = vst [vmem:[%s9226_s30 + $0x4f8] sm:$0xff] %v5280_v33 }
 0x4c9 PF: > { %p18_p11 = scmp.ge.s32.totalorder %s6788_s17, 4   ;;  %s9559_s13 = smov %s6706_s14 }
 0x4ca   : > { %s9560_s14 = smov %s6798_s20  ;;  %s9561_s15 = smov %s6788_s17 }
 0x4cb   :  { %20 = sbr.rel (!%p18_p11) target bundleno = 2 (0x2), region = 187 }

</bundles_post_ra>
